<compile_context>
chip_gen: v7x
topology: tpu7x:2x2x1
jax: 0.10.0
libtpu: 0.0.40
codegen_flags: <defaults>
</compile_context>

<pallas_src>
import functools

import jax
import jax.numpy as jnp
from jax.experimental import pallas as pl
from jax.experimental.pallas import tpu as pltpu

_EPS = 1e-5    # nn.GroupNorm default
_PADL = 8      # left halo width of the VMEM pad scratch; keeps the interior
               # store (and the dx=1 tap load) sublane-aligned.  Only one
               # column of the left halo is ever read; the rest stays unused.


# ---------------------------------------------------------------------------
# elementwise helpers (traced inside the kernel)
# ---------------------------------------------------------------------------
def _gelu(x):
    # tanh-approx GELU: one EUP tanh + a handful of VALU ops (the erf
    # polynomial used previously was ~20 VALU ops/element on the 4-slot VALU
    # while the EUP sat idle).  ~1e-3-level deviation vs torch's erf GELU.
    return 0.5 * x * (1.0 + jnp.tanh(0.7978845608028654 *
                                     (x + 0.044715 * x * x * x)))


# ---------------------------------------------------------------------------
# fused kernel: maxpool + DoubleConv(res) + DoubleConv + emb-add, per sample
# ---------------------------------------------------------------------------
def down_fused_kernel(x_ref, emb_ref,
                      w1a_ref, g1a_ref, b1a_ref,
                      w1b_ref, g1b_ref, b1b_ref,
                      w2a_ref, g2a_ref, b2a_ref,
                      w2b_ref, g2b_ref, b2b_ref,
                      o_ref,
                      pad_in_ref, pad_out_ref,
                      *, deep_k_ok):
    # x_ref   : (1, Hp, 2, Wp, 2*Cin)   2x2 pool window on dim 2 / lane halves
    # emb_ref : (1, 1, Cout)            silu(t) @ W + b, precomputed in JAX
    # w*_ref  : (3, 3, C_in, C_out)     HWIO conv weights, bf16
    # g*/b*   : (1, C)                  GroupNorm affine params, f32
    # o_ref   : (1, Hp*Wp, Cout)
    # pad_*   : (Hp+2, _PADL+Wp+1, C)   zero-halo VMEM scratch (f32)
    Hp = x_ref.shape[1]
    Wp = x_ref.shape[3]
    Cin = x_ref.shape[4] // 2
    Cout = o_ref.shape[2]
    HW = Hp * Wp

    # --- halo-only zeroing (was: full-scratch fill).  Only rows 0 / Hp+1 and
    # --- columns _PADL-1 / _PADL+Wp are ever read outside the interior, and
    # --- the interior is fully rewritten before each conv.  Re-zeroed every
    # --- step (cheap) so megacore splitting of the batch axis stays correct.
    def zero_halo(pad_ref):
        hp2, wt, c = pad_ref.shape
        zrow = jnp.zeros((1, wt, c), jnp.float32)
        zcol = jnp.zeros((hp2, 1, c), jnp.float32)
        pad_ref[pl.ds(0, 1)] = zrow                      # top halo row
        pad_ref[pl.ds(hp2 - 1, 1)] = zrow                # bottom halo row
        pad_ref[:, pl.ds(_PADL - 1, 1), :] = zcol        # left halo column
        pad_ref[:, pl.ds(wt - 1, 1), :] = zcol           # right halo column

    zero_halo(pad_in_ref)
    zero_halo(pad_out_ref)

    # ---- MaxPool2d(2): row pair via two leading-dim ref loads, column pair
    # ---- via the two lane halves (the feeding reshape was copy-free in XLA).
    r = jnp.maximum(x_ref[0, :, 0, :, :], x_ref[0, :, 1, :, :])     # (Hp, Wp, 2*Cin)
    pooled = jnp.maximum(r[:, :, :Cin], r[:, :, Cin:]).astype(jnp.float32)
    x0 = pooled.reshape(HW, Cin)                                    # (HW, Cin)

    def write_interior(pad_ref, act2d, c):
        # interior lives at rows [1, Hp+1), cols [_PADL, _PADL+Wp)
        pad_ref[pl.ds(1, Hp), pl.ds(_PADL, Wp), :] = act2d.reshape(Hp, Wp, c)

    def conv3x3(pad_ref, w_ref):
        cin, cout = w_ref.shape[2], w_ref.shape[3]
        acc = jnp.zeros((HW, cout), jnp.float32)
        if deep_k_ok and cin % 128 == 0:
            # Lane-aligned channels on v6e/v7x: accumulate over dy with three
            # K=3*cin bf16 matmuls (keeps the 256-deep MXU fed, no 9*cin
            # patch, no second full-patch materialization -> fits v7x VMEM).
            for dy in range(3):
                patch = jnp.concatenate(
                    [pad_ref[pl.ds(dy, Hp), pl.ds(_PADL - 1 + dx, Wp), :]
                     .reshape(HW, cin).astype(jnp.bfloat16)
                     for dx in range(3)], axis=-1)                  # (HW, 3*cin) bf16
                acc = acc + jnp.dot(patch, w_ref[dy].reshape(3 * cin, cout),
                                    preferred_element_type=jnp.float32)
        else:
            # Small / lane-unaligned channel counts, or v5e (128-deep MXU):
            # 9 bf16 matmuls, each tap loaded straight from the VMEM scratch.
            # TODO(synk): the dx=0/dx=2 taps are sublane-misaligned; a
            #   pltpu.roll-based shift on the XLU would hide that relayout.
            for dy in range(3):
                for dx in range(3):
                    tap = (pad_ref[pl.ds(dy, Hp), pl.ds(_PADL - 1 + dx, Wp), :]
                           .reshape(HW, cin).astype(jnp.bfloat16))
                    acc = acc + jnp.dot(tap, w_ref[dy, dx],
                                        preferred_element_type=jnp.float32)
        return acc

    def groupnorm(h, g_ref, b_ref):
        # GroupNorm(num_groups=1): stats over the whole (HW, C) sample,
        # biased variance, eps=1e-5, per-channel affine -- matches torch.
        # One pass: var = E[x^2] - mean^2 (f32 accumulation).
        mean = jnp.mean(h)
        var = jnp.maximum(jnp.mean(h * h) - mean * mean, 0.0)
        return (h - mean) * jax.lax.rsqrt(var + _EPS) * g_ref[...] + b_ref[...]

    # ---- DoubleConv(Cin, Cin, residual=True) ----
    write_interior(pad_in_ref, x0, Cin)
    h = _gelu(groupnorm(conv3x3(pad_in_ref, w1a_ref), g1a_ref, b1a_ref))
    write_interior(pad_in_ref, h, Cin)
    h = groupnorm(conv3x3(pad_in_ref, w1b_ref), g1b_ref, b1b_ref)
    x1 = _gelu(x0 + h)                                              # gelu(x + dc(x))

    # ---- DoubleConv(Cin, Cout) ----
    write_interior(pad_in_ref, x1, Cin)
    h = _gelu(groupnorm(conv3x3(pad_in_ref, w2a_ref), g2a_ref, b2a_ref))
    write_interior(pad_out_ref, h, Cout)
    h = groupnorm(conv3x3(pad_out_ref, w2b_ref), g2b_ref, b2b_ref)

    # ---- + time embedding (broadcast over spatial), store ----
    o_ref[0] = (h + emb_ref[0]).astype(o_ref.dtype)


# ---------------------------------------------------------------------------
# Down.forward
# ---------------------------------------------------------------------------
def _tpu_kind():
    try:
        return jax.devices()[0].device_kind.lower()
    except Exception:
        return ""


def _const_spec(shape, index_map):
    """Spec for operands revisited every grid step: single-buffered."""
    buffered = getattr(pl, "Buffered", None)
    if buffered is not None:
        try:
            return pl.BlockSpec(shape, index_map, pipeline_mode=buffered(1))
        except TypeError:
            pass
    return pl.BlockSpec(shape, index_map)


def down_forward(x_nchw, t, params):
    """x: (B, Cin, H, W); t: (B, emb_dim). Returns (B, Cout, H//2, W//2)."""
    B, Cin, H, W = x_nchw.shape
    assert H % 2 == 0 and W % 2 == 0, "MaxPool2d(2) path assumes even H and W"
    Hp, Wp = H // 2, W // 2
    Cout = params["w2b"].shape[-1]

    kind = _tpu_kind()
    is_v5 = "v5" in kind
    is_v7 = ("v7" in kind) or ("7x" in kind)
    # v5e's MXU is only 128 deep: per-tap K=Cin matmuls already fill it, so
    # skip the per-dy K=3*Cin im2col (and its concat copies) there.
    deep_k_ok = not is_v5
    if is_v7:
        vmem_limit = 56 * 1024 * 1024          # 64 MiB physical VMEM on v7x
    elif is_v5 or ("v6" in kind):
        vmem_limit = 100 * 1024 * 1024         # 128 MiB physical VMEM
    else:
        vmem_limit = None                      # unknown part: compiler default

    # NCHW -> NHWC (single copy), then a copy-free dim split exposing the 2x2
    # pooling window: rows paired on dim 2, columns paired on the lane halves.
    x = jnp.transpose(x_nchw, (0, 2, 3, 1)).reshape(B, Hp, 2, Wp, 2 * Cin)

    # emb_layer = Linear(SiLU(t)) hoisted to one dense (B,E)@(E,Cout) matmul;
    # only the broadcast-add happens inside the kernel.
    emb = (jax.nn.silu(t.astype(jnp.float32)) @ params["w_lin"]
           + params["b_lin"]).reshape(B, 1, Cout)

    cspec2 = lambda shape: _const_spec(shape, lambda b: (0, 0))
    cspec4 = lambda shape: _const_spec(shape, lambda b: (0, 0, 0, 0))

    kernel = functools.partial(down_fused_kernel, deep_k_ok=deep_k_ok)

    out_flat = pl.pallas_call(
        kernel,
        out_shape=jax.ShapeDtypeStruct((B, Hp * Wp, Cout), x_nchw.dtype),
        grid=(B,),
        in_specs=[
            pl.BlockSpec((1, Hp, 2, Wp, 2 * Cin), lambda b: (b, 0, 0, 0, 0)),
            pl.BlockSpec((1, 1, Cout), lambda b: (b, 0, 0)),
            cspec4((3, 3, Cin, Cin)),   cspec2((1, Cin)),  cspec2((1, Cin)),
            cspec4((3, 3, Cin, Cin)),   cspec2((1, Cin)),  cspec2((1, Cin)),
            cspec4((3, 3, Cin, Cout)),  cspec2((1, Cout)), cspec2((1, Cout)),
            cspec4((3, 3, Cout, Cout)), cspec2((1, Cout)), cspec2((1, Cout)),
        ],
        out_specs=pl.BlockSpec((1, Hp * Wp, Cout), lambda b: (b, 0, 0)),
        scratch_shapes=[
            pltpu.VMEM((Hp + 2, _PADL + Wp + 1, Cin), jnp.float32),
            pltpu.VMEM((Hp + 2, _PADL + Wp + 1, Cout), jnp.float32),
        ],
        compiler_params=pltpu.CompilerParams(
            dimension_semantics=("parallel",),
            vmem_limit_bytes=vmem_limit,
        ),
    )(x, emb,
      params["w1a"], params["g1a"], params["b1a"],
      params["w1b"], params["g1b"], params["b1b"],
      params["w2a"], params["g2a"], params["b2a"],
      params["w2b"], params["g2b"], params["b2b"])

    return jnp.transpose(out_flat.reshape(B, Hp, Wp, Cout), (0, 3, 1, 2))


def init_params(key, cin, cout, emb_dim):
    ks = jax.random.split(key, 6)
    f32, bf16 = jnp.float32, jnp.bfloat16

    # conv weights stored HWIO == torch (Cout,Cin,3,3).transpose(2,3,1,0),
    # bias=False.  Kept bf16 in HBM: halves weight DMA and feeds the MXU its
    # native dtype (matmuls accumulate in f32 via preferred_element_type).
    def conv_w(k, ci, co):
        return (jax.random.normal(k, (3, 3, ci, co), f32) * 0.1).astype(bf16)

    return {
        "w1a": conv_w(ks[0], cin, cin),
        "g1a": jnp.ones((1, cin), f32), "b1a": jnp.zeros((1, cin), f32),
        "w1b": conv_w(ks[1], cin, cin),
        "g1b": jnp.ones((1, cin), f32), "b1b": jnp.zeros((1, cin), f32),
        "w2a": conv_w(ks[2], cin, cout),
        "g2a": jnp.ones((1, cout), f32), "b2a": jnp.zeros((1, cout), f32),
        "w2b": conv_w(ks[3], cout, cout),
        "g2b": jnp.ones((1, cout), f32), "b2b": jnp.zeros((1, cout), f32),
        # emb_layer Linear: stored as (emb_dim, cout) == torch weight.T
        "w_lin": jax.random.normal(ks[4], (emb_dim, cout), f32) * 0.1,
        "b_lin": jax.random.normal(ks[5], (1, cout), f32) * 0.1,
    }


if __name__ == "__main__":
    B, Cin, Cout, H, W, E = 2, 4, 8, 16, 16, 32
    key = jax.random.PRNGKey(0)
    kx, kt, kp = jax.random.split(key, 3)
    x = jax.random.normal(kx, (B, Cin, H, W), jnp.float32)
    t = jax.random.normal(kt, (B, E), jnp.float32)
    params = init_params(kp, Cin, Cout, E)

    out = jax.jit(down_forward)(x, t, params)
    out = jax.block_until_ready(out)
    assert out.shape == (B, Cout, H // 2, W // 2), out.shape
    assert bool(jnp.all(jnp.isfinite(out)))
    print("KERNEL_OK")
</pallas_src>

<mosaic_0001>
module attributes {stable_mosaic.version = 11 : i64} {
  func.func @down_fused_kernel(%arg0: i32, %arg1: memref<1x8x2x8x8xf32, #tpu.memory_space<vmem>>, %arg2: memref<1x1x8xf32, #tpu.memory_space<vmem>>, %arg3: memref<3x3x4x4xbf16, #tpu.memory_space<vmem>>, %arg4: memref<1x4xf32, #tpu.memory_space<vmem>>, %arg5: memref<1x4xf32, #tpu.memory_space<vmem>>, %arg6: memref<3x3x4x4xbf16, #tpu.memory_space<vmem>>, %arg7: memref<1x4xf32, #tpu.memory_space<vmem>>, %arg8: memref<1x4xf32, #tpu.memory_space<vmem>>, %arg9: memref<3x3x4x8xbf16, #tpu.memory_space<vmem>>, %arg10: memref<1x8xf32, #tpu.memory_space<vmem>>, %arg11: memref<1x8xf32, #tpu.memory_space<vmem>>, %arg12: memref<3x3x8x8xbf16, #tpu.memory_space<vmem>>, %arg13: memref<1x8xf32, #tpu.memory_space<vmem>>, %arg14: memref<1x8xf32, #tpu.memory_space<vmem>>, %arg15: memref<1x64x8xf32, #tpu.memory_space<vmem>>, %arg16: memref<10x17x4xf32, #tpu.memory_space<vmem>>, %arg17: memref<10x17x8xf32, #tpu.memory_space<vmem>>) attributes {dimension_semantics = [#tpu.dimension_semantics<parallel>], iteration_bounds = array<i64: 2>, scalar_prefetch = 0 : i64, scratch_operands = 2 : i64, tpu.core_type = #tpu.core_type<tc>, window_params = [{transform_indices = @transform_0, window_bounds = array<i64: 1, 8, 2, 8, 8>}, {transform_indices = @transform_1, window_bounds = array<i64: 1, 1, 8>}, {pipeline_mode = #tpu.pipeline_mode<synchronous>, transform_indices = @transform_2, window_bounds = array<i64: 3, 3, 4, 4>}, {pipeline_mode = #tpu.pipeline_mode<synchronous>, transform_indices = @transform_3, window_bounds = array<i64: 1, 4>}, {pipeline_mode = #tpu.pipeline_mode<synchronous>, transform_indices = @transform_4, window_bounds = array<i64: 1, 4>}, {pipeline_mode = #tpu.pipeline_mode<synchronous>, transform_indices = @transform_5, window_bounds = array<i64: 3, 3, 4, 4>}, {pipeline_mode = #tpu.pipeline_mode<synchronous>, transform_indices = @transform_6, window_bounds = array<i64: 1, 4>}, {pipeline_mode = #tpu.pipeline_mode<synchronous>, transform_indices = @transform_7, window_bounds = array<i64: 1, 4>}, {pipeline_mode = #tpu.pipeline_mode<synchronous>, transform_indices = @transform_8, window_bounds = array<i64: 3, 3, 4, 8>}, {pipeline_mode = #tpu.pipeline_mode<synchronous>, transform_indices = @transform_9, window_bounds = array<i64: 1, 8>}, {pipeline_mode = #tpu.pipeline_mode<synchronous>, transform_indices = @transform_10, window_bounds = array<i64: 1, 8>}, {pipeline_mode = #tpu.pipeline_mode<synchronous>, transform_indices = @transform_11, window_bounds = array<i64: 3, 3, 8, 8>}, {pipeline_mode = #tpu.pipeline_mode<synchronous>, transform_indices = @transform_12, window_bounds = array<i64: 1, 8>}, {pipeline_mode = #tpu.pipeline_mode<synchronous>, transform_indices = @transform_13, window_bounds = array<i64: 1, 8>}, {transform_indices = @transform_14, window_bounds = array<i64: 1, 64, 8>}]} {
    %cst = arith.constant 0.000000e+00 : f32
    %0 = vector.broadcast %cst : f32 to vector<1x17x4xf32>
    %cst_0 = arith.constant 0.000000e+00 : f32
    %1 = vector.broadcast %cst_0 : f32 to vector<10x1x4xf32>
    %c0 = arith.constant 0 : index
    %c0_1 = arith.constant 0 : index
    %c0_2 = arith.constant 0 : index
    %2 = vector.load %arg16[%c0, %c0_1, %c0_2] : memref<10x17x4xf32, #tpu.memory_space<vmem>>, vector<1x17x4xf32>
    tpu.vector_store %arg16[%c0, %c0_1, %c0_2], %0 {strides = array<i32>} : memref<10x17x4xf32, #tpu.memory_space<vmem>>, vector<1x17x4xf32>,
    %c9 = arith.constant 9 : index
    %c0_3 = arith.constant 0 : index
    %c0_4 = arith.constant 0 : index
    %3 = vector.load %arg16[%c9, %c0_3, %c0_4] : memref<10x17x4xf32, #tpu.memory_space<vmem>>, vector<1x17x4xf32>
    tpu.vector_store %arg16[%c9, %c0_3, %c0_4], %0 {strides = array<i32>} : memref<10x17x4xf32, #tpu.memory_space<vmem>>, vector<1x17x4xf32>,
    %c0_5 = arith.constant 0 : index
    %c7 = arith.constant 7 : index
    %c0_6 = arith.constant 0 : index
    %4 = vector.load %arg16[%c0_5, %c7, %c0_6] : memref<10x17x4xf32, #tpu.memory_space<vmem>>, vector<10x1x4xf32>
    tpu.vector_store %arg16[%c0_5, %c7, %c0_6], %1 {strides = array<i32>} : memref<10x17x4xf32, #tpu.memory_space<vmem>>, vector<10x1x4xf32>,
    %c0_7 = arith.constant 0 : index
    %c16 = arith.constant 16 : index
    %c0_8 = arith.constant 0 : index
    %5 = vector.load %arg16[%c0_7, %c16, %c0_8] : memref<10x17x4xf32, #tpu.memory_space<vmem>>, vector<10x1x4xf32>
    tpu.vector_store %arg16[%c0_7, %c16, %c0_8], %1 {strides = array<i32>} : memref<10x17x4xf32, #tpu.memory_space<vmem>>, vector<10x1x4xf32>,
    %cst_9 = arith.constant 0.000000e+00 : f32
    %6 = vector.broadcast %cst_9 : f32 to vector<1x17x8xf32>
    %cst_10 = arith.constant 0.000000e+00 : f32
    %7 = vector.broadcast %cst_10 : f32 to vector<10x1x8xf32>
    %c0_11 = arith.constant 0 : index
    %c0_12 = arith.constant 0 : index
    %c0_13 = arith.constant 0 : index
    %8 = vector.load %arg17[%c0_11, %c0_12, %c0_13] : memref<10x17x8xf32, #tpu.memory_space<vmem>>, vector<1x17x8xf32>
    tpu.vector_store %arg17[%c0_11, %c0_12, %c0_13], %6 {strides = array<i32>} : memref<10x17x8xf32, #tpu.memory_space<vmem>>, vector<1x17x8xf32>,
    %c9_14 = arith.constant 9 : index
    %c0_15 = arith.constant 0 : index
    %c0_16 = arith.constant 0 : index
    %9 = vector.load %arg17[%c9_14, %c0_15, %c0_16] : memref<10x17x8xf32, #tpu.memory_space<vmem>>, vector<1x17x8xf32>
    tpu.vector_store %arg17[%c9_14, %c0_15, %c0_16], %6 {strides = array<i32>} : memref<10x17x8xf32, #tpu.memory_space<vmem>>, vector<1x17x8xf32>,
    %c0_17 = arith.constant 0 : index
    %c7_18 = arith.constant 7 : index
    %c0_19 = arith.constant 0 : index
    %10 = vector.load %arg17[%c0_17, %c7_18, %c0_19] : memref<10x17x8xf32, #tpu.memory_space<vmem>>, vector<10x1x8xf32>
    tpu.vector_store %arg17[%c0_17, %c7_18, %c0_19], %7 {strides = array<i32>} : memref<10x17x8xf32, #tpu.memory_space<vmem>>, vector<10x1x8xf32>,
    %c0_20 = arith.constant 0 : index
    %c16_21 = arith.constant 16 : index
    %c0_22 = arith.constant 0 : index
    %11 = vector.load %arg17[%c0_20, %c16_21, %c0_22] : memref<10x17x8xf32, #tpu.memory_space<vmem>>, vector<10x1x8xf32>
    tpu.vector_store %arg17[%c0_20, %c16_21, %c0_22], %7 {strides = array<i32>} : memref<10x17x8xf32, #tpu.memory_space<vmem>>, vector<10x1x8xf32>,
    %c0_23 = arith.constant 0 : index
    %c0_24 = arith.constant 0 : index
    %c0_25 = arith.constant 0 : index
    %c0_26 = arith.constant 0 : index
    %c0_27 = arith.constant 0 : index
    %12 = vector.load %arg1[%c0_23, %c0_24, %c0_25, %c0_26, %c0_27] : memref<1x8x2x8x8xf32, #tpu.memory_space<vmem>>, vector<1x8x1x8x8xf32>
    %13 = vector.shape_cast %12 : vector<1x8x1x8x8xf32> to vector<8x8x8xf32>
    %c0_28 = arith.constant 0 : index
    %c0_29 = arith.constant 0 : index
    %c1 = arith.constant 1 : index
    %c0_30 = arith.constant 0 : index
    %c0_31 = arith.constant 0 : index
    %14 = vector.load %arg1[%c0_28, %c0_29, %c1, %c0_30, %c0_31] : memref<1x8x2x8x8xf32, #tpu.memory_space<vmem>>, vector<1x8x1x8x8xf32>
    %15 = vector.shape_cast %14 : vector<1x8x1x8x8xf32> to vector<8x8x8xf32>
    %16 = arith.maximumf %13, %15 : vector<8x8x8xf32>
    %17 = vector.extract_strided_slice %16 {offsets = [0, 0, 0], sizes = [8, 8, 4], strides = [1, 1, 1]} : vector<8x8x8xf32> to vector<8x8x4xf32>
    %18 = vector.extract_strided_slice %16 {offsets = [0, 0, 4], sizes = [8, 8, 4], strides = [1, 1, 1]} : vector<8x8x8xf32> to vector<8x8x4xf32>
    %19 = arith.maximumf %17, %18 : vector<8x8x4xf32>
    %20 = vector.shape_cast %19 : vector<8x8x4xf32> to vector<64x4xf32>
    %21 = vector.shape_cast %20 : vector<64x4xf32> to vector<8x8x4xf32>
    %c1_32 = arith.constant 1 : index
    %c8 = arith.constant 8 : index
    %c0_33 = arith.constant 0 : index
    %22 = vector.load %arg16[%c1_32, %c8, %c0_33] : memref<10x17x4xf32, #tpu.memory_space<vmem>>, vector<8x8x4xf32>
    tpu.vector_store %arg16[%c1_32, %c8, %c0_33], %21 {strides = array<i32>} : memref<10x17x4xf32, #tpu.memory_space<vmem>>, vector<8x8x4xf32>,
    %cst_34 = arith.constant 0.000000e+00 : f32
    %23 = vector.broadcast %cst_34 : f32 to vector<64x4xf32>
    %c0_35 = arith.constant 0 : index
    %c7_36 = arith.constant 7 : index
    %c0_37 = arith.constant 0 : index
    %24 = vector.load %arg16[%c0_35, %c7_36, %c0_37] : memref<10x17x4xf32, #tpu.memory_space<vmem>>, vector<8x8x4xf32>
    %25 = vector.shape_cast %24 : vector<8x8x4xf32> to vector<64x4xf32>
    %26 = arith.truncf %25 : vector<64x4xf32> to vector<64x4xbf16>
    %c0_38 = arith.constant 0 : index
    %c0_39 = arith.constant 0 : index
    %c0_40 = arith.constant 0 : index
    %c0_41 = arith.constant 0 : index
    %27 = vector.load %arg3[%c0_38, %c0_39, %c0_40, %c0_41] : memref<3x3x4x4xbf16, #tpu.memory_space<vmem>>, vector<1x1x4x4xbf16>
    %28 = vector.shape_cast %27 : vector<1x1x4x4xbf16> to vector<4x4xbf16>
    %cst_42 = arith.constant dense<0.000000e+00> : vector<64x4xf32>
    %29 = tpu.matmul %26, %28, %cst_42 {dimension_numbers = #tpu.dot_dimension_numbers<[1], [0], [0], [1], [0, 0, 1, 1], [], []>} : vector<64x4xbf16>, vector<4x4xbf16>, vector<64x4xf32> -> vector<64x4xf32>
    %30 = arith.addf %23, %29 : vector<64x4xf32>
    %c0_43 = arith.constant 0 : index
    %c8_44 = arith.constant 8 : index
    %c0_45 = arith.constant 0 : index
    %31 = vector.load %arg16[%c0_43, %c8_44, %c0_45] : memref<10x17x4xf32, #tpu.memory_space<vmem>>, vector<8x8x4xf32>
    %32 = vector.shape_cast %31 : vector<8x8x4xf32> to vector<64x4xf32>
    %33 = arith.truncf %32 : vector<64x4xf32> to vector<64x4xbf16>
    %c0_46 = arith.constant 0 : index
    %c1_47 = arith.constant 1 : index
    %c0_48 = arith.constant 0 : index
    %c0_49 = arith.constant 0 : index
    %34 = vector.load %arg3[%c0_46, %c1_47, %c0_48, %c0_49] : memref<3x3x4x4xbf16, #tpu.memory_space<vmem>>, vector<1x1x4x4xbf16>
    %35 = vector.shape_cast %34 : vector<1x1x4x4xbf16> to vector<4x4xbf16>
    %cst_50 = arith.constant dense<0.000000e+00> : vector<64x4xf32>
    %36 = tpu.matmul %33, %35, %cst_50 {dimension_numbers = #tpu.dot_dimension_numbers<[1], [0], [0], [1], [0, 0, 1, 1], [], []>} : vector<64x4xbf16>, vector<4x4xbf16>, vector<64x4xf32> -> vector<64x4xf32>
    %37 = arith.addf %30, %36 : vector<64x4xf32>
    %c0_51 = arith.constant 0 : index
    %c9_52 = arith.constant 9 : index
    %c0_53 = arith.constant 0 : index
    %38 = vector.load %arg16[%c0_51, %c9_52, %c0_53] : memref<10x17x4xf32, #tpu.memory_space<vmem>>, vector<8x8x4xf32>
    %39 = vector.shape_cast %38 : vector<8x8x4xf32> to vector<64x4xf32>
    %40 = arith.truncf %39 : vector<64x4xf32> to vector<64x4xbf16>
    %c0_54 = arith.constant 0 : index
    %c2 = arith.constant 2 : index
    %c0_55 = arith.constant 0 : index
    %c0_56 = arith.constant 0 : index
    %41 = vector.load %arg3[%c0_54, %c2, %c0_55, %c0_56] : memref<3x3x4x4xbf16, #tpu.memory_space<vmem>>, vector<1x1x4x4xbf16>
    %42 = vector.shape_cast %41 : vector<1x1x4x4xbf16> to vector<4x4xbf16>
    %cst_57 = arith.constant dense<0.000000e+00> : vector<64x4xf32>
    %43 = tpu.matmul %40, %42, %cst_57 {dimension_numbers = #tpu.dot_dimension_numbers<[1], [0], [0], [1], [0, 0, 1, 1], [], []>} : vector<64x4xbf16>, vector<4x4xbf16>, vector<64x4xf32> -> vector<64x4xf32>
    %44 = arith.addf %37, %43 : vector<64x4xf32>
    %c1_58 = arith.constant 1 : index
    %c7_59 = arith.constant 7 : index
    %c0_60 = arith.constant 0 : index
    %45 = vector.load %arg16[%c1_58, %c7_59, %c0_60] : memref<10x17x4xf32, #tpu.memory_space<vmem>>, vector<8x8x4xf32>
    %46 = vector.shape_cast %45 : vector<8x8x4xf32> to vector<64x4xf32>
    %47 = arith.truncf %46 : vector<64x4xf32> to vector<64x4xbf16>
    %c1_61 = arith.constant 1 : index
    %c0_62 = arith.constant 0 : index
    %c0_63 = arith.constant 0 : index
    %c0_64 = arith.constant 0 : index
    %48 = vector.load %arg3[%c1_61, %c0_62, %c0_63, %c0_64] : memref<3x3x4x4xbf16, #tpu.memory_space<vmem>>, vector<1x1x4x4xbf16>
    %49 = vector.shape_cast %48 : vector<1x1x4x4xbf16> to vector<4x4xbf16>
    %cst_65 = arith.constant dense<0.000000e+00> : vector<64x4xf32>
    %50 = tpu.matmul %47, %49, %cst_65 {dimension_numbers = #tpu.dot_dimension_numbers<[1], [0], [0], [1], [0, 0, 1, 1], [], []>} : vector<64x4xbf16>, vector<4x4xbf16>, vector<64x4xf32> -> vector<64x4xf32>
    %51 = arith.addf %44, %50 : vector<64x4xf32>
    %c1_66 = arith.constant 1 : index
    %c8_67 = arith.constant 8 : index
    %c0_68 = arith.constant 0 : index
    %52 = vector.load %arg16[%c1_66, %c8_67, %c0_68] : memref<10x17x4xf32, #tpu.memory_space<vmem>>, vector<8x8x4xf32>
    %53 = vector.shape_cast %52 : vector<8x8x4xf32> to vector<64x4xf32>
    %54 = arith.truncf %53 : vector<64x4xf32> to vector<64x4xbf16>
    %c1_69 = arith.constant 1 : index
    %c1_70 = arith.constant 1 : index
    %c0_71 = arith.constant 0 : index
    %c0_72 = arith.constant 0 : index
    %55 = vector.load %arg3[%c1_69, %c1_70, %c0_71, %c0_72] : memref<3x3x4x4xbf16, #tpu.memory_space<vmem>>, vector<1x1x4x4xbf16>
    %56 = vector.shape_cast %55 : vector<1x1x4x4xbf16> to vector<4x4xbf16>
    %cst_73 = arith.constant dense<0.000000e+00> : vector<64x4xf32>
    %57 = tpu.matmul %54, %56, %cst_73 {dimension_numbers = #tpu.dot_dimension_numbers<[1], [0], [0], [1], [0, 0, 1, 1], [], []>} : vector<64x4xbf16>, vector<4x4xbf16>, vector<64x4xf32> -> vector<64x4xf32>
    %58 = arith.addf %51, %57 : vector<64x4xf32>
    %c1_74 = arith.constant 1 : index
    %c9_75 = arith.constant 9 : index
    %c0_76 = arith.constant 0 : index
    %59 = vector.load %arg16[%c1_74, %c9_75, %c0_76] : memref<10x17x4xf32, #tpu.memory_space<vmem>>, vector<8x8x4xf32>
    %60 = vector.shape_cast %59 : vector<8x8x4xf32> to vector<64x4xf32>
    %61 = arith.truncf %60 : vector<64x4xf32> to vector<64x4xbf16>
    %c1_77 = arith.constant 1 : index
    %c2_78 = arith.constant 2 : index
    %c0_79 = arith.constant 0 : index
    %c0_80 = arith.constant 0 : index
    %62 = vector.load %arg3[%c1_77, %c2_78, %c0_79, %c0_80] : memref<3x3x4x4xbf16, #tpu.memory_space<vmem>>, vector<1x1x4x4xbf16>
    %63 = vector.shape_cast %62 : vector<1x1x4x4xbf16> to vector<4x4xbf16>
    %cst_81 = arith.constant dense<0.000000e+00> : vector<64x4xf32>
    %64 = tpu.matmul %61, %63, %cst_81 {dimension_numbers = #tpu.dot_dimension_numbers<[1], [0], [0], [1], [0, 0, 1, 1], [], []>} : vector<64x4xbf16>, vector<4x4xbf16>, vector<64x4xf32> -> vector<64x4xf32>
    %65 = arith.addf %58, %64 : vector<64x4xf32>
    %c2_82 = arith.constant 2 : index
    %c7_83 = arith.constant 7 : index
    %c0_84 = arith.constant 0 : index
    %66 = vector.load %arg16[%c2_82, %c7_83, %c0_84] : memref<10x17x4xf32, #tpu.memory_space<vmem>>, vector<8x8x4xf32>
    %67 = vector.shape_cast %66 : vector<8x8x4xf32> to vector<64x4xf32>
    %68 = arith.truncf %67 : vector<64x4xf32> to vector<64x4xbf16>
    %c2_85 = arith.constant 2 : index
    %c0_86 = arith.constant 0 : index
    %c0_87 = arith.constant 0 : index
    %c0_88 = arith.constant 0 : index
    %69 = vector.load %arg3[%c2_85, %c0_86, %c0_87, %c0_88] : memref<3x3x4x4xbf16, #tpu.memory_space<vmem>>, vector<1x1x4x4xbf16>
    %70 = vector.shape_cast %69 : vector<1x1x4x4xbf16> to vector<4x4xbf16>
    %cst_89 = arith.constant dense<0.000000e+00> : vector<64x4xf32>
    %71 = tpu.matmul %68, %70, %cst_89 {dimension_numbers = #tpu.dot_dimension_numbers<[1], [0], [0], [1], [0, 0, 1, 1], [], []>} : vector<64x4xbf16>, vector<4x4xbf16>, vector<64x4xf32> -> vector<64x4xf32>
    %72 = arith.addf %65, %71 : vector<64x4xf32>
    %c2_90 = arith.constant 2 : index
    %c8_91 = arith.constant 8 : index
    %c0_92 = arith.constant 0 : index
    %73 = vector.load %arg16[%c2_90, %c8_91, %c0_92] : memref<10x17x4xf32, #tpu.memory_space<vmem>>, vector<8x8x4xf32>
    %74 = vector.shape_cast %73 : vector<8x8x4xf32> to vector<64x4xf32>
    %75 = arith.truncf %74 : vector<64x4xf32> to vector<64x4xbf16>
    %c2_93 = arith.constant 2 : index
    %c1_94 = arith.constant 1 : index
    %c0_95 = arith.constant 0 : index
    %c0_96 = arith.constant 0 : index
    %76 = vector.load %arg3[%c2_93, %c1_94, %c0_95, %c0_96] : memref<3x3x4x4xbf16, #tpu.memory_space<vmem>>, vector<1x1x4x4xbf16>
    %77 = vector.shape_cast %76 : vector<1x1x4x4xbf16> to vector<4x4xbf16>
    %cst_97 = arith.constant dense<0.000000e+00> : vector<64x4xf32>
    %78 = tpu.matmul %75, %77, %cst_97 {dimension_numbers = #tpu.dot_dimension_numbers<[1], [0], [0], [1], [0, 0, 1, 1], [], []>} : vector<64x4xbf16>, vector<4x4xbf16>, vector<64x4xf32> -> vector<64x4xf32>
    %79 = arith.addf %72, %78 : vector<64x4xf32>
    %c2_98 = arith.constant 2 : index
    %c9_99 = arith.constant 9 : index
    %c0_100 = arith.constant 0 : index
    %80 = vector.load %arg16[%c2_98, %c9_99, %c0_100] : memref<10x17x4xf32, #tpu.memory_space<vmem>>, vector<8x8x4xf32>
    %81 = vector.shape_cast %80 : vector<8x8x4xf32> to vector<64x4xf32>
    %82 = arith.truncf %81 : vector<64x4xf32> to vector<64x4xbf16>
    %c2_101 = arith.constant 2 : index
    %c2_102 = arith.constant 2 : index
    %c0_103 = arith.constant 0 : index
    %c0_104 = arith.constant 0 : index
    %83 = vector.load %arg3[%c2_101, %c2_102, %c0_103, %c0_104] : memref<3x3x4x4xbf16, #tpu.memory_space<vmem>>, vector<1x1x4x4xbf16>
    %84 = vector.shape_cast %83 : vector<1x1x4x4xbf16> to vector<4x4xbf16>
    %cst_105 = arith.constant dense<0.000000e+00> : vector<64x4xf32>
    %85 = tpu.matmul %82, %84, %cst_105 {dimension_numbers = #tpu.dot_dimension_numbers<[1], [0], [0], [1], [0, 0, 1, 1], [], []>} : vector<64x4xbf16>, vector<4x4xbf16>, vector<64x4xf32> -> vector<64x4xf32>
    %86 = arith.addf %79, %85 : vector<64x4xf32>
    %87 = vector.shape_cast %86 : vector<64x4xf32> to vector<1x64x4xf32>
    %cst_106 = arith.constant dense<0.000000e+00> : vector<1xf32>
    %88 = vector.multi_reduction <add>, %87, %cst_106 [1, 2] : vector<1x64x4xf32> to vector<1xf32>
    %89 = vector.shape_cast %88 : vector<1xf32> to vector<1x1x1xf32>
    %90 = vector.extract %89[0, 0, 0] : f32 from vector<1x1x1xf32>
    %cst_107 = arith.constant 2.560000e+02 : f32
    %91 = arith.divf %90, %cst_107 : f32
    %92 = arith.mulf %86, %86 : vector<64x4xf32>
    %93 = vector.shape_cast %92 : vector<64x4xf32> to vector<1x64x4xf32>
    %cst_108 = arith.constant dense<0.000000e+00> : vector<1xf32>
    %94 = vector.multi_reduction <add>, %93, %cst_108 [1, 2] : vector<1x64x4xf32> to vector<1xf32>
    %95 = vector.shape_cast %94 : vector<1xf32> to vector<1x1x1xf32>
    %96 = vector.extract %95[0, 0, 0] : f32 from vector<1x1x1xf32>
    %cst_109 = arith.constant 2.560000e+02 : f32
    %97 = arith.divf %96, %cst_109 : f32
    %98 = arith.mulf %91, %91 : f32
    %99 = arith.subf %97, %98 : f32
    %cst_110 = arith.constant 0.000000e+00 : f32
    %100 = arith.maximumf %99, %cst_110 : f32
    %101 = vector.broadcast %91 : f32 to vector<64x4xf32>
    %102 = arith.subf %86, %101 : vector<64x4xf32>
    %cst_111 = arith.constant 9.99999974E-6 : f32
    %103 = arith.addf %100, %cst_111 : f32
    %104 = math.rsqrt %103 : f32
    %105 = vector.broadcast %104 : f32 to vector<64x4xf32>
    %106 = arith.mulf %102, %105 : vector<64x4xf32>
    %c0_112 = arith.constant 0 : index
    %c0_113 = arith.constant 0 : index
    %107 = vector.load %arg4[%c0_112, %c0_113] : memref<1x4xf32, #tpu.memory_space<vmem>>, vector<1x4xf32>
    %108 = vector.broadcast %107 : vector<1x4xf32> to vector<64x4xf32>
    %109 = arith.mulf %106, %108 : vector<64x4xf32>
    %c0_114 = arith.constant 0 : index
    %c0_115 = arith.constant 0 : index
    %110 = vector.load %arg5[%c0_114, %c0_115] : memref<1x4xf32, #tpu.memory_space<vmem>>, vector<1x4xf32>
    %111 = vector.broadcast %110 : vector<1x4xf32> to vector<64x4xf32>
    %112 = arith.addf %109, %111 : vector<64x4xf32>
    %cst_116 = arith.constant 5.000000e-01 : f32
    %113 = vector.broadcast %cst_116 : f32 to vector<64x4xf32>
    %114 = arith.mulf %113, %112 : vector<64x4xf32>
    %cst_117 = arith.constant 4.471500e-02 : f32
    %115 = vector.broadcast %cst_117 : f32 to vector<64x4xf32>
    %116 = arith.mulf %115, %112 : vector<64x4xf32>
    %117 = arith.mulf %116, %112 : vector<64x4xf32>
    %118 = arith.mulf %117, %112 : vector<64x4xf32>
    %119 = arith.addf %112, %118 : vector<64x4xf32>
    %cst_118 = arith.constant 0.797884583 : f32
    %120 = vector.broadcast %cst_118 : f32 to vector<64x4xf32>
    %121 = arith.mulf %120, %119 : vector<64x4xf32>
    %122 = math.tanh %121 : vector<64x4xf32>
    %cst_119 = arith.constant 1.000000e+00 : f32
    %123 = vector.broadcast %cst_119 : f32 to vector<64x4xf32>
    %124 = arith.addf %123, %122 : vector<64x4xf32>
    %125 = arith.mulf %114, %124 : vector<64x4xf32>
    %126 = vector.shape_cast %125 : vector<64x4xf32> to vector<8x8x4xf32>
    %c1_120 = arith.constant 1 : index
    %c8_121 = arith.constant 8 : index
    %c0_122 = arith.constant 0 : index
    %127 = vector.load %arg16[%c1_120, %c8_121, %c0_122] : memref<10x17x4xf32, #tpu.memory_space<vmem>>, vector<8x8x4xf32>
    tpu.vector_store %arg16[%c1_120, %c8_121, %c0_122], %126 {strides = array<i32>} : memref<10x17x4xf32, #tpu.memory_space<vmem>>, vector<8x8x4xf32>,
    %cst_123 = arith.constant 0.000000e+00 : f32
    %128 = vector.broadcast %cst_123 : f32 to vector<64x4xf32>
    %c0_124 = arith.constant 0 : index
    %c7_125 = arith.constant 7 : index
    %c0_126 = arith.constant 0 : index
    %129 = vector.load %arg16[%c0_124, %c7_125, %c0_126] : memref<10x17x4xf32, #tpu.memory_space<vmem>>, vector<8x8x4xf32>
    %130 = vector.shape_cast %129 : vector<8x8x4xf32> to vector<64x4xf32>
    %131 = arith.truncf %130 : vector<64x4xf32> to vector<64x4xbf16>
    %c0_127 = arith.constant 0 : index
    %c0_128 = arith.constant 0 : index
    %c0_129 = arith.constant 0 : index
    %c0_130 = arith.constant 0 : index
    %132 = vector.load %arg6[%c0_127, %c0_128, %c0_129, %c0_130] : memref<3x3x4x4xbf16, #tpu.memory_space<vmem>>, vector<1x1x4x4xbf16>
    %133 = vector.shape_cast %132 : vector<1x1x4x4xbf16> to vector<4x4xbf16>
    %cst_131 = arith.constant dense<0.000000e+00> : vector<64x4xf32>
    %134 = tpu.matmul %131, %133, %cst_131 {dimension_numbers = #tpu.dot_dimension_numbers<[1], [0], [0], [1], [0, 0, 1, 1], [], []>} : vector<64x4xbf16>, vector<4x4xbf16>, vector<64x4xf32> -> vector<64x4xf32>
    %135 = arith.addf %128, %134 : vector<64x4xf32>
    %c0_132 = arith.constant 0 : index
    %c8_133 = arith.constant 8 : index
    %c0_134 = arith.constant 0 : index
    %136 = vector.load %arg16[%c0_132, %c8_133, %c0_134] : memref<10x17x4xf32, #tpu.memory_space<vmem>>, vector<8x8x4xf32>
    %137 = vector.shape_cast %136 : vector<8x8x4xf32> to vector<64x4xf32>
    %138 = arith.truncf %137 : vector<64x4xf32> to vector<64x4xbf16>
    %c0_135 = arith.constant 0 : index
    %c1_136 = arith.constant 1 : index
    %c0_137 = arith.constant 0 : index
    %c0_138 = arith.constant 0 : index
    %139 = vector.load %arg6[%c0_135, %c1_136, %c0_137, %c0_138] : memref<3x3x4x4xbf16, #tpu.memory_space<vmem>>, vector<1x1x4x4xbf16>
    %140 = vector.shape_cast %139 : vector<1x1x4x4xbf16> to vector<4x4xbf16>
    %cst_139 = arith.constant dense<0.000000e+00> : vector<64x4xf32>
    %141 = tpu.matmul %138, %140, %cst_139 {dimension_numbers = #tpu.dot_dimension_numbers<[1], [0], [0], [1], [0, 0, 1, 1], [], []>} : vector<64x4xbf16>, vector<4x4xbf16>, vector<64x4xf32> -> vector<64x4xf32>
    %142 = arith.addf %135, %141 : vector<64x4xf32>
    %c0_140 = arith.constant 0 : index
    %c9_141 = arith.constant 9 : index
    %c0_142 = arith.constant 0 : index
    %143 = vector.load %arg16[%c0_140, %c9_141, %c0_142] : memref<10x17x4xf32, #tpu.memory_space<vmem>>, vector<8x8x4xf32>
    %144 = vector.shape_cast %143 : vector<8x8x4xf32> to vector<64x4xf32>
    %145 = arith.truncf %144 : vector<64x4xf32> to vector<64x4xbf16>
    %c0_143 = arith.constant 0 : index
    %c2_144 = arith.constant 2 : index
    %c0_145 = arith.constant 0 : index
    %c0_146 = arith.constant 0 : index
    %146 = vector.load %arg6[%c0_143, %c2_144, %c0_145, %c0_146] : memref<3x3x4x4xbf16, #tpu.memory_space<vmem>>, vector<1x1x4x4xbf16>
    %147 = vector.shape_cast %146 : vector<1x1x4x4xbf16> to vector<4x4xbf16>
    %cst_147 = arith.constant dense<0.000000e+00> : vector<64x4xf32>
    %148 = tpu.matmul %145, %147, %cst_147 {dimension_numbers = #tpu.dot_dimension_numbers<[1], [0], [0], [1], [0, 0, 1, 1], [], []>} : vector<64x4xbf16>, vector<4x4xbf16>, vector<64x4xf32> -> vector<64x4xf32>
    %149 = arith.addf %142, %148 : vector<64x4xf32>
    %c1_148 = arith.constant 1 : index
    %c7_149 = arith.constant 7 : index
    %c0_150 = arith.constant 0 : index
    %150 = vector.load %arg16[%c1_148, %c7_149, %c0_150] : memref<10x17x4xf32, #tpu.memory_space<vmem>>, vector<8x8x4xf32>
    %151 = vector.shape_cast %150 : vector<8x8x4xf32> to vector<64x4xf32>
    %152 = arith.truncf %151 : vector<64x4xf32> to vector<64x4xbf16>
    %c1_151 = arith.constant 1 : index
    %c0_152 = arith.constant 0 : index
    %c0_153 = arith.constant 0 : index
    %c0_154 = arith.constant 0 : index
    %153 = vector.load %arg6[%c1_151, %c0_152, %c0_153, %c0_154] : memref<3x3x4x4xbf16, #tpu.memory_space<vmem>>, vector<1x1x4x4xbf16>
    %154 = vector.shape_cast %153 : vector<1x1x4x4xbf16> to vector<4x4xbf16>
    %cst_155 = arith.constant dense<0.000000e+00> : vector<64x4xf32>
    %155 = tpu.matmul %152, %154, %cst_155 {dimension_numbers = #tpu.dot_dimension_numbers<[1], [0], [0], [1], [0, 0, 1, 1], [], []>} : vector<64x4xbf16>, vector<4x4xbf16>, vector<64x4xf32> -> vector<64x4xf32>
    %156 = arith.addf %149, %155 : vector<64x4xf32>
    %c1_156 = arith.constant 1 : index
    %c8_157 = arith.constant 8 : index
    %c0_158 = arith.constant 0 : index
    %157 = vector.load %arg16[%c1_156, %c8_157, %c0_158] : memref<10x17x4xf32, #tpu.memory_space<vmem>>, vector<8x8x4xf32>
    %158 = vector.shape_cast %157 : vector<8x8x4xf32> to vector<64x4xf32>
    %159 = arith.truncf %158 : vector<64x4xf32> to vector<64x4xbf16>
    %c1_159 = arith.constant 1 : index
    %c1_160 = arith.constant 1 : index
    %c0_161 = arith.constant 0 : index
    %c0_162 = arith.constant 0 : index
    %160 = vector.load %arg6[%c1_159, %c1_160, %c0_161, %c0_162] : memref<3x3x4x4xbf16, #tpu.memory_space<vmem>>, vector<1x1x4x4xbf16>
    %161 = vector.shape_cast %160 : vector<1x1x4x4xbf16> to vector<4x4xbf16>
    %cst_163 = arith.constant dense<0.000000e+00> : vector<64x4xf32>
    %162 = tpu.matmul %159, %161, %cst_163 {dimension_numbers = #tpu.dot_dimension_numbers<[1], [0], [0], [1], [0, 0, 1, 1], [], []>} : vector<64x4xbf16>, vector<4x4xbf16>, vector<64x4xf32> -> vector<64x4xf32>
    %163 = arith.addf %156, %162 : vector<64x4xf32>
    %c1_164 = arith.constant 1 : index
    %c9_165 = arith.constant 9 : index
    %c0_166 = arith.constant 0 : index
    %164 = vector.load %arg16[%c1_164, %c9_165, %c0_166] : memref<10x17x4xf32, #tpu.memory_space<vmem>>, vector<8x8x4xf32>
    %165 = vector.shape_cast %164 : vector<8x8x4xf32> to vector<64x4xf32>
    %166 = arith.truncf %165 : vector<64x4xf32> to vector<64x4xbf16>
    %c1_167 = arith.constant 1 : index
    %c2_168 = arith.constant 2 : index
    %c0_169 = arith.constant 0 : index
    %c0_170 = arith.constant 0 : index
    %167 = vector.load %arg6[%c1_167, %c2_168, %c0_169, %c0_170] : memref<3x3x4x4xbf16, #tpu.memory_space<vmem>>, vector<1x1x4x4xbf16>
    %168 = vector.shape_cast %167 : vector<1x1x4x4xbf16> to vector<4x4xbf16>
    %cst_171 = arith.constant dense<0.000000e+00> : vector<64x4xf32>
    %169 = tpu.matmul %166, %168, %cst_171 {dimension_numbers = #tpu.dot_dimension_numbers<[1], [0], [0], [1], [0, 0, 1, 1], [], []>} : vector<64x4xbf16>, vector<4x4xbf16>, vector<64x4xf32> -> vector<64x4xf32>
    %170 = arith.addf %163, %169 : vector<64x4xf32>
    %c2_172 = arith.constant 2 : index
    %c7_173 = arith.constant 7 : index
    %c0_174 = arith.constant 0 : index
    %171 = vector.load %arg16[%c2_172, %c7_173, %c0_174] : memref<10x17x4xf32, #tpu.memory_space<vmem>>, vector<8x8x4xf32>
    %172 = vector.shape_cast %171 : vector<8x8x4xf32> to vector<64x4xf32>
    %173 = arith.truncf %172 : vector<64x4xf32> to vector<64x4xbf16>
    %c2_175 = arith.constant 2 : index
    %c0_176 = arith.constant 0 : index
    %c0_177 = arith.constant 0 : index
    %c0_178 = arith.constant 0 : index
    %174 = vector.load %arg6[%c2_175, %c0_176, %c0_177, %c0_178] : memref<3x3x4x4xbf16, #tpu.memory_space<vmem>>, vector<1x1x4x4xbf16>
    %175 = vector.shape_cast %174 : vector<1x1x4x4xbf16> to vector<4x4xbf16>
    %cst_179 = arith.constant dense<0.000000e+00> : vector<64x4xf32>
    %176 = tpu.matmul %173, %175, %cst_179 {dimension_numbers = #tpu.dot_dimension_numbers<[1], [0], [0], [1], [0, 0, 1, 1], [], []>} : vector<64x4xbf16>, vector<4x4xbf16>, vector<64x4xf32> -> vector<64x4xf32>
    %177 = arith.addf %170, %176 : vector<64x4xf32>
    %c2_180 = arith.constant 2 : index
    %c8_181 = arith.constant 8 : index
    %c0_182 = arith.constant 0 : index
    %178 = vector.load %arg16[%c2_180, %c8_181, %c0_182] : memref<10x17x4xf32, #tpu.memory_space<vmem>>, vector<8x8x4xf32>
    %179 = vector.shape_cast %178 : vector<8x8x4xf32> to vector<64x4xf32>
    %180 = arith.truncf %179 : vector<64x4xf32> to vector<64x4xbf16>
    %c2_183 = arith.constant 2 : index
    %c1_184 = arith.constant 1 : index
    %c0_185 = arith.constant 0 : index
    %c0_186 = arith.constant 0 : index
    %181 = vector.load %arg6[%c2_183, %c1_184, %c0_185, %c0_186] : memref<3x3x4x4xbf16, #tpu.memory_space<vmem>>, vector<1x1x4x4xbf16>
    %182 = vector.shape_cast %181 : vector<1x1x4x4xbf16> to vector<4x4xbf16>
    %cst_187 = arith.constant dense<0.000000e+00> : vector<64x4xf32>
    %183 = tpu.matmul %180, %182, %cst_187 {dimension_numbers = #tpu.dot_dimension_numbers<[1], [0], [0], [1], [0, 0, 1, 1], [], []>} : vector<64x4xbf16>, vector<4x4xbf16>, vector<64x4xf32> -> vector<64x4xf32>
    %184 = arith.addf %177, %183 : vector<64x4xf32>
    %c2_188 = arith.constant 2 : index
    %c9_189 = arith.constant 9 : index
    %c0_190 = arith.constant 0 : index
    %185 = vector.load %arg16[%c2_188, %c9_189, %c0_190] : memref<10x17x4xf32, #tpu.memory_space<vmem>>, vector<8x8x4xf32>
    %186 = vector.shape_cast %185 : vector<8x8x4xf32> to vector<64x4xf32>
    %187 = arith.truncf %186 : vector<64x4xf32> to vector<64x4xbf16>
    %c2_191 = arith.constant 2 : index
    %c2_192 = arith.constant 2 : index
    %c0_193 = arith.constant 0 : index
    %c0_194 = arith.constant 0 : index
    %188 = vector.load %arg6[%c2_191, %c2_192, %c0_193, %c0_194] : memref<3x3x4x4xbf16, #tpu.memory_space<vmem>>, vector<1x1x4x4xbf16>
    %189 = vector.shape_cast %188 : vector<1x1x4x4xbf16> to vector<4x4xbf16>
    %cst_195 = arith.constant dense<0.000000e+00> : vector<64x4xf32>
    %190 = tpu.matmul %187, %189, %cst_195 {dimension_numbers = #tpu.dot_dimension_numbers<[1], [0], [0], [1], [0, 0, 1, 1], [], []>} : vector<64x4xbf16>, vector<4x4xbf16>, vector<64x4xf32> -> vector<64x4xf32>
    %191 = arith.addf %184, %190 : vector<64x4xf32>
    %192 = vector.shape_cast %191 : vector<64x4xf32> to vector<1x64x4xf32>
    %cst_196 = arith.constant dense<0.000000e+00> : vector<1xf32>
    %193 = vector.multi_reduction <add>, %192, %cst_196 [1, 2] : vector<1x64x4xf32> to vector<1xf32>
    %194 = vector.shape_cast %193 : vector<1xf32> to vector<1x1x1xf32>
    %195 = vector.extract %194[0, 0, 0] : f32 from vector<1x1x1xf32>
    %cst_197 = arith.constant 2.560000e+02 : f32
    %196 = arith.divf %195, %cst_197 : f32
    %197 = arith.mulf %191, %191 : vector<64x4xf32>
    %198 = vector.shape_cast %197 : vector<64x4xf32> to vector<1x64x4xf32>
    %cst_198 = arith.constant dense<0.000000e+00> : vector<1xf32>
    %199 = vector.multi_reduction <add>, %198, %cst_198 [1, 2] : vector<1x64x4xf32> to vector<1xf32>
    %200 = vector.shape_cast %199 : vector<1xf32> to vector<1x1x1xf32>
    %201 = vector.extract %200[0, 0, 0] : f32 from vector<1x1x1xf32>
    %cst_199 = arith.constant 2.560000e+02 : f32
    %202 = arith.divf %201, %cst_199 : f32
    %203 = arith.mulf %196, %196 : f32
    %204 = arith.subf %202, %203 : f32
    %cst_200 = arith.constant 0.000000e+00 : f32
    %205 = arith.maximumf %204, %cst_200 : f32
    %206 = vector.broadcast %196 : f32 to vector<64x4xf32>
    %207 = arith.subf %191, %206 : vector<64x4xf32>
    %cst_201 = arith.constant 9.99999974E-6 : f32
    %208 = arith.addf %205, %cst_201 : f32
    %209 = math.rsqrt %208 : f32
    %210 = vector.broadcast %209 : f32 to vector<64x4xf32>
    %211 = arith.mulf %207, %210 : vector<64x4xf32>
    %c0_202 = arith.constant 0 : index
    %c0_203 = arith.constant 0 : index
    %212 = vector.load %arg7[%c0_202, %c0_203] : memref<1x4xf32, #tpu.memory_space<vmem>>, vector<1x4xf32>
    %213 = vector.broadcast %212 : vector<1x4xf32> to vector<64x4xf32>
    %214 = arith.mulf %211, %213 : vector<64x4xf32>
    %c0_204 = arith.constant 0 : index
    %c0_205 = arith.constant 0 : index
    %215 = vector.load %arg8[%c0_204, %c0_205] : memref<1x4xf32, #tpu.memory_space<vmem>>, vector<1x4xf32>
    %216 = vector.broadcast %215 : vector<1x4xf32> to vector<64x4xf32>
    %217 = arith.addf %214, %216 : vector<64x4xf32>
    %218 = arith.addf %20, %217 : vector<64x4xf32>
    %cst_206 = arith.constant 5.000000e-01 : f32
    %219 = vector.broadcast %cst_206 : f32 to vector<64x4xf32>
    %220 = arith.mulf %219, %218 : vector<64x4xf32>
    %cst_207 = arith.constant 4.471500e-02 : f32
    %221 = vector.broadcast %cst_207 : f32 to vector<64x4xf32>
    %222 = arith.mulf %221, %218 : vector<64x4xf32>
    %223 = arith.mulf %222, %218 : vector<64x4xf32>
    %224 = arith.mulf %223, %218 : vector<64x4xf32>
    %225 = arith.addf %218, %224 : vector<64x4xf32>
    %cst_208 = arith.constant 0.797884583 : f32
    %226 = vector.broadcast %cst_208 : f32 to vector<64x4xf32>
    %227 = arith.mulf %226, %225 : vector<64x4xf32>
    %228 = math.tanh %227 : vector<64x4xf32>
    %cst_209 = arith.constant 1.000000e+00 : f32
    %229 = vector.broadcast %cst_209 : f32 to vector<64x4xf32>
    %230 = arith.addf %229, %228 : vector<64x4xf32>
    %231 = arith.mulf %220, %230 : vector<64x4xf32>
    %232 = vector.shape_cast %231 : vector<64x4xf32> to vector<8x8x4xf32>
    %c1_210 = arith.constant 1 : index
    %c8_211 = arith.constant 8 : index
    %c0_212 = arith.constant 0 : index
    %233 = vector.load %arg16[%c1_210, %c8_211, %c0_212] : memref<10x17x4xf32, #tpu.memory_space<vmem>>, vector<8x8x4xf32>
    tpu.vector_store %arg16[%c1_210, %c8_211, %c0_212], %232 {strides = array<i32>} : memref<10x17x4xf32, #tpu.memory_space<vmem>>, vector<8x8x4xf32>,
    %cst_213 = arith.constant 0.000000e+00 : f32
    %234 = vector.broadcast %cst_213 : f32 to vector<64x8xf32>
    %c0_214 = arith.constant 0 : index
    %c7_215 = arith.constant 7 : index
    %c0_216 = arith.constant 0 : index
    %235 = vector.load %arg16[%c0_214, %c7_215, %c0_216] : memref<10x17x4xf32, #tpu.memory_space<vmem>>, vector<8x8x4xf32>
    %236 = vector.shape_cast %235 : vector<8x8x4xf32> to vector<64x4xf32>
    %237 = arith.truncf %236 : vector<64x4xf32> to vector<64x4xbf16>
    %c0_217 = arith.constant 0 : index
    %c0_218 = arith.constant 0 : index
    %c0_219 = arith.constant 0 : index
    %c0_220 = arith.constant 0 : index
    %238 = vector.load %arg9[%c0_217, %c0_218, %c0_219, %c0_220] : memref<3x3x4x8xbf16, #tpu.memory_space<vmem>>, vector<1x1x4x8xbf16>
    %239 = vector.shape_cast %238 : vector<1x1x4x8xbf16> to vector<4x8xbf16>
    %cst_221 = arith.constant dense<0.000000e+00> : vector<64x8xf32>
    %240 = tpu.matmul %237, %239, %cst_221 {dimension_numbers = #tpu.dot_dimension_numbers<[1], [0], [0], [1], [0, 0, 1, 1], [], []>} : vector<64x4xbf16>, vector<4x8xbf16>, vector<64x8xf32> -> vector<64x8xf32>
    %241 = arith.addf %234, %240 : vector<64x8xf32>
    %c0_222 = arith.constant 0 : index
    %c8_223 = arith.constant 8 : index
    %c0_224 = arith.constant 0 : index
    %242 = vector.load %arg16[%c0_222, %c8_223, %c0_224] : memref<10x17x4xf32, #tpu.memory_space<vmem>>, vector<8x8x4xf32>
    %243 = vector.shape_cast %242 : vector<8x8x4xf32> to vector<64x4xf32>
    %244 = arith.truncf %243 : vector<64x4xf32> to vector<64x4xbf16>
    %c0_225 = arith.constant 0 : index
    %c1_226 = arith.constant 1 : index
    %c0_227 = arith.constant 0 : index
    %c0_228 = arith.constant 0 : index
    %245 = vector.load %arg9[%c0_225, %c1_226, %c0_227, %c0_228] : memref<3x3x4x8xbf16, #tpu.memory_space<vmem>>, vector<1x1x4x8xbf16>
    %246 = vector.shape_cast %245 : vector<1x1x4x8xbf16> to vector<4x8xbf16>
    %cst_229 = arith.constant dense<0.000000e+00> : vector<64x8xf32>
    %247 = tpu.matmul %244, %246, %cst_229 {dimension_numbers = #tpu.dot_dimension_numbers<[1], [0], [0], [1], [0, 0, 1, 1], [], []>} : vector<64x4xbf16>, vector<4x8xbf16>, vector<64x8xf32> -> vector<64x8xf32>
    %248 = arith.addf %241, %247 : vector<64x8xf32>
    %c0_230 = arith.constant 0 : index
    %c9_231 = arith.constant 9 : index
    %c0_232 = arith.constant 0 : index
    %249 = vector.load %arg16[%c0_230, %c9_231, %c0_232] : memref<10x17x4xf32, #tpu.memory_space<vmem>>, vector<8x8x4xf32>
    %250 = vector.shape_cast %249 : vector<8x8x4xf32> to vector<64x4xf32>
    %251 = arith.truncf %250 : vector<64x4xf32> to vector<64x4xbf16>
    %c0_233 = arith.constant 0 : index
    %c2_234 = arith.constant 2 : index
    %c0_235 = arith.constant 0 : index
    %c0_236 = arith.constant 0 : index
    %252 = vector.load %arg9[%c0_233, %c2_234, %c0_235, %c0_236] : memref<3x3x4x8xbf16, #tpu.memory_space<vmem>>, vector<1x1x4x8xbf16>
    %253 = vector.shape_cast %252 : vector<1x1x4x8xbf16> to vector<4x8xbf16>
    %cst_237 = arith.constant dense<0.000000e+00> : vector<64x8xf32>
    %254 = tpu.matmul %251, %253, %cst_237 {dimension_numbers = #tpu.dot_dimension_numbers<[1], [0], [0], [1], [0, 0, 1, 1], [], []>} : vector<64x4xbf16>, vector<4x8xbf16>, vector<64x8xf32> -> vector<64x8xf32>
    %255 = arith.addf %248, %254 : vector<64x8xf32>
    %c1_238 = arith.constant 1 : index
    %c7_239 = arith.constant 7 : index
    %c0_240 = arith.constant 0 : index
    %256 = vector.load %arg16[%c1_238, %c7_239, %c0_240] : memref<10x17x4xf32, #tpu.memory_space<vmem>>, vector<8x8x4xf32>
    %257 = vector.shape_cast %256 : vector<8x8x4xf32> to vector<64x4xf32>
    %258 = arith.truncf %257 : vector<64x4xf32> to vector<64x4xbf16>
    %c1_241 = arith.constant 1 : index
    %c0_242 = arith.constant 0 : index
    %c0_243 = arith.constant 0 : index
    %c0_244 = arith.constant 0 : index
    %259 = vector.load %arg9[%c1_241, %c0_242, %c0_243, %c0_244] : memref<3x3x4x8xbf16, #tpu.memory_space<vmem>>, vector<1x1x4x8xbf16>
    %260 = vector.shape_cast %259 : vector<1x1x4x8xbf16> to vector<4x8xbf16>
    %cst_245 = arith.constant dense<0.000000e+00> : vector<64x8xf32>
    %261 = tpu.matmul %258, %260, %cst_245 {dimension_numbers = #tpu.dot_dimension_numbers<[1], [0], [0], [1], [0, 0, 1, 1], [], []>} : vector<64x4xbf16>, vector<4x8xbf16>, vector<64x8xf32> -> vector<64x8xf32>
    %262 = arith.addf %255, %261 : vector<64x8xf32>
    %c1_246 = arith.constant 1 : index
    %c8_247 = arith.constant 8 : index
    %c0_248 = arith.constant 0 : index
    %263 = vector.load %arg16[%c1_246, %c8_247, %c0_248] : memref<10x17x4xf32, #tpu.memory_space<vmem>>, vector<8x8x4xf32>
    %264 = vector.shape_cast %263 : vector<8x8x4xf32> to vector<64x4xf32>
    %265 = arith.truncf %264 : vector<64x4xf32> to vector<64x4xbf16>
    %c1_249 = arith.constant 1 : index
    %c1_250 = arith.constant 1 : index
    %c0_251 = arith.constant 0 : index
    %c0_252 = arith.constant 0 : index
    %266 = vector.load %arg9[%c1_249, %c1_250, %c0_251, %c0_252] : memref<3x3x4x8xbf16, #tpu.memory_space<vmem>>, vector<1x1x4x8xbf16>
    %267 = vector.shape_cast %266 : vector<1x1x4x8xbf16> to vector<4x8xbf16>
    %cst_253 = arith.constant dense<0.000000e+00> : vector<64x8xf32>
    %268 = tpu.matmul %265, %267, %cst_253 {dimension_numbers = #tpu.dot_dimension_numbers<[1], [0], [0], [1], [0, 0, 1, 1], [], []>} : vector<64x4xbf16>, vector<4x8xbf16>, vector<64x8xf32> -> vector<64x8xf32>
    %269 = arith.addf %262, %268 : vector<64x8xf32>
    %c1_254 = arith.constant 1 : index
    %c9_255 = arith.constant 9 : index
    %c0_256 = arith.constant 0 : index
    %270 = vector.load %arg16[%c1_254, %c9_255, %c0_256] : memref<10x17x4xf32, #tpu.memory_space<vmem>>, vector<8x8x4xf32>
    %271 = vector.shape_cast %270 : vector<8x8x4xf32> to vector<64x4xf32>
    %272 = arith.truncf %271 : vector<64x4xf32> to vector<64x4xbf16>
    %c1_257 = arith.constant 1 : index
    %c2_258 = arith.constant 2 : index
    %c0_259 = arith.constant 0 : index
    %c0_260 = arith.constant 0 : index
    %273 = vector.load %arg9[%c1_257, %c2_258, %c0_259, %c0_260] : memref<3x3x4x8xbf16, #tpu.memory_space<vmem>>, vector<1x1x4x8xbf16>
    %274 = vector.shape_cast %273 : vector<1x1x4x8xbf16> to vector<4x8xbf16>
    %cst_261 = arith.constant dense<0.000000e+00> : vector<64x8xf32>
    %275 = tpu.matmul %272, %274, %cst_261 {dimension_numbers = #tpu.dot_dimension_numbers<[1], [0], [0], [1], [0, 0, 1, 1], [], []>} : vector<64x4xbf16>, vector<4x8xbf16>, vector<64x8xf32> -> vector<64x8xf32>
    %276 = arith.addf %269, %275 : vector<64x8xf32>
    %c2_262 = arith.constant 2 : index
    %c7_263 = arith.constant 7 : index
    %c0_264 = arith.constant 0 : index
    %277 = vector.load %arg16[%c2_262, %c7_263, %c0_264] : memref<10x17x4xf32, #tpu.memory_space<vmem>>, vector<8x8x4xf32>
    %278 = vector.shape_cast %277 : vector<8x8x4xf32> to vector<64x4xf32>
    %279 = arith.truncf %278 : vector<64x4xf32> to vector<64x4xbf16>
    %c2_265 = arith.constant 2 : index
    %c0_266 = arith.constant 0 : index
    %c0_267 = arith.constant 0 : index
    %c0_268 = arith.constant 0 : index
    %280 = vector.load %arg9[%c2_265, %c0_266, %c0_267, %c0_268] : memref<3x3x4x8xbf16, #tpu.memory_space<vmem>>, vector<1x1x4x8xbf16>
    %281 = vector.shape_cast %280 : vector<1x1x4x8xbf16> to vector<4x8xbf16>
    %cst_269 = arith.constant dense<0.000000e+00> : vector<64x8xf32>
    %282 = tpu.matmul %279, %281, %cst_269 {dimension_numbers = #tpu.dot_dimension_numbers<[1], [0], [0], [1], [0, 0, 1, 1], [], []>} : vector<64x4xbf16>, vector<4x8xbf16>, vector<64x8xf32> -> vector<64x8xf32>
    %283 = arith.addf %276, %282 : vector<64x8xf32>
    %c2_270 = arith.constant 2 : index
    %c8_271 = arith.constant 8 : index
    %c0_272 = arith.constant 0 : index
    %284 = vector.load %arg16[%c2_270, %c8_271, %c0_272] : memref<10x17x4xf32, #tpu.memory_space<vmem>>, vector<8x8x4xf32>
    %285 = vector.shape_cast %284 : vector<8x8x4xf32> to vector<64x4xf32>
    %286 = arith.truncf %285 : vector<64x4xf32> to vector<64x4xbf16>
    %c2_273 = arith.constant 2 : index
    %c1_274 = arith.constant 1 : index
    %c0_275 = arith.constant 0 : index
    %c0_276 = arith.constant 0 : index
    %287 = vector.load %arg9[%c2_273, %c1_274, %c0_275, %c0_276] : memref<3x3x4x8xbf16, #tpu.memory_space<vmem>>, vector<1x1x4x8xbf16>
    %288 = vector.shape_cast %287 : vector<1x1x4x8xbf16> to vector<4x8xbf16>
    %cst_277 = arith.constant dense<0.000000e+00> : vector<64x8xf32>
    %289 = tpu.matmul %286, %288, %cst_277 {dimension_numbers = #tpu.dot_dimension_numbers<[1], [0], [0], [1], [0, 0, 1, 1], [], []>} : vector<64x4xbf16>, vector<4x8xbf16>, vector<64x8xf32> -> vector<64x8xf32>
    %290 = arith.addf %283, %289 : vector<64x8xf32>
    %c2_278 = arith.constant 2 : index
    %c9_279 = arith.constant 9 : index
    %c0_280 = arith.constant 0 : index
    %291 = vector.load %arg16[%c2_278, %c9_279, %c0_280] : memref<10x17x4xf32, #tpu.memory_space<vmem>>, vector<8x8x4xf32>
    %292 = vector.shape_cast %291 : vector<8x8x4xf32> to vector<64x4xf32>
    %293 = arith.truncf %292 : vector<64x4xf32> to vector<64x4xbf16>
    %c2_281 = arith.constant 2 : index
    %c2_282 = arith.constant 2 : index
    %c0_283 = arith.constant 0 : index
    %c0_284 = arith.constant 0 : index
    %294 = vector.load %arg9[%c2_281, %c2_282, %c0_283, %c0_284] : memref<3x3x4x8xbf16, #tpu.memory_space<vmem>>, vector<1x1x4x8xbf16>
    %295 = vector.shape_cast %294 : vector<1x1x4x8xbf16> to vector<4x8xbf16>
    %cst_285 = arith.constant dense<0.000000e+00> : vector<64x8xf32>
    %296 = tpu.matmul %293, %295, %cst_285 {dimension_numbers = #tpu.dot_dimension_numbers<[1], [0], [0], [1], [0, 0, 1, 1], [], []>} : vector<64x4xbf16>, vector<4x8xbf16>, vector<64x8xf32> -> vector<64x8xf32>
    %297 = arith.addf %290, %296 : vector<64x8xf32>
    %298 = vector.shape_cast %297 : vector<64x8xf32> to vector<1x64x8xf32>
    %cst_286 = arith.constant dense<0.000000e+00> : vector<1xf32>
    %299 = vector.multi_reduction <add>, %298, %cst_286 [1, 2] : vector<1x64x8xf32> to vector<1xf32>
    %300 = vector.shape_cast %299 : vector<1xf32> to vector<1x1x1xf32>
    %301 = vector.extract %300[0, 0, 0] : f32 from vector<1x1x1xf32>
    %cst_287 = arith.constant 5.120000e+02 : f32
    %302 = arith.divf %301, %cst_287 : f32
    %303 = arith.mulf %297, %297 : vector<64x8xf32>
    %304 = vector.shape_cast %303 : vector<64x8xf32> to vector<1x64x8xf32>
    %cst_288 = arith.constant dense<0.000000e+00> : vector<1xf32>
    %305 = vector.multi_reduction <add>, %304, %cst_288 [1, 2] : vector<1x64x8xf32> to vector<1xf32>
    %306 = vector.shape_cast %305 : vector<1xf32> to vector<1x1x1xf32>
    %307 = vector.extract %306[0, 0, 0] : f32 from vector<1x1x1xf32>
    %cst_289 = arith.constant 5.120000e+02 : f32
    %308 = arith.divf %307, %cst_289 : f32
    %309 = arith.mulf %302, %302 : f32
    %310 = arith.subf %308, %309 : f32
    %cst_290 = arith.constant 0.000000e+00 : f32
    %311 = arith.maximumf %310, %cst_290 : f32
    %312 = vector.broadcast %302 : f32 to vector<64x8xf32>
    %313 = arith.subf %297, %312 : vector<64x8xf32>
    %cst_291 = arith.constant 9.99999974E-6 : f32
    %314 = arith.addf %311, %cst_291 : f32
    %315 = math.rsqrt %314 : f32
    %316 = vector.broadcast %315 : f32 to vector<64x8xf32>
    %317 = arith.mulf %313, %316 : vector<64x8xf32>
    %c0_292 = arith.constant 0 : index
    %c0_293 = arith.constant 0 : index
    %318 = vector.load %arg10[%c0_292, %c0_293] : memref<1x8xf32, #tpu.memory_space<vmem>>, vector<1x8xf32>
    %319 = vector.broadcast %318 : vector<1x8xf32> to vector<64x8xf32>
    %320 = arith.mulf %317, %319 : vector<64x8xf32>
    %c0_294 = arith.constant 0 : index
    %c0_295 = arith.constant 0 : index
    %321 = vector.load %arg11[%c0_294, %c0_295] : memref<1x8xf32, #tpu.memory_space<vmem>>, vector<1x8xf32>
    %322 = vector.broadcast %321 : vector<1x8xf32> to vector<64x8xf32>
    %323 = arith.addf %320, %322 : vector<64x8xf32>
    %cst_296 = arith.constant 5.000000e-01 : f32
    %324 = vector.broadcast %cst_296 : f32 to vector<64x8xf32>
    %325 = arith.mulf %324, %323 : vector<64x8xf32>
    %cst_297 = arith.constant 4.471500e-02 : f32
    %326 = vector.broadcast %cst_297 : f32 to vector<64x8xf32>
    %327 = arith.mulf %326, %323 : vector<64x8xf32>
    %328 = arith.mulf %327, %323 : vector<64x8xf32>
    %329 = arith.mulf %328, %323 : vector<64x8xf32>
    %330 = arith.addf %323, %329 : vector<64x8xf32>
    %cst_298 = arith.constant 0.797884583 : f32
    %331 = vector.broadcast %cst_298 : f32 to vector<64x8xf32>
    %332 = arith.mulf %331, %330 : vector<64x8xf32>
    %333 = math.tanh %332 : vector<64x8xf32>
    %cst_299 = arith.constant 1.000000e+00 : f32
    %334 = vector.broadcast %cst_299 : f32 to vector<64x8xf32>
    %335 = arith.addf %334, %333 : vector<64x8xf32>
    %336 = arith.mulf %325, %335 : vector<64x8xf32>
    %337 = vector.shape_cast %336 : vector<64x8xf32> to vector<8x8x8xf32>
    %c1_300 = arith.constant 1 : index
    %c8_301 = arith.constant 8 : index
    %c0_302 = arith.constant 0 : index
    %338 = vector.load %arg17[%c1_300, %c8_301, %c0_302] : memref<10x17x8xf32, #tpu.memory_space<vmem>>, vector<8x8x8xf32>
    tpu.vector_store %arg17[%c1_300, %c8_301, %c0_302], %337 {strides = array<i32>} : memref<10x17x8xf32, #tpu.memory_space<vmem>>, vector<8x8x8xf32>,
    %cst_303 = arith.constant 0.000000e+00 : f32
    %339 = vector.broadcast %cst_303 : f32 to vector<64x8xf32>
    %c0_304 = arith.constant 0 : index
    %c7_305 = arith.constant 7 : index
    %c0_306 = arith.constant 0 : index
    %340 = vector.load %arg17[%c0_304, %c7_305, %c0_306] : memref<10x17x8xf32, #tpu.memory_space<vmem>>, vector<8x8x8xf32>
    %341 = vector.shape_cast %340 : vector<8x8x8xf32> to vector<64x8xf32>
    %342 = arith.truncf %341 : vector<64x8xf32> to vector<64x8xbf16>
    %c0_307 = arith.constant 0 : index
    %c0_308 = arith.constant 0 : index
    %c0_309 = arith.constant 0 : index
    %c0_310 = arith.constant 0 : index
    %343 = vector.load %arg12[%c0_307, %c0_308, %c0_309, %c0_310] : memref<3x3x8x8xbf16, #tpu.memory_space<vmem>>, vector<1x1x8x8xbf16>
    %344 = vector.shape_cast %343 : vector<1x1x8x8xbf16> to vector<8x8xbf16>
    %cst_311 = arith.constant dense<0.000000e+00> : vector<64x8xf32>
    %345 = tpu.matmul %342, %344, %cst_311 {dimension_numbers = #tpu.dot_dimension_numbers<[1], [0], [0], [1], [0, 0, 1, 1], [], []>} : vector<64x8xbf16>, vector<8x8xbf16>, vector<64x8xf32> -> vector<64x8xf32>
    %346 = arith.addf %339, %345 : vector<64x8xf32>
    %c0_312 = arith.constant 0 : index
    %c8_313 = arith.constant 8 : index
    %c0_314 = arith.constant 0 : index
    %347 = vector.load %arg17[%c0_312, %c8_313, %c0_314] : memref<10x17x8xf32, #tpu.memory_space<vmem>>, vector<8x8x8xf32>
    %348 = vector.shape_cast %347 : vector<8x8x8xf32> to vector<64x8xf32>
    %349 = arith.truncf %348 : vector<64x8xf32> to vector<64x8xbf16>
    %c0_315 = arith.constant 0 : index
    %c1_316 = arith.constant 1 : index
    %c0_317 = arith.constant 0 : index
    %c0_318 = arith.constant 0 : index
    %350 = vector.load %arg12[%c0_315, %c1_316, %c0_317, %c0_318] : memref<3x3x8x8xbf16, #tpu.memory_space<vmem>>, vector<1x1x8x8xbf16>
    %351 = vector.shape_cast %350 : vector<1x1x8x8xbf16> to vector<8x8xbf16>
    %cst_319 = arith.constant dense<0.000000e+00> : vector<64x8xf32>
    %352 = tpu.matmul %349, %351, %cst_319 {dimension_numbers = #tpu.dot_dimension_numbers<[1], [0], [0], [1], [0, 0, 1, 1], [], []>} : vector<64x8xbf16>, vector<8x8xbf16>, vector<64x8xf32> -> vector<64x8xf32>
    %353 = arith.addf %346, %352 : vector<64x8xf32>
    %c0_320 = arith.constant 0 : index
    %c9_321 = arith.constant 9 : index
    %c0_322 = arith.constant 0 : index
    %354 = vector.load %arg17[%c0_320, %c9_321, %c0_322] : memref<10x17x8xf32, #tpu.memory_space<vmem>>, vector<8x8x8xf32>
    %355 = vector.shape_cast %354 : vector<8x8x8xf32> to vector<64x8xf32>
    %356 = arith.truncf %355 : vector<64x8xf32> to vector<64x8xbf16>
    %c0_323 = arith.constant 0 : index
    %c2_324 = arith.constant 2 : index
    %c0_325 = arith.constant 0 : index
    %c0_326 = arith.constant 0 : index
    %357 = vector.load %arg12[%c0_323, %c2_324, %c0_325, %c0_326] : memref<3x3x8x8xbf16, #tpu.memory_space<vmem>>, vector<1x1x8x8xbf16>
    %358 = vector.shape_cast %357 : vector<1x1x8x8xbf16> to vector<8x8xbf16>
    %cst_327 = arith.constant dense<0.000000e+00> : vector<64x8xf32>
    %359 = tpu.matmul %356, %358, %cst_327 {dimension_numbers = #tpu.dot_dimension_numbers<[1], [0], [0], [1], [0, 0, 1, 1], [], []>} : vector<64x8xbf16>, vector<8x8xbf16>, vector<64x8xf32> -> vector<64x8xf32>
    %360 = arith.addf %353, %359 : vector<64x8xf32>
    %c1_328 = arith.constant 1 : index
    %c7_329 = arith.constant 7 : index
    %c0_330 = arith.constant 0 : index
    %361 = vector.load %arg17[%c1_328, %c7_329, %c0_330] : memref<10x17x8xf32, #tpu.memory_space<vmem>>, vector<8x8x8xf32>
    %362 = vector.shape_cast %361 : vector<8x8x8xf32> to vector<64x8xf32>
    %363 = arith.truncf %362 : vector<64x8xf32> to vector<64x8xbf16>
    %c1_331 = arith.constant 1 : index
    %c0_332 = arith.constant 0 : index
    %c0_333 = arith.constant 0 : index
    %c0_334 = arith.constant 0 : index
    %364 = vector.load %arg12[%c1_331, %c0_332, %c0_333, %c0_334] : memref<3x3x8x8xbf16, #tpu.memory_space<vmem>>, vector<1x1x8x8xbf16>
    %365 = vector.shape_cast %364 : vector<1x1x8x8xbf16> to vector<8x8xbf16>
    %cst_335 = arith.constant dense<0.000000e+00> : vector<64x8xf32>
    %366 = tpu.matmul %363, %365, %cst_335 {dimension_numbers = #tpu.dot_dimension_numbers<[1], [0], [0], [1], [0, 0, 1, 1], [], []>} : vector<64x8xbf16>, vector<8x8xbf16>, vector<64x8xf32> -> vector<64x8xf32>
    %367 = arith.addf %360, %366 : vector<64x8xf32>
    %c1_336 = arith.constant 1 : index
    %c8_337 = arith.constant 8 : index
    %c0_338 = arith.constant 0 : index
    %368 = vector.load %arg17[%c1_336, %c8_337, %c0_338] : memref<10x17x8xf32, #tpu.memory_space<vmem>>, vector<8x8x8xf32>
    %369 = vector.shape_cast %368 : vector<8x8x8xf32> to vector<64x8xf32>
    %370 = arith.truncf %369 : vector<64x8xf32> to vector<64x8xbf16>
    %c1_339 = arith.constant 1 : index
    %c1_340 = arith.constant 1 : index
    %c0_341 = arith.constant 0 : index
    %c0_342 = arith.constant 0 : index
    %371 = vector.load %arg12[%c1_339, %c1_340, %c0_341, %c0_342] : memref<3x3x8x8xbf16, #tpu.memory_space<vmem>>, vector<1x1x8x8xbf16>
    %372 = vector.shape_cast %371 : vector<1x1x8x8xbf16> to vector<8x8xbf16>
    %cst_343 = arith.constant dense<0.000000e+00> : vector<64x8xf32>
    %373 = tpu.matmul %370, %372, %cst_343 {dimension_numbers = #tpu.dot_dimension_numbers<[1], [0], [0], [1], [0, 0, 1, 1], [], []>} : vector<64x8xbf16>, vector<8x8xbf16>, vector<64x8xf32> -> vector<64x8xf32>
    %374 = arith.addf %367, %373 : vector<64x8xf32>
    %c1_344 = arith.constant 1 : index
    %c9_345 = arith.constant 9 : index
    %c0_346 = arith.constant 0 : index
    %375 = vector.load %arg17[%c1_344, %c9_345, %c0_346] : memref<10x17x8xf32, #tpu.memory_space<vmem>>, vector<8x8x8xf32>
    %376 = vector.shape_cast %375 : vector<8x8x8xf32> to vector<64x8xf32>
    %377 = arith.truncf %376 : vector<64x8xf32> to vector<64x8xbf16>
    %c1_347 = arith.constant 1 : index
    %c2_348 = arith.constant 2 : index
    %c0_349 = arith.constant 0 : index
    %c0_350 = arith.constant 0 : index
    %378 = vector.load %arg12[%c1_347, %c2_348, %c0_349, %c0_350] : memref<3x3x8x8xbf16, #tpu.memory_space<vmem>>, vector<1x1x8x8xbf16>
    %379 = vector.shape_cast %378 : vector<1x1x8x8xbf16> to vector<8x8xbf16>
    %cst_351 = arith.constant dense<0.000000e+00> : vector<64x8xf32>
    %380 = tpu.matmul %377, %379, %cst_351 {dimension_numbers = #tpu.dot_dimension_numbers<[1], [0], [0], [1], [0, 0, 1, 1], [], []>} : vector<64x8xbf16>, vector<8x8xbf16>, vector<64x8xf32> -> vector<64x8xf32>
    %381 = arith.addf %374, %380 : vector<64x8xf32>
    %c2_352 = arith.constant 2 : index
    %c7_353 = arith.constant 7 : index
    %c0_354 = arith.constant 0 : index
    %382 = vector.load %arg17[%c2_352, %c7_353, %c0_354] : memref<10x17x8xf32, #tpu.memory_space<vmem>>, vector<8x8x8xf32>
    %383 = vector.shape_cast %382 : vector<8x8x8xf32> to vector<64x8xf32>
    %384 = arith.truncf %383 : vector<64x8xf32> to vector<64x8xbf16>
    %c2_355 = arith.constant 2 : index
    %c0_356 = arith.constant 0 : index
    %c0_357 = arith.constant 0 : index
    %c0_358 = arith.constant 0 : index
    %385 = vector.load %arg12[%c2_355, %c0_356, %c0_357, %c0_358] : memref<3x3x8x8xbf16, #tpu.memory_space<vmem>>, vector<1x1x8x8xbf16>
    %386 = vector.shape_cast %385 : vector<1x1x8x8xbf16> to vector<8x8xbf16>
    %cst_359 = arith.constant dense<0.000000e+00> : vector<64x8xf32>
    %387 = tpu.matmul %384, %386, %cst_359 {dimension_numbers = #tpu.dot_dimension_numbers<[1], [0], [0], [1], [0, 0, 1, 1], [], []>} : vector<64x8xbf16>, vector<8x8xbf16>, vector<64x8xf32> -> vector<64x8xf32>
    %388 = arith.addf %381, %387 : vector<64x8xf32>
    %c2_360 = arith.constant 2 : index
    %c8_361 = arith.constant 8 : index
    %c0_362 = arith.constant 0 : index
    %389 = vector.load %arg17[%c2_360, %c8_361, %c0_362] : memref<10x17x8xf32, #tpu.memory_space<vmem>>, vector<8x8x8xf32>
    %390 = vector.shape_cast %389 : vector<8x8x8xf32> to vector<64x8xf32>
    %391 = arith.truncf %390 : vector<64x8xf32> to vector<64x8xbf16>
    %c2_363 = arith.constant 2 : index
    %c1_364 = arith.constant 1 : index
    %c0_365 = arith.constant 0 : index
    %c0_366 = arith.constant 0 : index
    %392 = vector.load %arg12[%c2_363, %c1_364, %c0_365, %c0_366] : memref<3x3x8x8xbf16, #tpu.memory_space<vmem>>, vector<1x1x8x8xbf16>
    %393 = vector.shape_cast %392 : vector<1x1x8x8xbf16> to vector<8x8xbf16>
    %cst_367 = arith.constant dense<0.000000e+00> : vector<64x8xf32>
    %394 = tpu.matmul %391, %393, %cst_367 {dimension_numbers = #tpu.dot_dimension_numbers<[1], [0], [0], [1], [0, 0, 1, 1], [], []>} : vector<64x8xbf16>, vector<8x8xbf16>, vector<64x8xf32> -> vector<64x8xf32>
    %395 = arith.addf %388, %394 : vector<64x8xf32>
    %c2_368 = arith.constant 2 : index
    %c9_369 = arith.constant 9 : index
    %c0_370 = arith.constant 0 : index
    %396 = vector.load %arg17[%c2_368, %c9_369, %c0_370] : memref<10x17x8xf32, #tpu.memory_space<vmem>>, vector<8x8x8xf32>
    %397 = vector.shape_cast %396 : vector<8x8x8xf32> to vector<64x8xf32>
    %398 = arith.truncf %397 : vector<64x8xf32> to vector<64x8xbf16>
    %c2_371 = arith.constant 2 : index
    %c2_372 = arith.constant 2 : index
    %c0_373 = arith.constant 0 : index
    %c0_374 = arith.constant 0 : index
    %399 = vector.load %arg12[%c2_371, %c2_372, %c0_373, %c0_374] : memref<3x3x8x8xbf16, #tpu.memory_space<vmem>>, vector<1x1x8x8xbf16>
    %400 = vector.shape_cast %399 : vector<1x1x8x8xbf16> to vector<8x8xbf16>
    %cst_375 = arith.constant dense<0.000000e+00> : vector<64x8xf32>
    %401 = tpu.matmul %398, %400, %cst_375 {dimension_numbers = #tpu.dot_dimension_numbers<[1], [0], [0], [1], [0, 0, 1, 1], [], []>} : vector<64x8xbf16>, vector<8x8xbf16>, vector<64x8xf32> -> vector<64x8xf32>
    %402 = arith.addf %395, %401 : vector<64x8xf32>
    %403 = vector.shape_cast %402 : vector<64x8xf32> to vector<1x64x8xf32>
    %cst_376 = arith.constant dense<0.000000e+00> : vector<1xf32>
    %404 = vector.multi_reduction <add>, %403, %cst_376 [1, 2] : vector<1x64x8xf32> to vector<1xf32>
    %405 = vector.shape_cast %404 : vector<1xf32> to vector<1x1x1xf32>
    %406 = vector.extract %405[0, 0, 0] : f32 from vector<1x1x1xf32>
    %cst_377 = arith.constant 5.120000e+02 : f32
    %407 = arith.divf %406, %cst_377 : f32
    %408 = arith.mulf %402, %402 : vector<64x8xf32>
    %409 = vector.shape_cast %408 : vector<64x8xf32> to vector<1x64x8xf32>
    %cst_378 = arith.constant dense<0.000000e+00> : vector<1xf32>
    %410 = vector.multi_reduction <add>, %409, %cst_378 [1, 2] : vector<1x64x8xf32> to vector<1xf32>
    %411 = vector.shape_cast %410 : vector<1xf32> to vector<1x1x1xf32>
    %412 = vector.extract %411[0, 0, 0] : f32 from vector<1x1x1xf32>
    %cst_379 = arith.constant 5.120000e+02 : f32
    %413 = arith.divf %412, %cst_379 : f32
    %414 = arith.mulf %407, %407 : f32
    %415 = arith.subf %413, %414 : f32
    %cst_380 = arith.constant 0.000000e+00 : f32
    %416 = arith.maximumf %415, %cst_380 : f32
    %417 = vector.broadcast %407 : f32 to vector<64x8xf32>
    %418 = arith.subf %402, %417 : vector<64x8xf32>
    %cst_381 = arith.constant 9.99999974E-6 : f32
    %419 = arith.addf %416, %cst_381 : f32
    %420 = math.rsqrt %419 : f32
    %421 = vector.broadcast %420 : f32 to vector<64x8xf32>
    %422 = arith.mulf %418, %421 : vector<64x8xf32>
    %c0_382 = arith.constant 0 : index
    %c0_383 = arith.constant 0 : index
    %423 = vector.load %arg13[%c0_382, %c0_383] : memref<1x8xf32, #tpu.memory_space<vmem>>, vector<1x8xf32>
    %424 = vector.broadcast %423 : vector<1x8xf32> to vector<64x8xf32>
    %425 = arith.mulf %422, %424 : vector<64x8xf32>
    %c0_384 = arith.constant 0 : index
    %c0_385 = arith.constant 0 : index
    %426 = vector.load %arg14[%c0_384, %c0_385] : memref<1x8xf32, #tpu.memory_space<vmem>>, vector<1x8xf32>
    %427 = vector.broadcast %426 : vector<1x8xf32> to vector<64x8xf32>
    %428 = arith.addf %425, %427 : vector<64x8xf32>
    %c0_386 = arith.constant 0 : index
    %c0_387 = arith.constant 0 : index
    %c0_388 = arith.constant 0 : index
    %429 = vector.load %arg2[%c0_386, %c0_387, %c0_388] : memref<1x1x8xf32, #tpu.memory_space<vmem>>, vector<1x1x8xf32>
    %430 = vector.shape_cast %429 : vector<1x1x8xf32> to vector<1x8xf32>
    %431 = vector.broadcast %430 : vector<1x8xf32> to vector<64x8xf32>
    %432 = arith.addf %428, %431 : vector<64x8xf32>
    %c0_389 = arith.constant 0 : index
    %c0_390 = arith.constant 0 : index
    %c0_391 = arith.constant 0 : index
    %433 = vector.load %arg15[%c0_389, %c0_390, %c0_391] : memref<1x64x8xf32, #tpu.memory_space<vmem>>, vector<1x64x8xf32>
    %434 = vector.shape_cast %433 : vector<1x64x8xf32> to vector<64x8xf32>
    %435 = vector.shape_cast %432 : vector<64x8xf32> to vector<1x64x8xf32>
    tpu.vector_store %arg15[%c0_389, %c0_390, %c0_391], %435 {strides = array<i32>} : memref<1x64x8xf32, #tpu.memory_space<vmem>>, vector<1x64x8xf32>,
    return
  }
  func.func @transform_0(%arg0: i32) -> (i32, i32, i32, i32, i32) {
    %c0_i32 = arith.constant 0 : i32
    %c0_i32_0 = arith.constant 0 : i32
    %c0_i32_1 = arith.constant 0 : i32
    %c0_i32_2 = arith.constant 0 : i32
    %c0_i32_3 = arith.constant 0 : i32
    return %arg0, %c0_i32, %c0_i32_0, %c0_i32_1, %c0_i32_2 : i32, i32, i32, i32, i32
  }
  func.func @transform_1(%arg0: i32) -> (i32, i32, i32) {
    %c0_i32 = arith.constant 0 : i32
    %c0_i32_0 = arith.constant 0 : i32
    %c0_i32_1 = arith.constant 0 : i32
    return %arg0, %c0_i32, %c0_i32_0 : i32, i32, i32
  }
  func.func @transform_2(%arg0: i32) -> (i32, i32, i32, i32) {
    %c0_i32 = arith.constant 0 : i32
    %c0_i32_0 = arith.constant 0 : i32
    %c0_i32_1 = arith.constant 0 : i32
    %c0_i32_2 = arith.constant 0 : i32
    %c0_i32_3 = arith.constant 0 : i32
    return %c0_i32, %c0_i32_0, %c0_i32_1, %c0_i32_2 : i32, i32, i32, i32
  }
  func.func @transform_3(%arg0: i32) -> (i32, i32) {
    %c0_i32 = arith.constant 0 : i32
    %c0_i32_0 = arith.constant 0 : i32
    %c0_i32_1 = arith.constant 0 : i32
    return %c0_i32, %c0_i32_0 : i32, i32
  }
  func.func @transform_4(%arg0: i32) -> (i32, i32) {
    %c0_i32 = arith.constant 0 : i32
    %c0_i32_0 = arith.constant 0 : i32
    %c0_i32_1 = arith.constant 0 : i32
    return %c0_i32, %c0_i32_0 : i32, i32
  }
  func.func @transform_5(%arg0: i32) -> (i32, i32, i32, i32) {
    %c0_i32 = arith.constant 0 : i32
    %c0_i32_0 = arith.constant 0 : i32
    %c0_i32_1 = arith.constant 0 : i32
    %c0_i32_2 = arith.constant 0 : i32
    %c0_i32_3 = arith.constant 0 : i32
    return %c0_i32, %c0_i32_0, %c0_i32_1, %c0_i32_2 : i32, i32, i32, i32
  }
  func.func @transform_6(%arg0: i32) -> (i32, i32) {
    %c0_i32 = arith.constant 0 : i32
    %c0_i32_0 = arith.constant 0 : i32
    %c0_i32_1 = arith.constant 0 : i32
    return %c0_i32, %c0_i32_0 : i32, i32
  }
  func.func @transform_7(%arg0: i32) -> (i32, i32) {
    %c0_i32 = arith.constant 0 : i32
    %c0_i32_0 = arith.constant 0 : i32
    %c0_i32_1 = arith.constant 0 : i32
    return %c0_i32, %c0_i32_0 : i32, i32
  }
  func.func @transform_8(%arg0: i32) -> (i32, i32, i32, i32) {
    %c0_i32 = arith.constant 0 : i32
    %c0_i32_0 = arith.constant 0 : i32
    %c0_i32_1 = arith.constant 0 : i32
    %c0_i32_2 = arith.constant 0 : i32
    %c0_i32_3 = arith.constant 0 : i32
    return %c0_i32, %c0_i32_0, %c0_i32_1, %c0_i32_2 : i32, i32, i32, i32
  }
  func.func @transform_9(%arg0: i32) -> (i32, i32) {
    %c0_i32 = arith.constant 0 : i32
    %c0_i32_0 = arith.constant 0 : i32
    %c0_i32_1 = arith.constant 0 : i32
    return %c0_i32, %c0_i32_0 : i32, i32
  }
  func.func @transform_10(%arg0: i32) -> (i32, i32) {
    %c0_i32 = arith.constant 0 : i32
    %c0_i32_0 = arith.constant 0 : i32
    %c0_i32_1 = arith.constant 0 : i32
    return %c0_i32, %c0_i32_0 : i32, i32
  }
  func.func @transform_11(%arg0: i32) -> (i32, i32, i32, i32) {
    %c0_i32 = arith.constant 0 : i32
    %c0_i32_0 = arith.constant 0 : i32
    %c0_i32_1 = arith.constant 0 : i32
    %c0_i32_2 = arith.constant 0 : i32
    %c0_i32_3 = arith.constant 0 : i32
    return %c0_i32, %c0_i32_0, %c0_i32_1, %c0_i32_2 : i32, i32, i32, i32
  }
  func.func @transform_12(%arg0: i32) -> (i32, i32) {
    %c0_i32 = arith.constant 0 : i32
    %c0_i32_0 = arith.constant 0 : i32
    %c0_i32_1 = arith.constant 0 : i32
    return %c0_i32, %c0_i32_0 : i32, i32
  }
  func.func @transform_13(%arg0: i32) -> (i32, i32) {
    %c0_i32 = arith.constant 0 : i32
    %c0_i32_0 = arith.constant 0 : i32
    %c0_i32_1 = arith.constant 0 : i32
    return %c0_i32, %c0_i32_0 : i32, i32
  }
  func.func @transform_14(%arg0: i32) -> (i32, i32, i32) {
    %c0_i32 = arith.constant 0 : i32
    %c0_i32_0 = arith.constant 0 : i32
    %c0_i32_1 = arith.constant 0 : i32
    return %arg0, %c0_i32, %c0_i32_0 : i32, i32, i32
  }
}

</mosaic_0001>

<bundles_post_ra>
// kernel: down_forward.1
= control target key start
LH: loop header
LB: loop body
LE: loop exit
PB: predicated region body
PF: predicated region fallthrough
CT: control target
= control target key end

     0   :  { %s6242_s29 = smov 0   ;;  %s7460_s0 = inlined_call_operand.vmem [shape: f32[2,8,2,8,8], index: 0, kind: input, shape index: {}]   ;;  %s7461_s1 = inlined_call_operand.vmem [shape: f32[2,1,8], index: 1, kind: input, shape index: {}]   ;;  %s7462_s2 = inlined_call_operand.vmem [shape: bf16[3,3,4,4], index: 2, kind: input, shape index: {}]   ;;  %s7463_s3 = inlined_call_operand.vmem [shape: f32[1,4], index: 3, kind: input, shape index: {}]   ;;  %s7464_s4 = inlined_call_operand.vmem [shape: f32[1,4], index: 4, kind: input, shape index: {}]   ;;  %s7465_s5 = inlined_call_operand.vmem [shape: bf16[3,3,4,4], index: 5, kind: input, shape index: {}]   ;;  %s7466_s6 = inlined_call_operand.vmem [shape: f32[1,4], index: 6, kind: input, shape index: {}]   ;;  %s7467_s7 = inlined_call_operand.vmem [shape: f32[1,4], index: 7, kind: input, shape index: {}]   ;;  %s7468_s8 = inlined_call_operand.vmem [shape: bf16[3,3,4,8], index: 8, kind: input, shape index: {}]   ;;  %s7469_s9 = inlined_call_operand.vmem [shape: f32[1,8], index: 9, kind: input, shape index: {}]   ;;  %s7470_s10 = inlined_call_operand.vmem [shape: f32[1,8], index: 10, kind: input, shape index: {}]   ;;  %s7471_s11 = inlined_call_operand.vmem [shape: bf16[3,3,8,8], index: 11, kind: input, shape index: {}]   ;;  %s7472_s12 = inlined_call_operand.vmem [shape: f32[1,8], index: 12, kind: input, shape index: {}]   ;;  %s7473_s13 = inlined_call_operand.vmem [shape: f32[1,8], index: 13, kind: input, shape index: {}]   ;;  %s7474_s14 = inlined_call_operand.vmem [shape: f32[2,64,8], index: 14, kind: output, shape index: {}]  }
   0x1 LB: > { %s5027_s30 = sadd.s32 4294967295, %s6162_s29   ;;  %p5031_p0 = scmp.ge.s32.totalorder %s6162_s29, 1  ;;  %s6162_s29 = sphi %s6242_s29, %s24_s29  }
   0x2   : > { %p420_p1 = scmp.lt.s32.totalorder %s6162_s29, 3 }
   0x4   : > { %p421_p2 = pnand %p5031_p0, %p420_p1 }
   0x5   : > { %p6252_p3 = scmp.lt.s32.totalorder (!%p421_p2), %s5027_s30, 1  ;;  %vm483_vm0 = vcmask (!%p421_p2), 31744   ;;  %vm486_vm1 = vcmask (!%p421_p2), 24576   ;;  %v6164_v0 = vmov (!%p421_p2), 0.0   ;;  %s6165_s20 = smov (!%p421_p2), 124   ;;  %vm654_vm2 = vcmask (!%p421_p2), 1041408  }
   0x6   : > { %424 = sbr.rel (%p421_p2) target bundleno = 2835 (0xb13), region = 76  ;;  %485 = vst.msk [vmem:[#allocation2 + $0x8] sm:$0xff] (!%p421_p2), %vm483_vm0, %v6164_v0  ;;  %484 = vst.msk [vmem:[#allocation2] sm:$0xff] (!%p421_p2), %vm483_vm0, %v6164_v0  ;;  %v5044_v17 = vld [vmem:[%s7462_s2 + $0x2] sm:$0x3] (!%p421_p2)  ;;  %s6166_s21 = smov (!%p421_p2), 0.0  }
   0x7   : > { %489 = vst.msk [vmem:[#allocation2 + $0xd8] sm:$0xff] (!%p421_p2), %vm483_vm0, %v6164_v0  ;;  %490 = vst.msk [vmem:[#allocation2 + $0xe0] sm:$0xff] (!%p421_p2), %vm483_vm0, %v6164_v0  ;;  %6029 = vmatprep.subr.msk.bf16.mxu0 (!%p421_p2), %vm654_vm2, %v5044_v17  ;;  %v656_v18 = vsel (!%p421_p2), %vm654_vm2, %v5044_v17, 0  ;;  %v627_v19 = vld [vmem:[%s7462_s2] sm:$0x3] (!%p421_p2)  ;;  %vm512_vm3 = vcmask (!%p421_p2), 64512  }
   0x8   : > { %493 = vst.msk [vmem:[#allocation2 + $0x1f] sm:$0x1] (!%p421_p2), %vm486_vm1, %v6164_v0  ;;  %487 = vst.msk [vmem:[#allocation2 + $0x10] sm:$0x1] (!%p421_p2), %vm486_vm1, %v6164_v0  ;;  %5414 = vmatpush3.bf16.msra.mxu0 (!%p421_p2), %v656_v18  ;;  %v736_v50 = vsel (!%p421_p2), %vm654_vm2, %v627_v19, 0  ;;  %vm515_vm4 = vcmask (!%p421_p2), 57344  }
   0x9   : > { %491 = vst.msk [vmem:[#allocation2 + $0xe8] sm:$0x1] (!%p421_p2), %vm486_vm1, %v6164_v0  ;;  %494 = vst.msk [vmem:[#allocation2 + $0x37] sm:$0x1] (!%p421_p2), %vm486_vm1, %v6164_v0  ;;  %6030 = vmatprep.subr.msk.bf16.mxu0 (!%p421_p2), %vm654_vm2, %v627_v19  ;;  %v5053_v51 = vld [vmem:[%s7462_s2 + $0x4] sm:$0x3] (!%p421_p2) }
   0xa   : > { %495 = vst.msk [vmem:[#allocation2 + $0x4f] sm:$0x1] (!%p421_p2), %vm486_vm1, %v6164_v0  ;;  %496 = vst.msk [vmem:[#allocation2 + $0x67] sm:$0x1] (!%p421_p2), %vm486_vm1, %v6164_v0  ;;  %v5063_v19 = vld [vmem:[%s7462_s2 + $0x8] sm:$0x3] (!%p421_p2) }
   0xb   : > { %497 = vst.msk [vmem:[#allocation2 + $0x7f] sm:$0x1] (!%p421_p2), %vm486_vm1, %v6164_v0  ;;  %498 = vst.msk [vmem:[#allocation2 + $0x97] sm:$0x1] (!%p421_p2), %vm486_vm1, %v6164_v0  ;;  %vm3959_vm5 = vcmask (!%p421_p2), 1043456  }
   0xc   : > { %499 = vst.msk [vmem:[#allocation2 + $0xaf] sm:$0x1] (!%p421_p2), %vm486_vm1, %v6164_v0  ;;  %500 = vst.msk [vmem:[#allocation2 + $0xc7] sm:$0x1] (!%p421_p2), %vm486_vm1, %v6164_v0 }
   0xd   : > { %503 = vst.msk [vmem:[#allocation2 + $0x28] sm:$0x1] %vm486_vm1, %v6164_v0  ;;  %504 = vst.msk [vmem:[#allocation2 + $0x40] sm:$0x1] %vm486_vm1, %v6164_v0  ;;  %s7477_s30 = smov (!%p6252_p3, %s5027_s30), 1  ;;  %v6363_v39 = vld [vmem:[#allocation2 + $0x8] sm:$0xff] }
   0xe   : > { %505 = vst.msk [vmem:[#allocation2 + $0x58] sm:$0x1] %vm486_vm1, %v6164_v0  ;;  %506 = vst.msk [vmem:[#allocation2 + $0x70] sm:$0x1] %vm486_vm1, %v6164_v0  ;;  %s5231_s16 = sshll.u32 %s7477_s30, 7 }
   0xf   : > { %507 = vst.msk [vmem:[#allocation2 + $0x88] sm:$0x1] %vm486_vm1, %v6164_v0  ;;  %508 = vst.msk [vmem:[#allocation2 + $0xa0] sm:$0x1] %vm486_vm1, %v6164_v0  ;;  %s6318_s19 = scalar_lea.vmem %s7460_s0, %s5231_s16 }
  0x10   : > { %509 = vst.msk [vmem:[#allocation2 + $0xb8] sm:$0x1] %vm486_vm1, %v6164_v0  ;;  %510 = vst.msk [vmem:[#allocation2 + $0xd0] sm:$0x1] %vm486_vm1, %v6164_v0  ;;  %v543_v1 = vld [vmem:[%s6318_s19 + $0x20] sm:$0xff]  ;;  %v5038_v2 = vld [vmem:[%s6318_s19 + $0x28] sm:$0xff] }
  0x11   : > { %492 = vst.msk [vmem:[#allocation2 + $0x7] sm:$0x1] %vm486_vm1, %v6164_v0  ;;  %501 = vst.msk [vmem:[#allocation2 + $0xdf] sm:$0x1] %vm486_vm1, %v6164_v0  ;;  %v541_v3 = vld [vmem:[%s6318_s19] sm:$0xff]  ;;  %v560_v4 = vmax.f32 %v543_v1, %v5038_v2  ;;  %v5036_v5 = vld [vmem:[%s6318_s19 + $0x8] sm:$0xff] }
  0x12   : > { %502 = vst.msk [vmem:[#allocation2 + $0x10] sm:$0x1] %vm486_vm1, %v6164_v0  ;;  %511 = vst.msk [vmem:[#allocation2 + $0xe8] sm:$0x1] %vm486_vm1, %v6164_v0  ;;  %v544_v6 = vld [vmem:[%s6318_s19 + $0x30] sm:$0xff]  ;;  %v5039_v7 = vld [vmem:[%s6318_s19 + $0x38] sm:$0xff]  ;;  %v558_v8 = vmax.f32 %v541_v3, %v5036_v5 }
  0x13   : > { %v542_v9 = vld [vmem:[%s6318_s19 + $0x10] sm:$0xff]  ;;  %v5037_v10 = vld [vmem:[%s6318_s19 + $0x18] sm:$0xff]  ;;  %578 = vrot.lane.b32.xlu1 %v560_v4, %s6165_s20  ;;  %v561_v11 = vmax.f32 %v544_v6, %v5039_v7  ;;  %v545_v15 = vld [vmem:[%s6318_s19 + $0x40] sm:$0xff]  ;;  %v830_v2 = vsel %vm654_vm2, %v5053_v51, 0  ;;  %513 = vst.msk [vmem:[#allocation3] sm:$0xff] %vm512_vm3, %v6164_v0 }
  0x14   : > { %574 = vrot.lane.b32.xlu0 %v558_v8, %s6165_s20  ;;  %v559_v12 = vmax.f32 %v542_v9, %v5037_v10  ;;  %v546_v13 = vld [vmem:[%s6318_s19 + $0x50] sm:$0xff]  ;;  %v5041_v14 = vld [vmem:[%s6318_s19 + $0x58] sm:$0xff]  ;;  %v5040_v16 = vld [vmem:[%s6318_s19 + $0x48] sm:$0xff]  ;;  %514 = vst.msk [vmem:[#allocation3 + $0x8] sm:$0xff] %vm512_vm3, %v6164_v0 }
  0x15   : > { %v563_v20 = vmax.f32 %v546_v13, %v5041_v14  ;;  %v562_v21 = vmax.f32 %v545_v15, %v5040_v16  ;;  %v548_v22 = vld [vmem:[%s6318_s19 + $0x70] sm:$0xff]  ;;  %v5043_v23 = vld [vmem:[%s6318_s19 + $0x78] sm:$0xff]  ;;  %v547_v24 = vld [vmem:[%s6318_s19 + $0x60] sm:$0xff]  ;;  %518 = vst.msk [vmem:[#allocation3 + $0xd8] sm:$0xff] %vm512_vm3, %v6164_v0 }
  0x16   : > { %v5042_v25 = vld [vmem:[%s6318_s19 + $0x68] sm:$0xff]  ;;  %v565_v26 = vmax.f32 %v548_v22, %v5043_v23  ;;  %v5058_v5 = vld [vmem:[%s7462_s2 + $0x6] sm:$0x3]  ;;  %519 = vst.msk [vmem:[#allocation3 + $0xe0] sm:$0xff] %vm512_vm3, %v6164_v0 }
  0x17   : > { %580 = vrot.lane.b32.xlu1 %v561_v11, %s6165_s20  ;;  %v564_v27 = vmax.f32 %v547_v24, %v5042_v25  ;;  %v932_v16 = vsel %vm654_vm2, %v5058_v5, 0  ;;  %v1034_v25 = vsel %vm654_vm2, %v5063_v19, 0  ;;  %521 = vst.msk [vmem:[#allocation3 + $0x7] sm:$0x1] %vm515_vm4, %v6164_v0  ;;  %522 = vst.msk [vmem:[#allocation3 + $0x1f] sm:$0x1] %vm515_vm4, %v6164_v0 }
  0x18   : > { %576 = vrot.lane.b32.xlu0 %v559_v12, %s6165_s20  ;;  %v6409_v55 = vld [vmem:[#allocation2 + $0x7] sm:$0xff]  ;;  %516 = vst.msk [vmem:[#allocation3 + $0x10] sm:$0x1] %vm515_vm4, %v6164_v0  ;;  %520 = vst.msk [vmem:[#allocation3 + $0xe8] sm:$0x1] %vm515_vm4, %v6164_v0 }
  0x19   : > { %v6436_v7 = vld [vmem:[#allocation2 + $0x9] sm:$0xff]  ;;  %523 = vst.msk [vmem:[#allocation3 + $0x37] sm:$0x1] %vm515_vm4, %v6164_v0  ;;  %524 = vst.msk [vmem:[#allocation3 + $0x4f] sm:$0x1] %vm515_vm4, %v6164_v0 }
  0x1a   : > { %525 = vst.msk [vmem:[#allocation3 + $0x67] sm:$0x1] %vm515_vm4, %v6164_v0  ;;  %526 = vst.msk [vmem:[#allocation3 + $0x7f] sm:$0x1] %vm515_vm4, %v6164_v0 }
  0x1b   : > { %584 = vrot.lane.b32.xlu1 %v563_v20, %s6165_s20  ;;  %527 = vst.msk [vmem:[#allocation3 + $0x97] sm:$0x1] %vm515_vm4, %v6164_v0  ;;  %528 = vst.msk [vmem:[#allocation3 + $0xaf] sm:$0x1] %vm515_vm4, %v6164_v0 }
  0x1c   : > { %582 = vrot.lane.b32.xlu0 %v562_v21, %s6165_s20  ;;  %529 = vst.msk [vmem:[#allocation3 + $0xc7] sm:$0x1] %vm515_vm4, %v6164_v0  ;;  %530 = vst.msk [vmem:[#allocation3 + $0xdf] sm:$0x1] %vm515_vm4, %v6164_v0 }
  0x1d   : > { %532 = vst.msk [vmem:[#allocation3 + $0x28] sm:$0x1] %vm515_vm4, %v6164_v0  ;;  %533 = vst.msk [vmem:[#allocation3 + $0x40] sm:$0x1] %vm515_vm4, %v6164_v0 }
  0x1e   : > { %534 = vst.msk [vmem:[#allocation3 + $0x58] sm:$0x1] %vm515_vm4, %v6164_v0  ;;  %535 = vst.msk [vmem:[#allocation3 + $0x70] sm:$0x1] %vm515_vm4, %v6164_v0 }
  0x1f   : > { %588 = vrot.lane.b32.xlu1 %v565_v26, %s6165_s20  ;;  %536 = vst.msk [vmem:[#allocation3 + $0x88] sm:$0x1] %vm515_vm4, %v6164_v0  ;;  %537 = vst.msk [vmem:[#allocation3 + $0xa0] sm:$0x1] %vm515_vm4, %v6164_v0 }
  0x20   : > { %586 = vrot.lane.b32.xlu0 %v564_v27, %s6165_s20  ;;  %538 = vst.msk [vmem:[#allocation3 + $0xb8] sm:$0x1] %vm515_vm4, %v6164_v0  ;;  %539 = vst.msk [vmem:[#allocation3 + $0xd0] sm:$0x1] %vm515_vm4, %v6164_v0 }
  0x21   : > { %531 = vst.msk [vmem:[#allocation3 + $0x10] sm:$0x1] %vm515_vm4, %v6164_v0  ;;  %540 = vst.msk [vmem:[#allocation3 + $0xe8] sm:$0x1] %vm515_vm4, %v6164_v0 }
  0x85   : > { %v579_v28 = vpop.permute.xlu1 %578 }
  0x86   : > { %v6345_v29 = vmax.f32 %v560_v4, %v579_v28  ;;  %v575_v30 = vpop.permute.xlu0 %574 }
  0x87   : > { %v6347_v31 = vmax.f32 %v558_v8, %v575_v30 }
  0x88   : > { %609 = vst.msk [vmem:[#allocation2 + $0x50] sm:$0xff] %vm483_vm0, %v6345_v29 }
  0x89   : > { %607 = vst.msk [vmem:[#allocation2 + $0x20] sm:$0xff] %vm483_vm0, %v6347_v31  ;;  %v581_v32 = vpop.permute.xlu1 %580 }
  0x8a   : > { %v6353_v33 = vmax.f32 %v561_v11, %v581_v32  ;;  %v577_v34 = vpop.permute.xlu0 %576 }
  0x8b   : > { %v6355_v35 = vmax.f32 %v559_v12, %v577_v34 }
  0x8c   : > { %610 = vst.msk [vmem:[#allocation2 + $0x68] sm:$0xff] %vm483_vm0, %v6353_v33 }
  0x8d   : > { %608 = vst.msk [vmem:[#allocation2 + $0x38] sm:$0xff] %vm483_vm0, %v6355_v35  ;;  %v585_v36 = vpop.permute.xlu1 %584 }
  0x8e   : > { %v6361_v37 = vmax.f32 %v563_v20, %v585_v36  ;;  %v583_v38 = vpop.permute.xlu0 %582 }
  0x8f   : > { %v6365_v40 = vmax.f32 %v562_v21, %v583_v38  ;;  %v6377_v46 = vld [vmem:[#allocation2 + $0x50] sm:$0xff] }
  0x90   : > { %612 = vst.msk [vmem:[#allocation2 + $0x98] sm:$0xff] %vm483_vm0, %v6361_v37  ;;  %v6369_v41 = vld [vmem:[#allocation2 + $0x20] sm:$0xff]  ;;  %v618_v62 = vld [vmem:[#allocation2 + $0x4f] sm:$0xff] }
  0x91   : > { %611 = vst.msk [vmem:[#allocation2 + $0x80] sm:$0xff] %vm483_vm0, %v6365_v40  ;;  %v589_v42 = vpop.permute.xlu1 %588  ;;  %v636_v43 = vpack.c.bf16 %v6369_v41, %v6363_v39  ;;  %v616_v56 = vld [vmem:[#allocation2 + $0x1f] sm:$0xff]  ;;  %v806_v13 = vld [vmem:[#allocation2 + $0x51] sm:$0xff] }
  0x92   : > { %v6375_v44 = vmax.f32 %v565_v26, %v589_v42  ;;  %v587_v45 = vpop.permute.xlu0 %586  ;;  %v623_v60 = vpack.c.bf16 %v616_v56, %v6409_v55  ;;  %v804_v8 = vld [vmem:[#allocation2 + $0x21] sm:$0xff]  ;;  %v5073_v42 = vld [vmem:[%s7462_s2 + $0xc] sm:$0x3] }
  0x93   : > { %v6379_v47 = vmax.f32 %v564_v27, %v587_v45  ;;  %5415 = vmatprep.mubr.msk.bf16.mxu0 %vm483_vm0, %v636_v43  ;;  %v6398_v52 = vld [vmem:[#allocation2 + $0x68] sm:$0xff]  ;;  %v811_v11 = vpack.c.bf16 %v804_v8, %v6436_v7 }
  0x94   : > { %614 = vst.msk [vmem:[#allocation2 + $0xc8] sm:$0xff] %vm483_vm0, %v6375_v44  ;;  %v6384_v48 = vld [vmem:[#allocation2 + $0x38] sm:$0xff]  ;;  %v619_v3 = vld [vmem:[#allocation2 + $0x67] sm:$0xff]  ;;  %v1016_v34 = vpack.c.bf16 %v6398_v52, %v6377_v46 }
  0x95   : > { %613 = vst.msk [vmem:[#allocation2 + $0xb0] sm:$0xff] %vm483_vm0, %v6379_v47  ;;  %v6390_v49 = vpack.c.bf16 %v6377_v46, %v6384_v48  ;;  %v617_v61 = vld [vmem:[#allocation2 + $0x37] sm:$0xff]  ;;  %v807_v17 = vld [vmem:[#allocation2 + $0x69] sm:$0xff]  ;;  %v914_v24 = vpack.c.bf16 %v619_v3, %v618_v62  ;;  %v1015_v32 = vpack.c.bf16 %v6384_v48, %v6369_v41  ;;  %v1239_v48 = vsel %vm654_vm2, %v5073_v42, 0 }
  0x96   : > { %v6423_v1 = vpack.c.bf16 %v618_v62, %v617_v61  ;;  %v805_v12 = vld [vmem:[#allocation2 + $0x39] sm:$0xff]  ;;  %v913_v23 = vpack.c.bf16 %v617_v61, %v616_v56  ;;  %v5068_v27 = vld [vmem:[%s7462_s2 + $0xa] sm:$0x3]  ;;  %v1118_v46 = vpack.c.bf16 %v807_v17, %v806_v13 }
  0x97   : > { %5416 = vmatmul.mubr.msk.bf16.vlgmr.msra.gmra.mrb[0].mxu0 %vm483_vm0, %v6390_v49  ;;  %v6411_v57 = vld [vmem:[#allocation2 + $0x98] sm:$0xff]  ;;  %v6444_v15 = vpack.c.bf16 %v806_v13, %v805_v12  ;;  %v1136_v36 = vsel %vm654_vm2, %v5068_v27, 0  ;;  %v1117_v45 = vpack.c.bf16 %v805_v12, %v804_v8  ;;  %v6514_v62 = vld [vmem:[#allocation2 + $0xe0] sm:$0xff] }
  0x98   : > { %5424 = vmatpush3.bf16.msra.mxu0 %v736_v50  ;;  %v6400_v53 = vld [vmem:[#allocation2 + $0x80] sm:$0xff]  ;;  %v621_v9 = vld [vmem:[#allocation2 + $0x97] sm:$0xff] }
  0x99   : > { %v6404_v54 = vpack.c.bf16 %v6400_v53, %v6398_v52  ;;  %6031 = vmatprep.subr.msk.bf16.mxu0 %vm654_vm2, %v5053_v51  ;;  %v620_v63 = vld [vmem:[#allocation2 + $0x7f] sm:$0xff]  ;;  %v1017_v38 = vpack.c.bf16 %v6411_v57, %v6400_v53  ;;  %v5078_v51 = vld [vmem:[%s7462_s2 + $0xe] sm:$0x3] }
  0x9a   : > { %v6426_v4 = vpack.c.bf16 %v620_v63, %v619_v3  ;;  %v808_v14 = vld [vmem:[#allocation2 + $0x81] sm:$0xff]  ;;  %v809_v21 = vld [vmem:[#allocation2 + $0x99] sm:$0xff]  ;;  %v915_v26 = vpack.c.bf16 %v621_v9, %v620_v63  ;;  %v1341_v56 = vsel %vm654_vm2, %v5078_v51, 0 }
  0x9b   : > { %5419 = vmatprep.mubr.msk.bf16.mxu0 %vm483_vm0, %v6404_v54  ;;  %v6447_v18 = vpack.c.bf16 %v808_v14, %v807_v17  ;;  %v912_v28 = vld [vmem:[#allocation2 + $0xc7] sm:$0xff]  ;;  %v1119_v50 = vpack.c.bf16 %v809_v21, %v808_v14 }
  0x9c   : > { %v6413_v58 = vld [vmem:[#allocation2 + $0xb0] sm:$0xff]  ;;  %v1014_v41 = vld [vmem:[#allocation2 + $0xc8] sm:$0xff] }
  0x9d   : > { %v6417_v59 = vpack.c.bf16 %v6413_v58, %v6411_v57  ;;  %v622_v6 = vld [vmem:[#allocation2 + $0xaf] sm:$0xff]  ;;  %v1018_v43 = vpack.c.bf16 %v1014_v41, %v6413_v58  ;;  %v6503_v58 = vld [vmem:[#allocation2 + $0xdf] sm:$0xff]  ;;  %v1325_v63 = vpack.c.bf16 %v6514_v62, %v1014_v41 }
  0x9e   : > { %v6438_v10 = vpack.c.bf16 %v622_v6, %v621_v9  ;;  %v810_v20 = vld [vmem:[#allocation2 + $0xb1] sm:$0xff]  ;;  %v916_v30 = vpack.c.bf16 %v912_v28, %v622_v6  ;;  %v1116_v52 = vld [vmem:[#allocation2 + $0xc9] sm:$0xff] }
  0x9f   : > { %5420 = vmatmul.mubr.msk.bf16.gmra.mrb[4].mxu0 %vm483_vm0, %v6417_v59  ;;  %v814_v22 = vpack.c.bf16 %v810_v20, %v809_v21  ;;  %v1120_v53 = vpack.c.bf16 %v1116_v52, %v810_v20  ;;  %v5083_v57 = vld [vmem:[%s7462_s2 + $0x10] sm:$0x3] }
  0xa0   : > { %5425 = vmatprep.mubr.msk.bf16.mxu0 %vm483_vm0, %v623_v60  ;;  %v1223_v60 = vpack.c.bf16 %v6503_v58, %v912_v28  ;;  %v1443_v61 = vsel %vm654_vm2, %v5083_v57, 0 }
  0xa7   : > { %5426 = vmatmul.mubr.msk.bf16.vlgmr.msra.gmra.mrb[0].mxu0 %vm483_vm0, %v6423_v1 }
  0xa8   : > { %5434 = vmatpush3.bf16.msra.mxu0 %v830_v2  ;;  %5429 = vmatprep.mubr.msk.bf16.mxu0 %vm483_vm0, %v6426_v4 }
  0xa9   : > { %6032 = vmatprep.subr.msk.bf16.mxu0 %vm654_vm2, %v5058_v5 }
  0xaf   : > { %5430 = vmatmul.mubr.msk.bf16.gmra.mrb[4].mxu0 %vm483_vm0, %v6438_v10 }
  0xb0   : > { %5435 = vmatprep.mubr.msk.bf16.mxu0 %vm483_vm0, %v811_v11 }
  0xb7   : > { %5436 = vmatmul.mubr.msk.bf16.vlgmr.msra.gmra.mrb[0].mxu0 %vm483_vm0, %v6444_v15 }
  0xb8   : > { %5444 = vmatpush3.bf16.msra.mxu0 %v932_v16  ;;  %5439 = vmatprep.mubr.msk.bf16.mxu0 %vm483_vm0, %v6447_v18 }
  0xb9   : > { %6033 = vmatprep.subr.msk.bf16.mxu0 %vm654_vm2, %v5063_v19 }
  0xbf   : > { %5440 = vmatmul.mubr.msk.bf16.gmra.mrb[4].mxu0 %vm483_vm0, %v814_v22 }
  0xc0   : > { %5445 = vmatprep.mubr.msk.bf16.mxu0 %vm483_vm0, %v913_v23 }
  0xc7   : > { %5446 = vmatmul.mubr.msk.bf16.vlgmr.msra.gmra.mrb[0].mxu0 %vm483_vm0, %v914_v24 }
  0xc8   : > { %5454 = vmatpush3.bf16.msra.mxu0 %v1034_v25  ;;  %5449 = vmatprep.mubr.msk.bf16.mxu0 %vm483_vm0, %v915_v26 }
  0xc9   : > { %6034 = vmatprep.subr.msk.bf16.mxu0 %vm654_vm2, %v5068_v27 }
  0xcf   : > { %5450 = vmatmul.mubr.msk.bf16.gmra.mrb[4].mxu0 %vm483_vm0, %v916_v30 }
  0xd0   : > { %5455 = vmatprep.mubr.msk.bf16.mxu0 %vm483_vm0, %v1015_v32 }
  0xd7   : > { %5456 = vmatmul.mubr.msk.bf16.vlgmr.msra.gmra.mrb[0].mxu0 %vm483_vm0, %v1016_v34 }
  0xd8   : > { %5464 = vmatpush3.bf16.msra.mxu0 %v1136_v36  ;;  %5459 = vmatprep.mubr.msk.bf16.mxu0 %vm483_vm0, %v1017_v38 }
  0xd9   : > { %6035 = vmatprep.subr.msk.bf16.mxu0 %vm654_vm2, %v5073_v42 }
  0xdf   : > { %5460 = vmatmul.mubr.msk.bf16.gmra.mrb[4].mxu0 %vm483_vm0, %v1018_v43 }
  0xe0   : > { %5465 = vmatprep.mubr.msk.bf16.mxu0 %vm483_vm0, %v1117_v45 }
  0xe7   : > { %5466 = vmatmul.mubr.msk.bf16.vlgmr.msra.gmra.mrb[0].mxu0 %vm483_vm0, %v1118_v46 }
  0xe8   : > { %5474 = vmatpush3.bf16.msra.mxu0 %v1239_v48  ;;  %5469 = vmatprep.mubr.msk.bf16.mxu0 %vm483_vm0, %v1119_v50 }
  0xe9   : > { %6036 = vmatprep.subr.msk.bf16.mxu0 %vm654_vm2, %v5078_v51 }
  0xef   : > { %5470 = vmatmul.mubr.msk.bf16.gmra.mrb[4].mxu0 %vm483_vm0, %v1120_v53 }
  0xf0   : > { %5475 = vmatprep.mubr.msk.bf16.mxu0 %vm483_vm0, %v6423_v1 }
  0xf7   : > { %5476 = vmatmul.mubr.msk.bf16.vlgmr.msra.gmra.mrb[0].mxu0 %vm483_vm0, %v6426_v4 }
  0xf8   : > { %5484 = vmatpush3.bf16.msra.mxu0 %v1341_v56  ;;  %5479 = vmatprep.mubr.msk.bf16.mxu0 %vm483_vm0, %v6438_v10 }
  0xf9   : > { %6037 = vmatprep.subr.msk.bf16.mxu0 %vm654_vm2, %v5083_v57 }
  0xff   : > { %5480 = vmatmul.mubr.msk.bf16.gmra.mrb[4].mxu0 %vm483_vm0, %v1223_v60 }
 0x100   : > { %5485 = vmatprep.mubr.msk.bf16.mxu0 %vm483_vm0, %v6390_v49  ;;  %v6523_v49 = vld [vmem:[#allocation2 + $0xe1] sm:$0xff] }
 0x107   : > { %5486 = vmatmul.mubr.msk.bf16.vlgmr.msra.gmra.mrb[0].mxu0 %vm483_vm0, %v6404_v54  ;;  %v1427_v54 = vpack.c.bf16 %v6523_v49, %v1116_v52 }
 0x108   : > { %5494 = vmatpush3.bf16.msra.mxu0 %v1443_v61  ;;  %5489 = vmatprep.mubr.msk.bf16.mxu0 %vm483_vm0, %v6417_v59 }
 0x10f   : > { %5490 = vmatmul.mubr.msk.bf16.gmra.mrb[4].mxu0 %vm483_vm0, %v1325_v63 }
 0x110   : > { %5495 = vmatprep.mubr.msk.bf16.mxu0 %vm483_vm0, %v6444_v15 }
 0x117   : > { %5496 = vmatmul.mubr.msk.bf16.vlgmr.msra.gmra.mrb[0].mxu0 %vm483_vm0, %v6447_v18 }
 0x118   : > { %5499 = vmatprep.mubr.msk.bf16.mxu0 %vm483_vm0, %v814_v22 }
 0x11f   : > { %5500 = vmatmul.mubr.msk.bf16.gmra.mrb[4].mxu0 %vm483_vm0, %v1427_v54 }
 0x1ea   : > { %v6527_v59 = vpop.f32.mrb[0].mxu0 }
 0x1eb   : > { %v6529_v1 = vpop.f32.mrb[1].mxu0  ;;  %v1547_v5 = vmul.f32 %v6527_v59, %v6527_v59  ;;  %v1521_v11 = vsel %vm483_vm0, %v6527_v59, 0.0 }
 0x1ec   : > { %v1545_v2 = vmul.f32 %v6529_v1, %v6529_v1  ;;  %v6533_v3 = vpop.f32.mrb[2].mxu0  ;;  %v1518_v6 = vsel %vm483_vm0, %v6529_v1, 0.0 }
 0x1ed   : > { %v6535_v4 = vpop.f32.mrb[3].mxu0  ;;  %v1548_v13 = vmul.f32 %v6533_v3, %v6533_v3  ;;  %v1556_v17 = vsel %vm483_vm0, %v1547_v5, 0.0  ;;  %v1523_v18 = vsel %vm483_vm0, %v6533_v3, 0.0 }
 0x1ee   : > { %v1519_v8 = vsel %vm483_vm0, %v6535_v4, 0.0  ;;  %v1546_v9 = vmul.f32 %v6535_v4, %v6535_v4  ;;  %v1553_v12 = vsel %vm483_vm0, %v1545_v2, 0.0 }
 0x1ef   : > { %v1520_v10 = vadd.f32 %v1519_v8, %v1518_v6  ;;  %v1558_v23 = vsel %vm483_vm0, %v1548_v13, 0.0 }
 0x1f0   : > { %v1554_v14 = vsel %vm483_vm0, %v1546_v9, 0.0 }
 0x1f1   : > { %v1522_v15 = vadd.f32 %v1521_v11, %v1520_v10  ;;  %v1555_v16 = vadd.f32 %v1554_v14, %v1553_v12 }
 0x1f2   : > { %v6554_v19 = vpop.f32.mrb[4].mxu0 }
 0x1f3   : > { %v1557_v20 = vadd.f32 %v1556_v17, %v1555_v16  ;;  %v6556_v21 = vpop.f32.mrb[5].mxu0  ;;  %v1524_v22 = vadd.f32 %v1523_v18, %v1522_v15  ;;  %v1551_v32 = vmul.f32 %v6554_v19, %v6554_v19  ;;  %v1529_v43 = vsel %vm483_vm0, %v6554_v19, 0.0  ;;  %v5090_v16 = vld [vmem:[%s7465_s5 + $0x2] sm:$0x3]  ;;  %v6591_v18 = vld [vmem:[%s7465_s5] sm:$0x3] }
 0x1f4   : > { %v1525_v24 = vsel %vm483_vm0, %v6556_v21, 0.0  ;;  %v1549_v25 = vmul.f32 %v6556_v21, %v6556_v21  ;;  %v6563_v26 = vpop.f32.mrb[6].mxu0  ;;  %6038 = vmatprep.subr.msk.bf16.mxu1 %vm654_vm2, %v5090_v16  ;;  %v1755_v17 = vsel %vm654_vm2, %v5090_v16, 0 }
 0x1f5   : > { %v1526_v27 = vadd.f32 %v1525_v24, %v1524_v22  ;;  %v1559_v28 = vadd.f32 %v1558_v23, %v1557_v20  ;;  %v6565_v30 = vpop.f32.mrb[7].mxu0  ;;  %v1552_v45 = vmul.f32 %v6563_v26, %v6563_v26  ;;  %v1531_v51 = vsel %vm483_vm0, %v6563_v26, 0.0  ;;  %5504 = vmatpush3.bf16.msra.mxu1 %v1755_v17 }
 0x1f6   : > { %v1560_v34 = vsel %vm483_vm0, %v1549_v25, 0.0  ;;  %v1527_v36 = vsel %vm483_vm0, %v6565_v30, 0.0  ;;  %v1550_v38 = vmul.f32 %v6565_v30, %v6565_v30  ;;  %v1564_v52 = vsel %vm483_vm0, %v1551_v32, 0.0  ;;  %6039 = vmatprep.subr.msk.bf16.mxu1 %vm654_vm2, %v6591_v18 }
 0x1f7   : > { %v1561_v42 = vadd.f32 %v1560_v34, %v1559_v28  ;;  %v1528_v41 = vadd.f32 %v1527_v36, %v1526_v27  ;;  %v1566_v57 = vsel %vm483_vm0, %v1552_v45, 0.0 }
 0x1f8   : > { %v1562_v46 = vsel %vm483_vm0, %v1550_v38, 0.0 }
 0x1f9   : > { %v1530_v48 = vadd.f32 %v1529_v43, %v1528_v41  ;;  %v1563_v50 = vadd.f32 %v1562_v46, %v1561_v42  ;;  %v5089_v43 = vld [vmem:[%s7464_s4] ss:$0 sm:$0xff] }
 0x1fb   : > { %v1532_v53 = vadd.f32 %v1531_v51, %v1530_v48  ;;  %v1565_v56 = vadd.f32 %v1564_v52, %v1563_v50 }
 0x1fd   : > { %1533 = vadd.xlane.f32.xlu0 %v1532_v53  ;;  %v1567_v60 = vadd.f32 %v1566_v57, %v1565_v56 }
 0x1ff   : > { %1568 = vadd.xlane.f32.xlu1 %v1567_v60 }
 0x28a   : > { %v1534_v61 = vpop.xlane.xlu0 %1533 }
 0x28b   : > { %v1535_v63 = vrot.slane %v1534_v61, 4 }
 0x28c   : > { %v1569_v54 = vpop.xlane.xlu1 %1568 }
 0x28d   : > { %v1536_v2 = vadd.f32 %v1535_v63, %v1534_v61  ;;  %v1570_v5 = vrot.slane %v1569_v54, 4 }
 0x28f   : > { %v1537_v6 = vrot.slane %v1536_v2, 2  ;;  %v1571_v8 = vadd.f32 %v1570_v5, %v1569_v54 }
 0x291   : > { %v1572_v9 = vrot.slane %v1571_v8, 2  ;;  %v1538_v10 = vadd.f32 %v1537_v6, %v1536_v2 }
 0x293   : > { %v1539_v11 = vrot.slane %v1538_v10, 1  ;;  %v1573_v12 = vadd.f32 %v1572_v9, %v1571_v8 }
 0x295   : > { %v1540_v13 = vadd.f32 %v1539_v11, %v1538_v10  ;;  %v1574_v14 = vrot.slane %v1573_v12, 1 }
 0x297   : > { %6065 = vpush %v1540_v13  ;;  %v1575_v15 = vadd.f32 %v1574_v14, %v1573_v12 }
 0x299   : > { %6067 = vpush %v1575_v15 }
 0x2c8   : > { %s6066_s15 = spop %6065 }
 0x2c9   : > { %s1544_s16 = smul.f32 0.00390625, %s6066_s15 }
 0x2ca   : > { %s6068_s17 = spop %6067 }
 0x2cb   : > { %s1580_s18 = smul.f32 %s1544_s16, %s1544_s16  ;;  %v1583_v20 = vstv %s1544_s16 }
 0x2cc   : > { %s1579_s19 = smul.f32 0.00390625, %s6068_s17  ;;  %v1584_v22 = vsub.f32 %v6529_v1, %v1583_v20  ;;  %v1585_v23 = vsub.f32 %v6535_v4, %v1583_v20  ;;  %v1586_v24 = vsub.f32 %v6527_v59, %v1583_v20  ;;  %v1587_v25 = vsub.f32 %v6533_v3, %v1583_v20  ;;  %v5088_v3 = vld [vmem:[%s7463_s3] ss:$0 sm:$0xff] }
 0x2cd   : > { %v1588_v27 = vsub.f32 %v6556_v21, %v1583_v20  ;;  %v1589_v28 = vsub.f32 %v6565_v30, %v1583_v20  ;;  %v1590_v32 = vsub.f32 %v6554_v19, %v1583_v20  ;;  %v1591_v34 = vsub.f32 %v6563_v26, %v1583_v20 }
 0x2ce   : > { %s1581_s20 = ssub.f32 %s1579_s19, %s1580_s18 }
 0x2d0   : > { %s1582_s22 = smax.f32 %s6166_s21, %s1581_s20 }
 0x2d1   : > { %s1592_s23 = sadd.f32 1e-05, %s1582_s22 }
 0x2d3   : > { %v1593_v1 = vstv %s1592_s23 }
 0x2d4   : > { %6100 = vrsqrt.f32 %v1593_v1 }
 0x2de   : > { %v6101_v4 = vpop.eup %6100 }
 0x2df   : > { %6069 = vpush %v6101_v4 }
 0x310   : > { %s6070_s24 = spop %6069 }
 0x311   : > { %v1596_v59 = vstv %s6070_s24 }
 0x312   : > { %v1597_v21 = vmul.f32 %v1596_v59, %v1584_v22  ;;  %v1598_v30 = vmul.f32 %v1596_v59, %v1585_v23  ;;  %v1599_v19 = vmul.f32 %v1596_v59, %v1586_v24  ;;  %v1600_v36 = vmul.f32 %v1596_v59, %v1587_v25 }
 0x313   : > { %v1601_v26 = vmul.f32 %v1596_v59, %v1588_v27  ;;  %v1602_v38 = vmul.f32 %v1596_v59, %v1589_v28  ;;  %v1603_v42 = vmul.f32 %v1596_v59, %v1590_v32  ;;  %v1604_v41 = vmul.f32 %v1596_v59, %v1591_v34 }
 0x314   : > { %v1612_v45 = vmul.f32 %v5088_v3, %v1597_v21  ;;  %v1613_v46 = vmul.f32 %v5088_v3, %v1598_v30  ;;  %v1614_v48 = vmul.f32 %v5088_v3, %v1599_v19  ;;  %v1615_v50 = vmul.f32 %v5088_v3, %v1600_v36 }
 0x315   : > { %v1616_v51 = vmul.f32 %v5088_v3, %v1601_v26  ;;  %v1617_v52 = vmul.f32 %v5088_v3, %v1602_v38  ;;  %v1618_v53 = vmul.f32 %v5088_v3, %v1603_v42  ;;  %v1619_v56 = vmul.f32 %v5088_v3, %v1604_v41 }
 0x316   : > { %v1627_v57 = vadd.f32 %v5089_v43, %v1612_v45  ;;  %v1628_v60 = vadd.f32 %v5089_v43, %v1613_v46  ;;  %v1629_v61 = vadd.f32 %v5089_v43, %v1614_v48  ;;  %v6610_v63 = vadd.f32 %v5089_v43, %v1615_v50 }
 0x317   : > { %v6612_v54 = vadd.f32 %v5089_v43, %v1616_v51  ;;  %v6614_v2 = vadd.f32 %v5089_v43, %v1617_v52  ;;  %v6616_v5 = vadd.f32 %v5089_v43, %v1618_v53  ;;  %v6618_v6 = vadd.f32 %v5089_v43, %v1619_v56 }
 0x318   : > { %v1643_v8 = vmul.f32 0.044715, %v1627_v57  ;;  %v1644_v9 = vmul.f32 0.044715, %v1628_v60  ;;  %v1645_v10 = vmul.f32 0.044715, %v1629_v61 }
 0x319   : > { %v1646_v11 = vmul.f32 0.044715, %v6610_v63  ;;  %v1647_v12 = vmul.f32 0.044715, %v6612_v54  ;;  %v1648_v13 = vmul.f32 0.044715, %v6614_v2 }
 0x31a   : > { %v1649_v14 = vmul.f32 0.044715, %v6616_v5  ;;  %v1650_v15 = vmul.f32 0.044715, %v6618_v6  ;;  %v1651_v16 = vmul.f32 %v1643_v8, %v1627_v57  ;;  %v1652_v17 = vmul.f32 %v1644_v9, %v1628_v60 }
 0x31b   : > { %v1653_v20 = vmul.f32 %v1645_v10, %v1629_v61  ;;  %v1654_v22 = vmul.f32 %v1646_v11, %v6610_v63  ;;  %v1655_v23 = vmul.f32 %v1647_v12, %v6612_v54  ;;  %v1656_v24 = vmul.f32 %v1648_v13, %v6614_v2 }
 0x31c   : > { %v1657_v25 = vmul.f32 %v1649_v14, %v6616_v5  ;;  %v1658_v27 = vmul.f32 %v1650_v15, %v6618_v6  ;;  %v1659_v28 = vmul.f32 %v1651_v16, %v1627_v57  ;;  %v1660_v32 = vmul.f32 %v1652_v17, %v1628_v60 }
 0x31d   : > { %v1661_v34 = vmul.f32 %v1653_v20, %v1629_v61  ;;  %v1662_v1 = vmul.f32 %v1654_v22, %v6610_v63  ;;  %v1663_v4 = vmul.f32 %v1655_v23, %v6612_v54  ;;  %v1664_v59 = vmul.f32 %v1656_v24, %v6614_v2 }
 0x31e   : > { %v1665_v3 = vmul.f32 %v1657_v25, %v6616_v5  ;;  %v1666_v21 = vmul.f32 %v1658_v27, %v6618_v6  ;;  %v1667_v30 = vadd.f32 %v1659_v28, %v1627_v57  ;;  %v1668_v19 = vadd.f32 %v1660_v32, %v1628_v60 }
 0x31f   : > { %v1669_v36 = vadd.f32 %v1661_v34, %v1629_v61  ;;  %v1670_v26 = vadd.f32 %v1662_v1, %v6610_v63  ;;  %v1671_v38 = vadd.f32 %v1663_v4, %v6612_v54  ;;  %v1672_v42 = vadd.f32 %v1664_v59, %v6614_v2 }
 0x320   : > { %v1673_v41 = vadd.f32 %v1665_v3, %v6616_v5  ;;  %v1675_v43 = vmul.f32 0.7978846, %v1667_v30  ;;  %v1676_v45 = vmul.f32 0.7978846, %v1668_v19  ;;  %v1674_v46 = vadd.f32 %v1666_v21, %v6618_v6 }
 0x321   : > { %v1677_v48 = vmul.f32 0.7978846, %v1669_v36  ;;  %v1678_v50 = vmul.f32 0.7978846, %v1670_v26  ;;  %v1679_v51 = vmul.f32 0.7978846, %v1671_v38 }
 0x322   : > { %6102 = vtanh.f32 %v1675_v43  ;;  %v1680_v52 = vmul.f32 0.7978846, %v1672_v42  ;;  %v1681_v53 = vmul.f32 0.7978846, %v1673_v41  ;;  %v1682_v56 = vmul.f32 0.7978846, %v1674_v46 }
 0x323   : > { %6104 = vtanh.f32 %v1676_v45  ;;  %v1635_v10 = vmul.f32 0.5, %v1627_v57  ;;  %v1636_v13 = vmul.f32 0.5, %v1628_v60  ;;  %v1637_v16 = vmul.f32 0.5, %v1629_v61 }
 0x324   : > { %6106 = vtanh.f32 %v1677_v48  ;;  %v1638_v23 = vmul.f32 0.5, %v6610_v63  ;;  %v1639_v28 = vmul.f32 0.5, %v6612_v54  ;;  %v1640_v60 = vmul.f32 0.5, %v6614_v2 }
 0x325   : > { %6108 = vtanh.f32 %v1678_v50  ;;  %v1641_v59 = vmul.f32 0.5, %v6616_v5  ;;  %v1642_v54 = vmul.f32 0.5, %v6618_v6  ;;  %v1835_v42 = vsel %vm654_vm2, %v6591_v18, 0 }
 0x326   : > { %6110 = vtanh.f32 %v1679_v51 }
 0x327   : > { %6112 = vtanh.f32 %v1680_v52 }
 0x328   : > { %6114 = vtanh.f32 %v1681_v53 }
 0x329   : > { %6116 = vtanh.f32 %v1682_v56 }
 0x32c   : > { %v6103_v8 = vpop.eup %6102 }
 0x32d   : > { %v6105_v9 = vpop.eup %6104  ;;  %v1691_v11 = vadd.f32 1.0, %v6103_v8 }
 0x32e   : > { %v6107_v12 = vpop.eup %6106  ;;  %v1692_v14 = vadd.f32 1.0, %v6105_v9 }
 0x32f   : > { %v6109_v15 = vpop.eup %6108  ;;  %v1693_v17 = vadd.f32 1.0, %v6107_v12  ;;  %v1699_v20 = vmul.f32 %v1691_v11, %v1635_v10  ;;  %v5104_v12 = vld [vmem:[%s7465_s5 + $0x6] sm:$0x3] }
 0x330   : > { %v6111_v22 = vpop.eup %6110  ;;  %v1694_v24 = vadd.f32 1.0, %v6109_v15  ;;  %v1700_v25 = vmul.f32 %v1692_v14, %v1636_v13 }
 0x331   : > { %v6113_v27 = vpop.eup %6112  ;;  %v1695_v32 = vadd.f32 1.0, %v6111_v22  ;;  %v1701_v34 = vmul.f32 %v1693_v17, %v1637_v16  ;;  %1707 = vst.msk [vmem:[#allocation2 + $0x20] sm:$0xff] %vm483_vm0, %v1699_v20 }
 0x332   : > { %v6115_v57 = vpop.eup %6114  ;;  %v1696_v1 = vadd.f32 1.0, %v6113_v27  ;;  %v1702_v4 = vmul.f32 %v1694_v24, %v1638_v23  ;;  %1708 = vst.msk [vmem:[#allocation2 + $0x38] sm:$0xff] %vm483_vm0, %v1700_v25  ;;  %v2031_v25 = vsel %vm654_vm2, %v5104_v12, 0 }
 0x333   : > { %v6117_v61 = vpop.eup %6116  ;;  %v1697_v63 = vadd.f32 1.0, %v6115_v57  ;;  %v1703_v3 = vmul.f32 %v1695_v32, %v1639_v28  ;;  %1709 = vst.msk [vmem:[#allocation2 + $0x50] sm:$0xff] %vm483_vm0, %v1701_v34  ;;  %v5109_v28 = vld [vmem:[%s7465_s5 + $0x8] sm:$0x3] }
 0x334   : > { %v1698_v21 = vadd.f32 1.0, %v6117_v61  ;;  %v1704_v30 = vmul.f32 %v1696_v1, %v1640_v60  ;;  %1710 = vst.msk [vmem:[#allocation2 + $0x68] sm:$0xff] %vm483_vm0, %v1702_v4  ;;  %v2133_v1 = vsel %vm654_vm2, %v5109_v28, 0  ;;  %v5114_v61 = vld [vmem:[%s7465_s5 + $0xa] sm:$0x3] }
 0x335   : > { %v1705_v19 = vmul.f32 %v1697_v63, %v1641_v59  ;;  %1711 = vst.msk [vmem:[#allocation2 + $0x80] sm:$0xff] %vm483_vm0, %v1703_v3 }
 0x336   : > { %v1706_v2 = vmul.f32 %v1698_v21, %v1642_v54  ;;  %1712 = vst.msk [vmem:[#allocation2 + $0x98] sm:$0xff] %vm483_vm0, %v1704_v30  ;;  %v2235_v21 = vsel %vm654_vm2, %v5114_v61, 0 }
 0x337   : > { %1713 = vst.msk [vmem:[#allocation2 + $0xb0] sm:$0xff] %vm483_vm0, %v1705_v19  ;;  %v5119_v19 = vld [vmem:[%s7465_s5 + $0xc] sm:$0x3] }
 0x338   : > { %1714 = vst.msk [vmem:[#allocation2 + $0xc8] sm:$0xff] %vm483_vm0, %v1706_v2  ;;  %v6653_v5 = vld [vmem:[#allocation2 + $0x20] sm:$0xff] }
 0x339   : > { %v1736_v36 = vpack.c.bf16 %v6653_v5, %v6363_v39  ;;  %v6657_v6 = vld [vmem:[#allocation2 + $0x38] sm:$0xff]  ;;  %v5099_v39 = vld [vmem:[%s7465_s5 + $0x4] sm:$0x3] }
 0x33a   : > { %v6659_v26 = vld [vmem:[#allocation2 + $0x50] sm:$0xff]  ;;  %v1716_v48 = vld [vmem:[#allocation2 + $0x1f] sm:$0xff]  ;;  %v1929_v10 = vsel %vm654_vm2, %v5099_v39, 0  ;;  %v2114_v3 = vpack.c.bf16 %v6657_v6, %v6653_v5 }
 0x33b   : > { %5505 = vmatprep.mubr.msk.bf16.mxu1 %vm483_vm0, %v1736_v36  ;;  %v6664_v38 = vpack.c.bf16 %v6659_v26, %v6657_v6  ;;  %v6668_v41 = vld [vmem:[#allocation2 + $0x68] sm:$0xff]  ;;  %v1723_v51 = vpack.c.bf16 %v1716_v48, %v6409_v55  ;;  %v1717_v52 = vld [vmem:[#allocation2 + $0x37] sm:$0xff] }
 0x33c   : > { %v6670_v43 = vld [vmem:[#allocation2 + $0x80] sm:$0xff]  ;;  %v1718_v53 = vld [vmem:[#allocation2 + $0x4f] sm:$0xff]  ;;  %v2012_v57 = vpack.c.bf16 %v1717_v52, %v1716_v48  ;;  %v2115_v54 = vpack.c.bf16 %v6668_v41, %v6659_v26  ;;  %v2337_v26 = vsel %vm654_vm2, %v5119_v19, 0 }
 0x33d   : > { %5506 = vmatmul.mubr.msk.bf16.vlgmr.msra.gmra.mrb[0].mxu1 %vm483_vm0, %v6664_v38  ;;  %v6679_v45 = vpack.c.bf16 %v6670_v43, %v6668_v41  ;;  %v6684_v18 = vld [vmem:[#allocation2 + $0x98] sm:$0xff]  ;;  %v1719_v56 = vld [vmem:[#allocation2 + $0x67] sm:$0xff]  ;;  %v6696_v9 = vpack.c.bf16 %v1718_v53, %v1717_v52 }
 0x33e   : > { %5514 = vmatpush3.bf16.msra.mxu1 %v1835_v42  ;;  %v6686_v46 = vld [vmem:[#allocation2 + $0xb0] sm:$0xff]  ;;  %v1720_v8 = vld [vmem:[#allocation2 + $0x7f] sm:$0xff]  ;;  %v2013_v60 = vpack.c.bf16 %v1719_v56, %v1718_v53  ;;  %v2116_v30 = vpack.c.bf16 %v6684_v18, %v6670_v43  ;;  %v5124_v41 = vld [vmem:[%s7465_s5 + $0xe] sm:$0x3] }
 0x33f   : > { %5509 = vmatprep.mubr.msk.bf16.mxu1 %vm483_vm0, %v6679_v45  ;;  %6040 = vmatprep.subr.msk.bf16.mxu1 %vm654_vm2, %v5099_v39  ;;  %v6690_v50 = vpack.c.bf16 %v6686_v46, %v6684_v18  ;;  %v6699_v11 = vpack.c.bf16 %v1720_v8, %v1719_v56  ;;  %v1721_v55 = vld [vmem:[#allocation2 + $0x97] sm:$0xff]  ;;  %v1722_v13 = vld [vmem:[#allocation2 + $0xaf] sm:$0xff]  ;;  %v1903_v14 = vld [vmem:[#allocation2 + $0x21] sm:$0xff]  ;;  %v2439_v18 = vsel %vm654_vm2, %v5124_v41, 0 }
 0x340   : > { %v6709_v15 = vpack.c.bf16 %v1722_v13, %v1721_v55  ;;  %v1910_v16 = vpack.c.bf16 %v1903_v14, %v6436_v7  ;;  %v1904_v17 = vld [vmem:[#allocation2 + $0x39] sm:$0xff]  ;;  %v1905_v20 = vld [vmem:[#allocation2 + $0x51] sm:$0xff]  ;;  %v1906_v22 = vld [vmem:[#allocation2 + $0x69] sm:$0xff]  ;;  %v2014_v4 = vpack.c.bf16 %v1721_v55, %v1720_v8 }
 0x341   : > { %v1907_v23 = vld [vmem:[#allocation2 + $0x81] sm:$0xff]  ;;  %v6715_v24 = vpack.c.bf16 %v1905_v20, %v1904_v17  ;;  %v1908_v7 = vld [vmem:[#allocation2 + $0x99] sm:$0xff]  ;;  %v1909_v32 = vld [vmem:[#allocation2 + $0xb1] sm:$0xff]  ;;  %v2216_v36 = vpack.c.bf16 %v1904_v17, %v1903_v14  ;;  %v2217_v6 = vpack.c.bf16 %v1906_v22, %v1905_v20 }
 0x342   : > { %v6718_v27 = vpack.c.bf16 %v1907_v23, %v1906_v22  ;;  %v1913_v34 = vpack.c.bf16 %v1909_v32, %v1908_v7  ;;  %v2011_v59 = vld [vmem:[#allocation2 + $0xc7] sm:$0xff]  ;;  %v2218_v42 = vpack.c.bf16 %v1908_v7, %v1907_v23 }
 0x343   : > { %v2015_v63 = vpack.c.bf16 %v2011_v59, %v1722_v13  ;;  %v2113_v2 = vld [vmem:[#allocation2 + $0xc8] sm:$0xff]  ;;  %v2321_v48 = vpack.c.bf16 %v6503_v58, %v2011_v59 }
 0x344   : > { %v2117_v5 = vpack.c.bf16 %v2113_v2, %v6686_v46  ;;  %v2215_v43 = vld [vmem:[#allocation2 + $0xc9] sm:$0xff]  ;;  %v2423_v52 = vpack.c.bf16 %v6514_v62, %v2113_v2 }
 0x345   : > { %5510 = vmatmul.mubr.msk.bf16.gmra.mrb[4].mxu1 %vm483_vm0, %v6690_v50  ;;  %v2219_v39 = vpack.c.bf16 %v2215_v43, %v1909_v32  ;;  %v5129_v46 = vld [vmem:[%s7465_s5 + $0x10] sm:$0x3]  ;;  %v2525_v58 = vpack.c.bf16 %v6523_v49, %v2215_v43 }
 0x346   : > { %5515 = vmatprep.mubr.msk.bf16.mxu1 %vm483_vm0, %v1723_v51  ;;  %v2541_v51 = vsel %vm654_vm2, %v5129_v46, 0 }
 0x34d   : > { %5516 = vmatmul.mubr.msk.bf16.vlgmr.msra.gmra.mrb[0].mxu1 %vm483_vm0, %v6696_v9 }
 0x34e   : > { %5524 = vmatpush3.bf16.msra.mxu1 %v1929_v10  ;;  %5519 = vmatprep.mubr.msk.bf16.mxu1 %vm483_vm0, %v6699_v11 }
 0x34f   : > { %6041 = vmatprep.subr.msk.bf16.mxu1 %vm654_vm2, %v5104_v12 }
 0x355   : > { %5520 = vmatmul.mubr.msk.bf16.gmra.mrb[4].mxu1 %vm483_vm0, %v6709_v15 }
 0x356   : > { %5525 = vmatprep.mubr.msk.bf16.mxu1 %vm483_vm0, %v1910_v16 }
 0x35d   : > { %5526 = vmatmul.mubr.msk.bf16.vlgmr.msra.gmra.mrb[0].mxu1 %vm483_vm0, %v6715_v24 }
 0x35e   : > { %5534 = vmatpush3.bf16.msra.mxu1 %v2031_v25  ;;  %5529 = vmatprep.mubr.msk.bf16.mxu1 %vm483_vm0, %v6718_v27 }
 0x35f   : > { %6042 = vmatprep.subr.msk.bf16.mxu1 %vm654_vm2, %v5109_v28 }
 0x365   : > { %5530 = vmatmul.mubr.msk.bf16.gmra.mrb[4].mxu1 %vm483_vm0, %v1913_v34 }
 0x366   : > { %5535 = vmatprep.mubr.msk.bf16.mxu1 %vm483_vm0, %v2012_v57 }
 0x36d   : > { %5536 = vmatmul.mubr.msk.bf16.vlgmr.msra.gmra.mrb[0].mxu1 %vm483_vm0, %v2013_v60 }
 0x36e   : > { %5544 = vmatpush3.bf16.msra.mxu1 %v2133_v1  ;;  %5539 = vmatprep.mubr.msk.bf16.mxu1 %vm483_vm0, %v2014_v4 }
 0x36f   : > { %6043 = vmatprep.subr.msk.bf16.mxu1 %vm654_vm2, %v5114_v61 }
 0x375   : > { %5540 = vmatmul.mubr.msk.bf16.gmra.mrb[4].mxu1 %vm483_vm0, %v2015_v63 }
 0x376   : > { %5545 = vmatprep.mubr.msk.bf16.mxu1 %vm483_vm0, %v2114_v3 }
 0x37d   : > { %5546 = vmatmul.mubr.msk.bf16.vlgmr.msra.gmra.mrb[0].mxu1 %vm483_vm0, %v2115_v54 }
 0x37e   : > { %5554 = vmatpush3.bf16.msra.mxu1 %v2235_v21  ;;  %5549 = vmatprep.mubr.msk.bf16.mxu1 %vm483_vm0, %v2116_v30 }
 0x37f   : > { %6044 = vmatprep.subr.msk.bf16.mxu1 %vm654_vm2, %v5119_v19 }
 0x385   : > { %5550 = vmatmul.mubr.msk.bf16.gmra.mrb[4].mxu1 %vm483_vm0, %v2117_v5 }
 0x386   : > { %5555 = vmatprep.mubr.msk.bf16.mxu1 %vm483_vm0, %v2216_v36 }
 0x38d   : > { %5556 = vmatmul.mubr.msk.bf16.vlgmr.msra.gmra.mrb[0].mxu1 %vm483_vm0, %v2217_v6 }
 0x38e   : > { %5564 = vmatpush3.bf16.msra.mxu1 %v2337_v26  ;;  %5559 = vmatprep.mubr.msk.bf16.mxu1 %vm483_vm0, %v2218_v42 }
 0x38f   : > { %6045 = vmatprep.subr.msk.bf16.mxu1 %vm654_vm2, %v5124_v41 }
 0x395   : > { %5560 = vmatmul.mubr.msk.bf16.gmra.mrb[4].mxu1 %vm483_vm0, %v2219_v39 }
 0x396   : > { %5565 = vmatprep.mubr.msk.bf16.mxu1 %vm483_vm0, %v6696_v9 }
 0x39d   : > { %5566 = vmatmul.mubr.msk.bf16.vlgmr.msra.gmra.mrb[0].mxu1 %vm483_vm0, %v6699_v11 }
 0x39e   : > { %5574 = vmatpush3.bf16.msra.mxu1 %v2439_v18  ;;  %5569 = vmatprep.mubr.msk.bf16.mxu1 %vm483_vm0, %v6709_v15 }
 0x39f   : > { %6046 = vmatprep.subr.msk.bf16.mxu1 %vm654_vm2, %v5129_v46 }
 0x3a5   : > { %5570 = vmatmul.mubr.msk.bf16.gmra.mrb[4].mxu1 %vm483_vm0, %v2321_v48 }
 0x3a6   : > { %5575 = vmatprep.mubr.msk.bf16.mxu1 %vm483_vm0, %v6664_v38 }
 0x3ad   : > { %5576 = vmatmul.mubr.msk.bf16.vlgmr.msra.gmra.mrb[0].mxu1 %vm483_vm0, %v6679_v45 }
 0x3ae   : > { %5584 = vmatpush3.bf16.msra.mxu1 %v2541_v51  ;;  %5579 = vmatprep.mubr.msk.bf16.mxu1 %vm483_vm0, %v6690_v50 }
 0x3b5   : > { %5580 = vmatmul.mubr.msk.bf16.gmra.mrb[4].mxu1 %vm483_vm0, %v2423_v52 }
 0x3b6   : > { %5585 = vmatprep.mubr.msk.bf16.mxu1 %vm483_vm0, %v6715_v24 }
 0x3bd   : > { %5586 = vmatmul.mubr.msk.bf16.vlgmr.msra.gmra.mrb[0].mxu1 %vm483_vm0, %v6718_v27 }
 0x3be   : > { %5589 = vmatprep.mubr.msk.bf16.mxu1 %vm483_vm0, %v1913_v34 }
 0x3c5   : > { %5590 = vmatmul.mubr.msk.bf16.gmra.mrb[4].mxu1 %vm483_vm0, %v2525_v58 }
 0x490   : > { %v6792_v38 = vpop.f32.mrb[0].mxu1 }
 0x491   : > { %v6794_v45 = vpop.f32.mrb[1].mxu1  ;;  %v2645_v56 = vmul.f32 %v6792_v38, %v6792_v38  ;;  %v2619_v11 = vsel %vm483_vm0, %v6792_v38, 0.0 }
 0x492   : > { %v2643_v62 = vmul.f32 %v6794_v45, %v6794_v45  ;;  %v6798_v50 = vpop.f32.mrb[2].mxu1  ;;  %v2616_v8 = vsel %vm483_vm0, %v6794_v45, 0.0 }
 0x493   : > { %v6800_v53 = vpop.f32.mrb[3].mxu1  ;;  %v2646_v55 = vmul.f32 %v6798_v50, %v6798_v50  ;;  %v2654_v16 = vsel %vm483_vm0, %v2645_v56, 0.0  ;;  %v2621_v17 = vsel %vm483_vm0, %v6798_v50, 0.0 }
 0x494   : > { %v2617_v49 = vsel %vm483_vm0, %v6800_v53, 0.0  ;;  %v2644_v9 = vmul.f32 %v6800_v53, %v6800_v53  ;;  %v2651_v12 = vsel %vm483_vm0, %v2643_v62, 0.0 }
 0x495   : > { %v2618_v10 = vadd.f32 %v2617_v49, %v2616_v8  ;;  %v2656_v25 = vsel %vm483_vm0, %v2646_v55, 0.0 }
 0x496   : > { %v2652_v13 = vsel %vm483_vm0, %v2644_v9, 0.0 }
 0x497   : > { %v2620_v14 = vadd.f32 %v2619_v11, %v2618_v10  ;;  %v2653_v15 = vadd.f32 %v2652_v13, %v2651_v12  ;;  %v5136_v10 = vld [vmem:[%s7468_s8 + $0x2] sm:$0x3]  ;;  %v6856_v12 = vld [vmem:[%s7468_s8] sm:$0x3] }
 0x498   : > { %v6819_v20 = vpop.f32.mrb[4].mxu1  ;;  %6047 = vmatprep.subr.msk.bf16.mxu0 %vm654_vm2, %v5136_v10  ;;  %v2861_v11 = vsel %vm654_vm2, %v5136_v10, 0 }
 0x499   : > { %v2655_v22 = vadd.f32 %v2654_v16, %v2653_v15  ;;  %v6821_v23 = vpop.f32.mrb[5].mxu1  ;;  %v2622_v24 = vadd.f32 %v2621_v17, %v2620_v14  ;;  %v2649_v60 = vmul.f32 %v6819_v20, %v6819_v20  ;;  %v2627_v3 = vsel %vm483_vm0, %v6819_v20, 0.0  ;;  %5594 = vmatpush3.bf16.msra.mxu0 %v2861_v11 }
 0x49a   : > { %v2623_v27 = vsel %vm483_vm0, %v6821_v23, 0.0  ;;  %v2647_v28 = vmul.f32 %v6821_v23, %v6821_v23  ;;  %v6828_v7 = vpop.f32.mrb[6].mxu1  ;;  %6048 = vmatprep.subr.msk.bf16.mxu0 %vm654_vm2, %v6856_v12 }
 0x49b   : > { %v2624_v32 = vadd.f32 %v2623_v27, %v2622_v24  ;;  %v2657_v34 = vadd.f32 %v2656_v25, %v2655_v22  ;;  %v6830_v57 = vpop.f32.mrb[7].mxu1  ;;  %v2650_v54 = vmul.f32 %v6828_v7, %v6828_v7  ;;  %v2629_v2 = vsel %vm483_vm0, %v6828_v7, 0.0 }
 0x49c   : > { %v2658_v1 = vsel %vm483_vm0, %v2647_v28, 0.0  ;;  %v2625_v4 = vsel %vm483_vm0, %v6830_v57, 0.0  ;;  %v2648_v61 = vmul.f32 %v6830_v57, %v6830_v57  ;;  %v2662_v5 = vsel %vm483_vm0, %v2649_v60, 0.0  ;;  %v5135_v60 = vld [vmem:[%s7467_s7] ss:$0 sm:$0xff] }
 0x49d   : > { %v2659_v59 = vadd.f32 %v2658_v1, %v2657_v34  ;;  %v2626_v63 = vadd.f32 %v2625_v4, %v2624_v32  ;;  %v2664_v26 = vsel %vm483_vm0, %v2650_v54, 0.0 }
 0x49e   : > { %v2660_v21 = vsel %vm483_vm0, %v2648_v61, 0.0 }
 0x49f   : > { %v2628_v30 = vadd.f32 %v2627_v3, %v2626_v63  ;;  %v2661_v19 = vadd.f32 %v2660_v21, %v2659_v59 }
 0x4a1   : > { %v2630_v36 = vadd.f32 %v2629_v2, %v2628_v30  ;;  %v2663_v6 = vadd.f32 %v2662_v5, %v2661_v19 }
 0x4a3   : > { %2631 = vadd.xlane.f32.xlu0 %v2630_v36  ;;  %v2665_v42 = vadd.f32 %v2664_v26, %v2663_v6 }
 0x4a7   : > { %2666 = vadd.xlane.f32.xlu0 %v2665_v42 }
 0x530   : > { %v2632_v41 = vpop.xlane.xlu0 %2631 }
 0x531   : > { %v2633_v43 = vrot.slane %v2632_v41, 4 }
 0x533   : > { %v2634_v39 = vadd.f32 %v2633_v43, %v2632_v41 }
 0x534   : > { %v2667_v18 = vpop.xlane.xlu0 %2666 }
 0x535   : > { %v2635_v46 = vrot.slane %v2634_v39, 2  ;;  %v2668_v48 = vrot.slane %v2667_v18, 4 }
 0x537   : > { %v2669_v51 = vadd.f32 %v2668_v48, %v2667_v18  ;;  %v2636_v52 = vadd.f32 %v2635_v46, %v2634_v39 }
 0x539   : > { %v2670_v58 = vrot.slane %v2669_v51, 2  ;;  %v2637_v62 = vrot.slane %v2636_v52, 1 }
 0x53b   : > { %v2638_v56 = vadd.f32 %v2637_v62, %v2636_v52  ;;  %v2671_v8 = vadd.f32 %v2670_v58, %v2669_v51 }
 0x53d   : > { %6071 = vpush %v2638_v56  ;;  %v2672_v49 = vrot.slane %v2671_v8, 1 }
 0x53f   : > { %v2673_v9 = vadd.f32 %v2672_v49, %v2671_v8 }
 0x541   : > { %6073 = vpush %v2673_v9 }
 0x56e   : > { %s6072_s20 = spop %6071 }
 0x56f   : > { %s2642_s22 = smul.f32 0.00390625, %s6072_s20 }
 0x571   : > { %v2681_v55 = vstv %s2642_s22  ;;  %s2678_s23 = smul.f32 %s2642_s22, %s2642_s22 }
 0x572   : > { %s6074_s24 = spop %6073  ;;  %v2682_v13 = vsub.f32 %v6794_v45, %v2681_v55  ;;  %v2683_v14 = vsub.f32 %v6800_v53, %v2681_v55  ;;  %v2684_v15 = vsub.f32 %v6792_v38, %v2681_v55  ;;  %v2685_v16 = vsub.f32 %v6798_v50, %v2681_v55  ;;  %v5134_v50 = vld [vmem:[%s7466_s6] ss:$0 sm:$0xff] }
 0x573   : > { %s2677_s25 = smul.f32 0.00390625, %s6074_s24  ;;  %v2686_v17 = vsub.f32 %v6821_v23, %v2681_v55  ;;  %v2687_v22 = vsub.f32 %v6830_v57, %v2681_v55  ;;  %v2688_v24 = vsub.f32 %v6819_v20, %v2681_v55  ;;  %v2689_v25 = vsub.f32 %v6828_v7, %v2681_v55 }
 0x575   : > { %s2679_s26 = ssub.f32 %s2677_s25, %s2678_s23 }
 0x577   : > { %s2680_s27 = smax.f32 %s6166_s21, %s2679_s26 }
 0x578   : > { %s2690_s28 = sadd.f32 1e-05, %s2680_s27 }
 0x57a   : > { %v2691_v45 = vstv %s2690_s28 }
 0x57b   : > { %6118 = vrsqrt.f32 %v2691_v45 }
 0x585   : > { %v6119_v53 = vpop.eup %6118 }
 0x586   : > { %6075 = vpush %v6119_v53 }
 0x5b7   : > { %s6076_s15 = spop %6075 }
 0x5b8   : > { %v2694_v38 = vstv %s6076_s15 }
 0x5b9   : > { %v2695_v23 = vmul.f32 %v2694_v38, %v2682_v13  ;;  %v2696_v27 = vmul.f32 %v2694_v38, %v2683_v14  ;;  %v2697_v28 = vmul.f32 %v2694_v38, %v2684_v15  ;;  %v2698_v20 = vmul.f32 %v2694_v38, %v2685_v16 }
 0x5ba   : > { %v2699_v32 = vmul.f32 %v2694_v38, %v2686_v17  ;;  %v2700_v7 = vmul.f32 %v2694_v38, %v2687_v22  ;;  %v2701_v34 = vmul.f32 %v2694_v38, %v2688_v24  ;;  %v2702_v57 = vmul.f32 %v2694_v38, %v2689_v25 }
 0x5bb   : > { %v2710_v1 = vmul.f32 %v5134_v50, %v2695_v23  ;;  %v2711_v4 = vmul.f32 %v5134_v50, %v2696_v27  ;;  %v2712_v61 = vmul.f32 %v5134_v50, %v2697_v28  ;;  %v2713_v59 = vmul.f32 %v5134_v50, %v2698_v20 }
 0x5bc   : > { %v2714_v63 = vmul.f32 %v5134_v50, %v2699_v32  ;;  %v2715_v3 = vmul.f32 %v5134_v50, %v2700_v7  ;;  %v2716_v54 = vmul.f32 %v5134_v50, %v2701_v34  ;;  %v2717_v21 = vmul.f32 %v5134_v50, %v2702_v57 }
 0x5bd   : > { %v2725_v30 = vadd.f32 %v5135_v60, %v2710_v1  ;;  %v2726_v19 = vadd.f32 %v5135_v60, %v2711_v4  ;;  %v2727_v2 = vadd.f32 %v5135_v60, %v2712_v61  ;;  %v2728_v5 = vadd.f32 %v5135_v60, %v2713_v59 }
 0x5be   : > { %v2729_v36 = vadd.f32 %v5135_v60, %v2714_v63  ;;  %v2730_v6 = vadd.f32 %v5135_v60, %v2715_v3  ;;  %v2731_v26 = vadd.f32 %v5135_v60, %v2716_v54  ;;  %v2732_v42 = vadd.f32 %v5135_v60, %v2717_v21 }
 0x5bf   : > { %v2733_v41 = vadd.f32 %v2725_v30, %v6347_v31  ;;  %v2734_v43 = vadd.f32 %v2726_v19, %v6355_v35  ;;  %v2735_v39 = vadd.f32 %v2727_v2, %v6345_v29  ;;  %v6879_v18 = vadd.f32 %v2728_v5, %v6353_v33 }
 0x5c0   : > { %v6882_v46 = vadd.f32 %v2729_v36, %v6365_v40  ;;  %v6885_v48 = vadd.f32 %v2730_v6, %v6361_v37  ;;  %v6888_v51 = vadd.f32 %v2731_v26, %v6379_v47  ;;  %v6891_v52 = vadd.f32 %v2732_v42, %v6375_v44 }
 0x5c1   : > { %v2749_v31 = vmul.f32 0.044715, %v2733_v41  ;;  %v2750_v58 = vmul.f32 0.044715, %v2734_v43  ;;  %v2751_v35 = vmul.f32 0.044715, %v2735_v39 }
 0x5c2   : > { %v2752_v29 = vmul.f32 0.044715, %v6879_v18  ;;  %v2753_v33 = vmul.f32 0.044715, %v6882_v46  ;;  %v2754_v62 = vmul.f32 0.044715, %v6885_v48 }
 0x5c3   : > { %v2755_v40 = vmul.f32 0.044715, %v6888_v51  ;;  %v2756_v37 = vmul.f32 0.044715, %v6891_v52  ;;  %v2757_v56 = vmul.f32 %v2749_v31, %v2733_v41  ;;  %v2758_v8 = vmul.f32 %v2750_v58, %v2734_v43 }
 0x5c4   : > { %v2759_v47 = vmul.f32 %v2751_v35, %v2735_v39  ;;  %v2760_v49 = vmul.f32 %v2752_v29, %v6879_v18  ;;  %v2761_v44 = vmul.f32 %v2753_v33, %v6882_v46  ;;  %v2762_v9 = vmul.f32 %v2754_v62, %v6885_v48 }
 0x5c5   : > { %v2763_v10 = vmul.f32 %v2755_v40, %v6888_v51  ;;  %v2764_v11 = vmul.f32 %v2756_v37, %v6891_v52  ;;  %v2765_v55 = vmul.f32 %v2757_v56, %v2733_v41  ;;  %v2766_v13 = vmul.f32 %v2758_v8, %v2734_v43 }
 0x5c6   : > { %v2767_v14 = vmul.f32 %v2759_v47, %v2735_v39  ;;  %v2768_v15 = vmul.f32 %v2760_v49, %v6879_v18  ;;  %v2769_v16 = vmul.f32 %v2761_v44, %v6882_v46  ;;  %v2770_v17 = vmul.f32 %v2762_v9, %v6885_v48  ;;  %v2834_v44 = vld [vmem:[#allocation2 + $0x8] sm:$0xff] }
 0x5c7   : > { %v2771_v22 = vmul.f32 %v2763_v10, %v6888_v51  ;;  %v2772_v24 = vmul.f32 %v2764_v11, %v6891_v52  ;;  %v2773_v25 = vadd.f32 %v2765_v55, %v2733_v41  ;;  %v2774_v45 = vadd.f32 %v2766_v13, %v2734_v43 }
 0x5c8   : > { %v2775_v53 = vadd.f32 %v2767_v14, %v2735_v39  ;;  %v2776_v38 = vadd.f32 %v2768_v15, %v6879_v18  ;;  %v2777_v50 = vadd.f32 %v2769_v16, %v6882_v46  ;;  %v2778_v23 = vadd.f32 %v2770_v17, %v6885_v48  ;;  %v5145_v15 = vld [vmem:[%s7468_s8 + $0x4] sm:$0x3] }
 0x5c9   : > { %v2779_v27 = vadd.f32 %v2771_v22, %v6888_v51  ;;  %v2781_v28 = vmul.f32 0.7978846, %v2773_v25  ;;  %v2782_v20 = vmul.f32 0.7978846, %v2774_v45  ;;  %v2780_v32 = vadd.f32 %v2772_v24, %v6891_v52  ;;  %v2821_v22 = vld [vmem:[#allocation2 + $0x7] sm:$0xff] }
 0x5ca   : > { %v2783_v7 = vmul.f32 0.7978846, %v2775_v53  ;;  %v2784_v34 = vmul.f32 0.7978846, %v2776_v38  ;;  %v2785_v57 = vmul.f32 0.7978846, %v2777_v50 }
 0x5cb   : > { %6120 = vtanh.f32 %v2781_v28  ;;  %v2786_v60 = vmul.f32 0.7978846, %v2778_v23  ;;  %v2787_v1 = vmul.f32 0.7978846, %v2779_v27  ;;  %v2788_v4 = vmul.f32 0.7978846, %v2780_v32 }
 0x5cc   : > { %6122 = vtanh.f32 %v2782_v20  ;;  %v2741_v63 = vmul.f32 0.5, %v2733_v41  ;;  %v2742_v21 = vmul.f32 0.5, %v2734_v43  ;;  %v2743_v2 = vmul.f32 0.5, %v2735_v39  ;;  %v5150_v32 = vld [vmem:[%s7468_s8 + $0x6] sm:$0x3] }
 0x5cd   : > { %6124 = vtanh.f32 %v2783_v7  ;;  %v2744_v26 = vmul.f32 0.5, %v6879_v18  ;;  %v2745_v35 = vmul.f32 0.5, %v6882_v46  ;;  %v2746_v43 = vmul.f32 0.5, %v6885_v48 }
 0x5ce   : > { %6126 = vtanh.f32 %v2784_v34  ;;  %v2747_v37 = vmul.f32 0.5, %v6888_v51  ;;  %v2748_v46 = vmul.f32 0.5, %v6891_v52  ;;  %v2941_v55 = vsel %vm654_vm2, %v6856_v12, 0 }
 0x5cf   : > { %6128 = vtanh.f32 %v2785_v57  ;;  %v3035_v28 = vsel %vm654_vm2, %v5145_v15, 0  ;;  %v3008_v57 = vld [vmem:[#allocation2 + $0x9] sm:$0xff] }
 0x5d0   : > { %6130 = vtanh.f32 %v2786_v60 }
 0x5d1   : > { %6132 = vtanh.f32 %v2787_v1 }
 0x5d2   : > { %6134 = vtanh.f32 %v2788_v4 }
 0x5d5   : > { %v6121_v61 = vpop.eup %6120 }
 0x5d6   : > { %v6123_v59 = vpop.eup %6122  ;;  %v2797_v3 = vadd.f32 1.0, %v6121_v61 }
 0x5d7   : > { %v6125_v54 = vpop.eup %6124  ;;  %v2798_v30 = vadd.f32 1.0, %v6123_v59 }
 0x5d8   : > { %v6127_v19 = vpop.eup %6126  ;;  %v2799_v5 = vadd.f32 1.0, %v6125_v54  ;;  %v2805_v36 = vmul.f32 %v2797_v3, %v2741_v63 }
 0x5d9   : > { %v6129_v6 = vpop.eup %6128  ;;  %v2800_v42 = vadd.f32 1.0, %v6127_v19  ;;  %v2806_v31 = vmul.f32 %v2798_v30, %v2742_v21  ;;  %v3137_v21 = vsel %vm654_vm2, %v5150_v32, 0  ;;  %v5155_v19 = vld [vmem:[%s7468_s8 + $0x8] sm:$0x3] }
 0x5da   : > { %v6131_v58 = vpop.eup %6130  ;;  %v2801_v29 = vadd.f32 1.0, %v6129_v6  ;;  %v2807_v33 = vmul.f32 %v2799_v5, %v2743_v2  ;;  %2813 = vst.msk [vmem:[#allocation2 + $0x20] sm:$0xff] %vm483_vm0, %v2805_v36 }
 0x5db   : > { %v6133_v41 = vpop.eup %6132  ;;  %v2802_v62 = vadd.f32 1.0, %v6131_v58  ;;  %v2808_v40 = vmul.f32 %v2800_v42, %v2744_v26  ;;  %2814 = vst.msk [vmem:[#allocation2 + $0x38] sm:$0xff] %vm483_vm0, %v2806_v31  ;;  %v3239_v42 = vsel %vm654_vm2, %v5155_v19, 0  ;;  %v5160_v58 = vld [vmem:[%s7468_s8 + $0xa] sm:$0x3] }
 0x5dc   : > { %v6135_v39 = vpop.eup %6134  ;;  %v2803_v18 = vadd.f32 1.0, %v6133_v41  ;;  %v2809_v56 = vmul.f32 %v2801_v29, %v2745_v35  ;;  %2815 = vst.msk [vmem:[#allocation2 + $0x50] sm:$0xff] %vm483_vm0, %v2807_v33 }
 0x5dd   : > { %v2804_v8 = vadd.f32 1.0, %v6135_v39  ;;  %v2810_v47 = vmul.f32 %v2802_v62, %v2746_v43  ;;  %2816 = vst.msk [vmem:[#allocation2 + $0x68] sm:$0xff] %vm483_vm0, %v2808_v40  ;;  %v3341_v43 = vsel %vm654_vm2, %v5160_v58, 0  ;;  %v5165_v40 = vld [vmem:[%s7468_s8 + $0xc] sm:$0x3] }
 0x5de   : > { %v2811_v49 = vmul.f32 %v2803_v18, %v2747_v37  ;;  %2817 = vst.msk [vmem:[#allocation2 + $0x80] sm:$0xff] %vm483_vm0, %v2809_v56 }
 0x5df   : > { %v2812_v48 = vmul.f32 %v2804_v8, %v2748_v46  ;;  %2818 = vst.msk [vmem:[#allocation2 + $0x98] sm:$0xff] %vm483_vm0, %v2810_v47  ;;  %v3443_v46 = vsel %vm654_vm2, %v5165_v40, 0  ;;  %v5170_v47 = vld [vmem:[%s7468_s8 + $0xe] sm:$0x3] }
 0x5e0   : > { %2819 = vst.msk [vmem:[#allocation2 + $0xb0] sm:$0xff] %vm483_vm0, %v2811_v49 }
 0x5e1   : > { %2820 = vst.msk [vmem:[#allocation2 + $0xc8] sm:$0xff] %vm483_vm0, %v2812_v48  ;;  %v6926_v51 = vld [vmem:[#allocation2 + $0x20] sm:$0xff] }
 0x5e2   : > { %v2842_v9 = vpack.c.bf16 %v6926_v51, %v2834_v44  ;;  %v6929_v52 = vld [vmem:[#allocation2 + $0x38] sm:$0xff]  ;;  %v3009_v60 = vld [vmem:[#allocation2 + $0x21] sm:$0xff]  ;;  %v3545_v44 = vsel %vm654_vm2, %v5170_v47, 0 }
 0x5e3   : > { %v6931_v10 = vld [vmem:[#allocation2 + $0x50] sm:$0xff]  ;;  %v2822_v24 = vld [vmem:[#allocation2 + $0x1f] sm:$0xff]  ;;  %v3016_v4 = vpack.c.bf16 %v3009_v60, %v3008_v57  ;;  %v3220_v33 = vpack.c.bf16 %v6929_v52, %v6926_v51 }
 0x5e4   : > { %5595 = vmatprep.mubr.msk.bf16.mxu0 %vm483_vm0, %v2842_v9  ;;  %v6936_v11 = vpack.c.bf16 %v6931_v10, %v6929_v52  ;;  %v6940_v13 = vld [vmem:[#allocation2 + $0x68] sm:$0xff]  ;;  %v2829_v45 = vpack.c.bf16 %v2822_v24, %v2821_v22  ;;  %v2823_v53 = vld [vmem:[#allocation2 + $0x37] sm:$0xff]  ;;  %v5175_v51 = vld [vmem:[%s7468_s8 + $0x10] sm:$0x3] }
 0x5e5   : > { %v6942_v14 = vld [vmem:[#allocation2 + $0x80] sm:$0xff]  ;;  %v2824_v38 = vld [vmem:[#allocation2 + $0x4f] sm:$0xff]  ;;  %v3118_v6 = vpack.c.bf16 %v2823_v53, %v2822_v24  ;;  %v3221_v41 = vpack.c.bf16 %v6940_v13, %v6931_v10  ;;  %v3647_v10 = vsel %vm654_vm2, %v5175_v51, 0 }
 0x5e6   : > { %5596 = vmatmul.mubr.msk.bf16.vlgmr.msra.gmra.mrb[8].mxu0 %vm483_vm0, %v6936_v11  ;;  %v6951_v16 = vpack.c.bf16 %v6942_v14, %v6940_v13  ;;  %v6956_v12 = vld [vmem:[#allocation2 + $0x98] sm:$0xff]  ;;  %v2825_v50 = vld [vmem:[#allocation2 + $0x67] sm:$0xff]  ;;  %v6975_v27 = vpack.c.bf16 %v2824_v38, %v2823_v53 }
 0x5e7   : > { %5604 = vmatpush3.bf16.msra.mxu0 %v2941_v55  ;;  %v6958_v17 = vld [vmem:[#allocation2 + $0xb0] sm:$0xff]  ;;  %v2826_v23 = vld [vmem:[#allocation2 + $0x7f] sm:$0xff]  ;;  %v3119_v26 = vpack.c.bf16 %v2825_v50, %v2824_v38  ;;  %v3222_v62 = vpack.c.bf16 %v6956_v12, %v6942_v14 }
 0x5e8   : > { %5599 = vmatprep.mubr.msk.bf16.mxu0 %vm483_vm0, %v6951_v16  ;;  %6049 = vmatprep.subr.msk.bf16.mxu0 %vm654_vm2, %v5145_v15  ;;  %v6962_v25 = vpack.c.bf16 %v6958_v17, %v6956_v12  ;;  %v6978_v20 = vpack.c.bf16 %v2826_v23, %v2825_v50  ;;  %v2827_v7 = vld [vmem:[#allocation2 + $0x97] sm:$0xff]  ;;  %v2828_v34 = vld [vmem:[#allocation2 + $0xaf] sm:$0xff]  ;;  %v3013_v3 = vld [vmem:[#allocation2 + $0x81] sm:$0xff] }
 0x5e9   : > { %v6988_v1 = vpack.c.bf16 %v2828_v34, %v2827_v7  ;;  %v3010_v61 = vld [vmem:[#allocation2 + $0x39] sm:$0xff]  ;;  %v3011_v59 = vld [vmem:[#allocation2 + $0x51] sm:$0xff]  ;;  %v3012_v63 = vld [vmem:[#allocation2 + $0x69] sm:$0xff]  ;;  %v3120_v31 = vpack.c.bf16 %v2827_v7, %v2826_v23 }
 0x5ea   : > { %v6993_v54 = vpack.c.bf16 %v3011_v59, %v3010_v61  ;;  %v6996_v30 = vpack.c.bf16 %v3013_v3, %v3012_v63  ;;  %v3014_v2 = vld [vmem:[#allocation2 + $0x99] sm:$0xff]  ;;  %v3015_v5 = vld [vmem:[#allocation2 + $0xb1] sm:$0xff]  ;;  %v3117_v35 = vld [vmem:[#allocation2 + $0xc7] sm:$0xff]  ;;  %v3322_v18 = vpack.c.bf16 %v3010_v61, %v3009_v60  ;;  %v3323_v56 = vpack.c.bf16 %v3012_v63, %v3011_v59 }
 0x5eb   : > { %v3019_v36 = vpack.c.bf16 %v3015_v5, %v3014_v2  ;;  %v3121_v29 = vpack.c.bf16 %v3117_v35, %v2828_v34  ;;  %v3219_v39 = vld [vmem:[#allocation2 + $0xc8] sm:$0xff]  ;;  %v3324_v8 = vpack.c.bf16 %v3014_v2, %v3013_v3  ;;  %v3423_v9 = vld [vmem:[#allocation2 + $0xdf] sm:$0xff] }
 0x5ec   : > { %v3223_v37 = vpack.c.bf16 %v3219_v39, %v6958_v17  ;;  %v3321_v49 = vld [vmem:[#allocation2 + $0xc9] sm:$0xff]  ;;  %v3427_v52 = vpack.c.bf16 %v3423_v9, %v3117_v35  ;;  %v3525_v55 = vld [vmem:[#allocation2 + $0xe0] sm:$0xff] }
 0x5ed   : > { %v3325_v48 = vpack.c.bf16 %v3321_v49, %v3015_v5  ;;  %v3529_v13 = vpack.c.bf16 %v3525_v55, %v3219_v39 }
 0x5ee   : > { %5600 = vmatmul.mubr.msk.bf16.gmra.mrb[12].mxu0 %vm483_vm0, %v6962_v25 }
 0x5ef   : > { %5605 = vmatprep.mubr.msk.bf16.mxu0 %vm483_vm0, %v2829_v45 }
 0x5f6   : > { %5606 = vmatmul.mubr.msk.bf16.vlgmr.msra.gmra.mrb[8].mxu0 %vm483_vm0, %v6975_v27 }
 0x5f7   : > { %5614 = vmatpush3.bf16.msra.mxu0 %v3035_v28  ;;  %5609 = vmatprep.mubr.msk.bf16.mxu0 %vm483_vm0, %v6978_v20 }
 0x5f8   : > { %6050 = vmatprep.subr.msk.bf16.mxu0 %vm654_vm2, %v5150_v32 }
 0x5fe   : > { %5610 = vmatmul.mubr.msk.bf16.gmra.mrb[12].mxu0 %vm483_vm0, %v6988_v1 }
 0x5ff   : > { %5615 = vmatprep.mubr.msk.bf16.mxu0 %vm483_vm0, %v3016_v4 }
 0x606   : > { %5616 = vmatmul.mubr.msk.bf16.vlgmr.msra.gmra.mrb[8].mxu0 %vm483_vm0, %v6993_v54 }
 0x607   : > { %5624 = vmatpush3.bf16.msra.mxu0 %v3137_v21  ;;  %5619 = vmatprep.mubr.msk.bf16.mxu0 %vm483_vm0, %v6996_v30 }
 0x608   : > { %6051 = vmatprep.subr.msk.bf16.mxu0 %vm654_vm2, %v5155_v19 }
 0x60e   : > { %5620 = vmatmul.mubr.msk.bf16.gmra.mrb[12].mxu0 %vm483_vm0, %v3019_v36 }
 0x60f   : > { %5625 = vmatprep.mubr.msk.bf16.mxu0 %vm483_vm0, %v3118_v6 }
 0x616   : > { %5626 = vmatmul.mubr.msk.bf16.vlgmr.msra.gmra.mrb[8].mxu0 %vm483_vm0, %v3119_v26 }
 0x617   : > { %5634 = vmatpush3.bf16.msra.mxu0 %v3239_v42  ;;  %5629 = vmatprep.mubr.msk.bf16.mxu0 %vm483_vm0, %v3120_v31 }
 0x618   : > { %6052 = vmatprep.subr.msk.bf16.mxu0 %vm654_vm2, %v5160_v58 }
 0x61e   : > { %5630 = vmatmul.mubr.msk.bf16.gmra.mrb[12].mxu0 %vm483_vm0, %v3121_v29 }
 0x61f   : > { %5635 = vmatprep.mubr.msk.bf16.mxu0 %vm483_vm0, %v3220_v33 }
 0x626   : > { %5636 = vmatmul.mubr.msk.bf16.vlgmr.msra.gmra.mrb[8].mxu0 %vm483_vm0, %v3221_v41 }
 0x627   : > { %5644 = vmatpush3.bf16.msra.mxu0 %v3341_v43  ;;  %5639 = vmatprep.mubr.msk.bf16.mxu0 %vm483_vm0, %v3222_v62 }
 0x628   : > { %6053 = vmatprep.subr.msk.bf16.mxu0 %vm654_vm2, %v5165_v40 }
 0x62e   : > { %5640 = vmatmul.mubr.msk.bf16.gmra.mrb[12].mxu0 %vm483_vm0, %v3223_v37 }
 0x62f   : > { %5645 = vmatprep.mubr.msk.bf16.mxu0 %vm483_vm0, %v3322_v18 }
 0x636   : > { %5646 = vmatmul.mubr.msk.bf16.vlgmr.msra.gmra.mrb[8].mxu0 %vm483_vm0, %v3323_v56 }
 0x637   : > { %5654 = vmatpush3.bf16.msra.mxu0 %v3443_v46  ;;  %5649 = vmatprep.mubr.msk.bf16.mxu0 %vm483_vm0, %v3324_v8 }
 0x638   : > { %6054 = vmatprep.subr.msk.bf16.mxu0 %vm654_vm2, %v5170_v47 }
 0x63e   : > { %5650 = vmatmul.mubr.msk.bf16.gmra.mrb[12].mxu0 %vm483_vm0, %v3325_v48 }
 0x63f   : > { %5655 = vmatprep.mubr.msk.bf16.mxu0 %vm483_vm0, %v6975_v27 }
 0x646   : > { %5656 = vmatmul.mubr.msk.bf16.vlgmr.msra.gmra.mrb[8].mxu0 %vm483_vm0, %v6978_v20 }
 0x647   : > { %5664 = vmatpush3.bf16.msra.mxu0 %v3545_v44  ;;  %5659 = vmatprep.mubr.msk.bf16.mxu0 %vm483_vm0, %v6988_v1 }
 0x648   : > { %6055 = vmatprep.subr.msk.bf16.mxu0 %vm654_vm2, %v5175_v51 }
 0x64e   : > { %5660 = vmatmul.mubr.msk.bf16.gmra.mrb[12].mxu0 %vm483_vm0, %v3427_v52 }
 0x64f   : > { %5665 = vmatprep.mubr.msk.bf16.mxu0 %vm483_vm0, %v6936_v11  ;;  %v3627_v11 = vld [vmem:[#allocation2 + $0xe1] sm:$0xff] }
 0x650   : > { %v3631_v14 = vpack.c.bf16 %v3627_v11, %v3321_v49 }
 0x656   : > { %5666 = vmatmul.mubr.msk.bf16.vlgmr.msra.gmra.mrb[8].mxu0 %vm483_vm0, %v6951_v16 }
 0x657   : > { %5674 = vmatpush3.bf16.msra.mxu0 %v3647_v10  ;;  %5669 = vmatprep.mubr.msk.bf16.mxu0 %vm483_vm0, %v6962_v25 }
 0x65e   : > { %5670 = vmatmul.mubr.msk.bf16.gmra.mrb[12].mxu0 %vm483_vm0, %v3529_v13  ;;  %v5182_v13 = vld [vmem:[%s7471_s11 + $0x4] sm:$0xf] }
 0x65f   : > { %5675 = vmatprep.mubr.msk.bf16.mxu0 %vm483_vm0, %v6993_v54  ;;  %6056 = vmatprep.subr.msk.bf16.mxu1 %vm3959_vm5, %v5182_v13  ;;  %v3961_v11 = vsel %vm3959_vm5, %v5182_v13, 0 }
 0x660   : > { %5684 = vmatpush3.bf16.msra.mxu1 %v3961_v11 }
 0x666   : > { %5676 = vmatmul.mubr.msk.bf16.vlgmr.msra.gmra.mrb[8].mxu0 %vm483_vm0, %v6996_v30 }
 0x667   : > { %5679 = vmatprep.mubr.msk.bf16.mxu0 %vm483_vm0, %v3019_v36 }
 0x66e   : > { %5680 = vmatmul.mubr.msk.bf16.gmra.mrb[12].mxu0 %vm483_vm0, %v3631_v14  ;;  %v7175_v14 = vld [vmem:[%s7471_s11] sm:$0xf] }
 0x66f   : > { %6057 = vmatprep.subr.msk.bf16.mxu1 %vm3959_vm5, %v7175_v14 }
 0x739   : > { %v7067_v15 = vpop.f32.mrb[8].mxu0 }
 0x73a   : > { %v7069_v16 = vpop.f32.mrb[9].mxu0  ;;  %v3751_v24 = vmul.f32 %v7067_v15, %v7067_v15  ;;  %v3725_v50 = vsel %vm512_vm3, %v7067_v15, 0.0 }
 0x73b   : > { %v3749_v12 = vmul.f32 %v7069_v16, %v7069_v16  ;;  %v7073_v17 = vpop.f32.mrb[10].mxu0  ;;  %v3722_v25 = vsel %vm512_vm3, %v7069_v16, 0.0 }
 0x73c   : > { %v7075_v22 = vpop.f32.mrb[11].mxu0  ;;  %v3752_v27 = vmul.f32 %v7073_v17, %v7073_v17  ;;  %v3760_v7 = vsel %vm512_vm3, %v3751_v24, 0.0  ;;  %v3727_v34 = vsel %vm512_vm3, %v7073_v17, 0.0 }
 0x73d   : > { %v3723_v45 = vsel %vm512_vm3, %v7075_v22, 0.0  ;;  %v3750_v53 = vmul.f32 %v7075_v22, %v7075_v22  ;;  %v3757_v23 = vsel %vm512_vm3, %v3749_v12, 0.0 }
 0x73e   : > { %v3724_v38 = vadd.f32 %v3723_v45, %v3722_v25  ;;  %v3762_v61 = vsel %vm512_vm3, %v3752_v27, 0.0 }
 0x73f   : > { %v3758_v28 = vsel %vm512_vm3, %v3750_v53, 0.0 }
 0x740   : > { %v3726_v20 = vadd.f32 %v3725_v50, %v3724_v38  ;;  %v3759_v32 = vadd.f32 %v3758_v28, %v3757_v23 }
 0x741   : > { %v7094_v57 = vpop.f32.mrb[12].mxu0 }
 0x742   : > { %v3761_v60 = vadd.f32 %v3760_v7, %v3759_v32  ;;  %v7096_v1 = vpop.f32.mrb[13].mxu0  ;;  %v3728_v4 = vadd.f32 %v3727_v34, %v3726_v20  ;;  %v3755_v19 = vmul.f32 %v7094_v57, %v7094_v57  ;;  %v3733_v42 = vsel %vm512_vm3, %v7094_v57, 0.0 }
 0x743   : > { %v3729_v59 = vsel %vm512_vm3, %v7096_v1, 0.0  ;;  %v3753_v63 = vmul.f32 %v7096_v1, %v7096_v1  ;;  %v7103_v3 = vpop.f32.mrb[14].mxu0 }
 0x744   : > { %v3730_v54 = vadd.f32 %v3729_v59, %v3728_v4  ;;  %v3763_v21 = vadd.f32 %v3762_v61, %v3761_v60  ;;  %v7105_v30 = vpop.f32.mrb[15].mxu0  ;;  %v3756_v31 = vmul.f32 %v7103_v3, %v7103_v3  ;;  %v3735_v33 = vsel %vm512_vm3, %v7103_v3, 0.0 }
 0x745   : > { %v3764_v2 = vsel %vm512_vm3, %v3753_v63, 0.0  ;;  %v3731_v5 = vsel %vm512_vm3, %v7105_v30, 0.0  ;;  %v3754_v36 = vmul.f32 %v7105_v30, %v7105_v30  ;;  %v3768_v41 = vsel %vm512_vm3, %v3755_v19, 0.0 }
 0x746   : > { %v3765_v6 = vadd.f32 %v3764_v2, %v3763_v21  ;;  %v3732_v26 = vadd.f32 %v3731_v5, %v3730_v54  ;;  %v3770_v40 = vsel %vm512_vm3, %v3756_v31, 0.0 }
 0x747   : > { %v3766_v58 = vsel %vm512_vm3, %v3754_v36, 0.0 }
 0x748   : > { %v3767_v35 = vadd.f32 %v3766_v58, %v3765_v6  ;;  %v3734_v29 = vadd.f32 %v3733_v42, %v3732_v26 }
 0x74a   : > { %v3736_v43 = vadd.f32 %v3735_v33, %v3734_v29  ;;  %v3769_v62 = vadd.f32 %v3768_v41, %v3767_v35 }
 0x74c   : > { %3737 = vadd.xlane.f32.xlu1 %v3736_v43  ;;  %v3771_v39 = vadd.f32 %v3770_v40, %v3769_v62 }
 0x74e   : > { %3772 = vadd.xlane.f32.xlu0 %v3771_v39 }
 0x7d9   : > { %v3738_v37 = vpop.xlane.xlu1 %3737 }
 0x7da   : > { %v3739_v18 = vrot.slane %v3738_v37, 4 }
 0x7db   : > { %v3773_v56 = vpop.xlane.xlu0 %3772 }
 0x7dc   : > { %v3740_v46 = vadd.f32 %v3739_v18, %v3738_v37  ;;  %v3774_v8 = vrot.slane %v3773_v56, 4 }
 0x7de   : > { %v3741_v47 = vrot.slane %v3740_v46, 2  ;;  %v3775_v49 = vadd.f32 %v3774_v8, %v3773_v56 }
 0x7e0   : > { %v3776_v48 = vrot.slane %v3775_v49, 2  ;;  %v3742_v44 = vadd.f32 %v3741_v47, %v3740_v46 }
 0x7e2   : > { %v3743_v51 = vrot.slane %v3742_v44, 1  ;;  %v3777_v9 = vadd.f32 %v3776_v48, %v3775_v49 }
 0x7e4   : > { %v3744_v52 = vadd.f32 %v3743_v51, %v3742_v44  ;;  %v3778_v10 = vrot.slane %v3777_v9, 1 }
 0x7e6   : > { %6077 = vpush %v3744_v52  ;;  %v3779_v55 = vadd.f32 %v3778_v10, %v3777_v9 }
 0x7e8   : > { %6079 = vpush %v3779_v55 }
 0x817   : > { %s6078_s26 = spop %6077 }
 0x818   : > { %s3748_s27 = smul.f32 0.001953125, %s6078_s26 }
 0x819   : > { %s6080_s28 = spop %6079 }
 0x81a   : > { %s3784_s15 = smul.f32 %s3748_s27, %s3748_s27  ;;  %v3787_v12 = vstv %s3748_s27 }
 0x81b   : > { %s3783_s16 = smul.f32 0.001953125, %s6080_s28  ;;  %v3788_v0 = vsub.f32 %v7069_v16, %v3787_v12  ;;  %v3789_v24 = vsub.f32 %v7075_v22, %v3787_v12  ;;  %v3790_v25 = vsub.f32 %v7067_v15, %v3787_v12  ;;  %v3791_v45 = vsub.f32 %v7073_v17, %v3787_v12  ;;  %v5180_v17 = vld [vmem:[%s7469_s9] ss:$0 sm:$0xff] }
 0x81c   : > { %v3792_v53 = vsub.f32 %v7096_v1, %v3787_v12  ;;  %v3793_v38 = vsub.f32 %v7105_v30, %v3787_v12  ;;  %v3794_v50 = vsub.f32 %v7094_v57, %v3787_v12  ;;  %v3795_v23 = vsub.f32 %v7103_v3, %v3787_v12  ;;  %v5181_v1 = vld [vmem:[%s7470_s10] ss:$0 sm:$0xff] }
 0x81d   : > { %s3785_s17 = ssub.f32 %s3783_s16, %s3784_s15 }
 0x81f   : > { %s3786_s18 = smax.f32 %s6166_s21, %s3785_s17 }
 0x820   : > { %s3796_s19 = sadd.f32 1e-05, %s3786_s18 }
 0x822   : > { %v3797_v27 = vstv %s3796_s19 }
 0x823   : > { %6136 = vrsqrt.f32 %v3797_v27 }
 0x82d   : > { %v6137_v16 = vpop.eup %6136 }
 0x82e   : > { %6081 = vpush %v6137_v16 }
 0x85f   : > { %s6082_s20 = spop %6081 }
 0x860   : > { %v3800_v15 = vstv %s6082_s20 }
 0x861   : > { %v3801_v22 = vmul.f32 %v3800_v15, %v3788_v0  ;;  %v3802_v28 = vmul.f32 %v3800_v15, %v3789_v24  ;;  %v3803_v20 = vmul.f32 %v3800_v15, %v3790_v25  ;;  %v3804_v32 = vmul.f32 %v3800_v15, %v3791_v45 }
 0x862   : > { %v3805_v7 = vmul.f32 %v3800_v15, %v3792_v53  ;;  %v3806_v34 = vmul.f32 %v3800_v15, %v3793_v38  ;;  %v3807_v57 = vmul.f32 %v3800_v15, %v3794_v50  ;;  %v3808_v60 = vmul.f32 %v3800_v15, %v3795_v23 }
 0x863   : > { %v3816_v4 = vmul.f32 %v5180_v17, %v3801_v22  ;;  %v3817_v61 = vmul.f32 %v5180_v17, %v3802_v28  ;;  %v3818_v59 = vmul.f32 %v5180_v17, %v3803_v20  ;;  %v3819_v63 = vmul.f32 %v5180_v17, %v3804_v32 }
 0x864   : > { %v3820_v3 = vmul.f32 %v5180_v17, %v3805_v7  ;;  %v3821_v54 = vmul.f32 %v5180_v17, %v3806_v34  ;;  %v3822_v21 = vmul.f32 %v5180_v17, %v3807_v57  ;;  %v3823_v30 = vmul.f32 %v5180_v17, %v3808_v60 }
 0x865   : > { %v3831_v19 = vadd.f32 %v5181_v1, %v3816_v4  ;;  %v3832_v2 = vadd.f32 %v5181_v1, %v3817_v61  ;;  %v3833_v5 = vadd.f32 %v5181_v1, %v3818_v59  ;;  %v7194_v36 = vadd.f32 %v5181_v1, %v3819_v63 }
 0x866   : > { %v7196_v6 = vadd.f32 %v5181_v1, %v3820_v3  ;;  %v7198_v26 = vadd.f32 %v5181_v1, %v3821_v54  ;;  %v7200_v42 = vadd.f32 %v5181_v1, %v3822_v21  ;;  %v7202_v31 = vadd.f32 %v5181_v1, %v3823_v30 }
 0x867   : > { %v3847_v58 = vmul.f32 0.044715, %v3831_v19  ;;  %v3848_v35 = vmul.f32 0.044715, %v3832_v2  ;;  %v3849_v29 = vmul.f32 0.044715, %v3833_v5 }
 0x868   : > { %v3850_v33 = vmul.f32 0.044715, %v7194_v36  ;;  %v3851_v41 = vmul.f32 0.044715, %v7196_v6  ;;  %v3852_v43 = vmul.f32 0.044715, %v7198_v26 }
 0x869   : > { %v3853_v62 = vmul.f32 0.044715, %v7200_v42  ;;  %v3854_v40 = vmul.f32 0.044715, %v7202_v31  ;;  %v3855_v39 = vmul.f32 %v3847_v58, %v3831_v19  ;;  %v3856_v37 = vmul.f32 %v3848_v35, %v3832_v2 }
 0x86a   : > { %v3857_v18 = vmul.f32 %v3849_v29, %v3833_v5  ;;  %v3858_v56 = vmul.f32 %v3850_v33, %v7194_v36  ;;  %v3859_v46 = vmul.f32 %v3851_v41, %v7196_v6  ;;  %v3860_v8 = vmul.f32 %v3852_v43, %v7198_v26 }
 0x86b   : > { %v3861_v47 = vmul.f32 %v3853_v62, %v7200_v42  ;;  %v3862_v49 = vmul.f32 %v3854_v40, %v7202_v31  ;;  %v3863_v48 = vmul.f32 %v3855_v39, %v3831_v19  ;;  %v3864_v44 = vmul.f32 %v3856_v37, %v3832_v2 }
 0x86c   : > { %v3865_v51 = vmul.f32 %v3857_v18, %v3833_v5  ;;  %v3866_v9 = vmul.f32 %v3858_v56, %v7194_v36  ;;  %v3867_v52 = vmul.f32 %v3859_v46, %v7196_v6  ;;  %v3868_v10 = vmul.f32 %v3860_v8, %v7198_v26  ;;  %v3933_v56 = vld [vmem:[#allocation3 + $0x8] sm:$0xff] }
 0x86d   : > { %v3869_v55 = vmul.f32 %v3861_v47, %v7200_v42  ;;  %v3870_v13 = vmul.f32 %v3862_v49, %v7202_v31  ;;  %v3871_v11 = vadd.f32 %v3863_v48, %v3831_v19  ;;  %v3872_v12 = vadd.f32 %v3864_v44, %v3832_v2 }
 0x86e   : > { %v3873_v0 = vadd.f32 %v3865_v51, %v3833_v5  ;;  %v3874_v24 = vadd.f32 %v3866_v9, %v7194_v36  ;;  %v3875_v25 = vadd.f32 %v3867_v52, %v7196_v6  ;;  %v3876_v45 = vadd.f32 %v3868_v10, %v7198_v26  ;;  %v5191_v51 = vld [vmem:[%s7471_s11 + $0x8] sm:$0xf]  ;;  %v3920_v10 = vld [vmem:[#allocation3 + $0x7] sm:$0xff] }
 0x86f   : > { %v3877_v53 = vadd.f32 %v3869_v55, %v7200_v42  ;;  %v3879_v38 = vmul.f32 0.7978846, %v3871_v11  ;;  %v3880_v50 = vmul.f32 0.7978846, %v3872_v12  ;;  %v3878_v23 = vadd.f32 %v3870_v13, %v7202_v31 }
 0x870   : > { %v3881_v27 = vmul.f32 0.7978846, %v3873_v0  ;;  %v3882_v16 = vmul.f32 0.7978846, %v3874_v24  ;;  %v3883_v15 = vmul.f32 0.7978846, %v3875_v25 }
 0x871   : > { %6138 = vtanh.f32 %v3879_v38  ;;  %v3884_v17 = vmul.f32 0.7978846, %v3876_v45  ;;  %v3885_v22 = vmul.f32 0.7978846, %v3877_v53  ;;  %v3886_v28 = vmul.f32 0.7978846, %v3878_v23 }
 0x872   : > { %6140 = vtanh.f32 %v3880_v50  ;;  %v3839_v7 = vmul.f32 0.5, %v3831_v19  ;;  %v3840_v60 = vmul.f32 0.5, %v3832_v2  ;;  %v3841_v61 = vmul.f32 0.5, %v3833_v5  ;;  %v5196_v50 = vld [vmem:[%s7471_s11 + $0xc] sm:$0xf] }
 0x873   : > { %6142 = vtanh.f32 %v3881_v27  ;;  %v3842_v54 = vmul.f32 0.5, %v7194_v36  ;;  %v3843_v35 = vmul.f32 0.5, %v7196_v6  ;;  %v3844_v2 = vmul.f32 0.5, %v7198_v26 }
 0x874   : > { %6144 = vtanh.f32 %v3882_v16  ;;  %v3845_v62 = vmul.f32 0.5, %v7200_v42  ;;  %v3846_v6 = vmul.f32 0.5, %v7202_v31  ;;  %v4041_v49 = vsel %vm3959_vm5, %v7175_v14, 0  ;;  %v4108_v16 = vld [vmem:[#allocation3 + $0x9] sm:$0xff] }
 0x875   : > { %6146 = vtanh.f32 %v3883_v15  ;;  %v4135_v53 = vsel %vm3959_vm5, %v5191_v51, 0 }
 0x876   : > { %6148 = vtanh.f32 %v3884_v17 }
 0x877   : > { %6150 = vtanh.f32 %v3885_v22 }
 0x878   : > { %6152 = vtanh.f32 %v3886_v28 }
 0x87b   : > { %v6139_v20 = vpop.eup %6138 }
 0x87c   : > { %v6141_v32 = vpop.eup %6140  ;;  %v3895_v34 = vadd.f32 1.0, %v6139_v20 }
 0x87d   : > { %v6143_v57 = vpop.eup %6142  ;;  %v3896_v1 = vadd.f32 1.0, %v6141_v32 }
 0x87e   : > { %v6145_v4 = vpop.eup %6144  ;;  %v3897_v59 = vadd.f32 1.0, %v6143_v57  ;;  %v3903_v63 = vmul.f32 %v3895_v34, %v3839_v7  ;;  %v4237_v57 = vsel %vm3959_vm5, %v5196_v50, 0 }
 0x87f   : > { %v6147_v3 = vpop.eup %6146  ;;  %v3898_v21 = vadd.f32 1.0, %v6145_v4  ;;  %v3904_v30 = vmul.f32 %v3896_v1, %v3840_v60  ;;  %v5201_v1 = vld [vmem:[%s7471_s11 + $0x10] sm:$0xf] }
 0x880   : > { %v6149_v58 = vpop.eup %6148  ;;  %v3899_v29 = vadd.f32 1.0, %v6147_v3  ;;  %v3905_v33 = vmul.f32 %v3897_v59, %v3841_v61  ;;  %3912 = vst.msk [vmem:[#allocation3 + $0x20] sm:$0xff] %vm512_vm3, %v3903_v63 }
 0x881   : > { %v6151_v19 = vpop.eup %6150  ;;  %v3900_v41 = vadd.f32 1.0, %v6149_v58  ;;  %v3906_v43 = vmul.f32 %v3898_v21, %v3842_v54  ;;  %3913 = vst.msk [vmem:[#allocation3 + $0x38] sm:$0xff] %vm512_vm3, %v3904_v30  ;;  %v4339_v54 = vsel %vm3959_vm5, %v5201_v1, 0  ;;  %v5206_v30 = vld [vmem:[%s7471_s11 + $0x14] sm:$0xf] }
 0x882   : > { %v6153_v5 = vpop.eup %6152  ;;  %v3901_v36 = vadd.f32 1.0, %v6151_v19  ;;  %v3907_v40 = vmul.f32 %v3899_v29, %v3843_v35  ;;  %3914 = vst.msk [vmem:[#allocation3 + $0x50] sm:$0xff] %vm512_vm3, %v3905_v33  ;;  %v4441_v19 = vsel %vm3959_vm5, %v5206_v30, 0 }
 0x883   : > { %v3902_v39 = vadd.f32 1.0, %v6153_v5  ;;  %v3908_v37 = vmul.f32 %v3900_v41, %v3844_v2  ;;  %3915 = vst.msk [vmem:[#allocation3 + $0x68] sm:$0xff] %vm512_vm3, %v3906_v43  ;;  %v5211_v41 = vld [vmem:[%s7471_s11 + $0x18] sm:$0xf] }
 0x884   : > { %v3909_v18 = vmul.f32 %v3901_v36, %v3845_v62  ;;  %3916 = vst.msk [vmem:[#allocation3 + $0x80] sm:$0xff] %vm512_vm3, %v3907_v40  ;;  %v4544_v40 = vsel %vm3959_vm5, %v5211_v41, 0 }
 0x885   : > { %v3910_v26 = vmul.f32 %v3902_v39, %v3846_v6  ;;  %3917 = vst.msk [vmem:[#allocation3 + $0x98] sm:$0xff] %vm512_vm3, %v3908_v37  ;;  %v5216_v39 = vld [vmem:[%s7471_s11 + $0x1c] sm:$0xf] }
 0x886   : > { %3918 = vst.msk [vmem:[#allocation3 + $0xb0] sm:$0xff] %vm512_vm3, %v3909_v18 }
 0x887   : > { %3919 = vst.msk [vmem:[#allocation3 + $0xc8] sm:$0xff] %vm512_vm3, %v3910_v26  ;;  %v7237_v42 = vld [vmem:[#allocation3 + $0x20] sm:$0xff]  ;;  %v4646_v26 = vsel %vm3959_vm5, %v5216_v39, 0 }
 0x888   : > { %v3941_v46 = vpack.c.bf16 %v7237_v42, %v3933_v56  ;;  %v7240_v31 = vld [vmem:[#allocation3 + $0x38] sm:$0xff]  ;;  %v4109_v15 = vld [vmem:[#allocation3 + $0x21] sm:$0xff]  ;;  %v5221_v56 = vld [vmem:[%s7471_s11 + $0x20] sm:$0xf] }
 0x889   : > { %v7242_v8 = vld [vmem:[#allocation3 + $0x50] sm:$0xff]  ;;  %v3921_v55 = vld [vmem:[#allocation3 + $0x1f] sm:$0xff]  ;;  %v4116_v22 = vpack.c.bf16 %v4109_v15, %v4108_v16  ;;  %v4320_v29 = vpack.c.bf16 %v7240_v31, %v7237_v42 }
 0x88a   : > { %5685 = vmatprep.mubr.msk.bf16.mxu1 %vm512_vm3, %v3941_v46  ;;  %v7247_v47 = vpack.c.bf16 %v7242_v8, %v7240_v31  ;;  %v7251_v48 = vld [vmem:[#allocation3 + $0x68] sm:$0xff]  ;;  %v3928_v11 = vpack.c.bf16 %v3921_v55, %v3920_v10  ;;  %v3922_v12 = vld [vmem:[#allocation3 + $0x37] sm:$0xff]  ;;  %v4524_v42 = vld [vmem:[#allocation3 + $0xdf] sm:$0xff]  ;;  %v4748_v31 = vsel %vm3959_vm5, %v5221_v56, 0 }
 0x88b   : > { %v7253_v44 = vld [vmem:[#allocation3 + $0x80] sm:$0xff]  ;;  %v3923_v0 = vld [vmem:[#allocation3 + $0x4f] sm:$0xff]  ;;  %v4218_v63 = vpack.c.bf16 %v3922_v12, %v3921_v55  ;;  %v4321_v33 = vpack.c.bf16 %v7251_v48, %v7242_v8 }
 0x88c   : > { %5686 = vmatmul.mubr.msk.bf16.vlgmr.msra.gmra.mrb[8].mxu1 %vm512_vm3, %v7247_v47  ;;  %v7262_v9 = vpack.c.bf16 %v7253_v44, %v7251_v48  ;;  %v7267_v14 = vld [vmem:[#allocation3 + $0x98] sm:$0xff]  ;;  %v3924_v24 = vld [vmem:[#allocation3 + $0x67] sm:$0xff]  ;;  %v7278_v45 = vpack.c.bf16 %v3923_v0, %v3922_v12 }
 0x88d   : > { %5694 = vmatpush3.bf16.msra.mxu1 %v4041_v49  ;;  %v7269_v52 = vld [vmem:[#allocation3 + $0xb0] sm:$0xff]  ;;  %v3925_v25 = vld [vmem:[#allocation3 + $0x7f] sm:$0xff]  ;;  %v4219_v3 = vpack.c.bf16 %v3924_v24, %v3923_v0  ;;  %v4322_v2 = vpack.c.bf16 %v7267_v14, %v7253_v44 }
 0x88e   : > { %5689 = vmatprep.mubr.msk.bf16.mxu1 %vm512_vm3, %v7262_v9  ;;  %6058 = vmatprep.subr.msk.bf16.mxu1 %vm3959_vm5, %v5191_v51  ;;  %v7273_v13 = vpack.c.bf16 %v7269_v52, %v7267_v14  ;;  %v7281_v38 = vpack.c.bf16 %v3925_v25, %v3924_v24  ;;  %v3926_v23 = vld [vmem:[#allocation3 + $0x97] sm:$0xff]  ;;  %v3927_v27 = vld [vmem:[#allocation3 + $0xaf] sm:$0xff]  ;;  %v4113_v7 = vld [vmem:[#allocation3 + $0x81] sm:$0xff] }
 0x88f   : > { %v7291_v17 = vpack.c.bf16 %v3927_v27, %v3926_v23  ;;  %v4110_v28 = vld [vmem:[#allocation3 + $0x39] sm:$0xff]  ;;  %v4111_v20 = vld [vmem:[#allocation3 + $0x51] sm:$0xff]  ;;  %v4112_v32 = vld [vmem:[#allocation3 + $0x69] sm:$0xff]  ;;  %v4220_v21 = vpack.c.bf16 %v3926_v23, %v3925_v25 }
 0x890   : > { %v7296_v34 = vpack.c.bf16 %v4111_v20, %v4110_v28  ;;  %v7299_v60 = vpack.c.bf16 %v4113_v7, %v4112_v32  ;;  %v4114_v4 = vld [vmem:[#allocation3 + $0x99] sm:$0xff]  ;;  %v4115_v61 = vld [vmem:[#allocation3 + $0xb1] sm:$0xff]  ;;  %v4217_v58 = vld [vmem:[#allocation3 + $0xc7] sm:$0xff]  ;;  %v4422_v62 = vpack.c.bf16 %v4110_v28, %v4109_v15  ;;  %v4423_v36 = vpack.c.bf16 %v4112_v32, %v4111_v20 }
 0x891   : > { %v4119_v59 = vpack.c.bf16 %v4115_v61, %v4114_v4  ;;  %v4221_v35 = vpack.c.bf16 %v4217_v58, %v3927_v27  ;;  %v4319_v43 = vld [vmem:[#allocation3 + $0xc8] sm:$0xff]  ;;  %v4424_v6 = vpack.c.bf16 %v4114_v4, %v4113_v7  ;;  %v4528_v46 = vpack.c.bf16 %v4524_v42, %v4217_v58  ;;  %v4626_v8 = vld [vmem:[#allocation3 + $0xe0] sm:$0xff] }
 0x892   : > { %v4323_v5 = vpack.c.bf16 %v4319_v43, %v7269_v52  ;;  %v4421_v37 = vld [vmem:[#allocation3 + $0xc9] sm:$0xff]  ;;  %v4630_v49 = vpack.c.bf16 %v4626_v8, %v4319_v43 }
 0x893   : > { %v4425_v18 = vpack.c.bf16 %v4421_v37, %v4115_v61 }
 0x894   : > { %5690 = vmatmul.mubr.msk.bf16.gmra.mrb[12].mxu1 %vm512_vm3, %v7273_v13 }
 0x895   : > { %5695 = vmatprep.mubr.msk.bf16.mxu1 %vm512_vm3, %v3928_v11 }
 0x89c   : > { %5696 = vmatmul.mubr.msk.bf16.vlgmr.msra.gmra.mrb[8].mxu1 %vm512_vm3, %v7278_v45 }
 0x89d   : > { %5704 = vmatpush3.bf16.msra.mxu1 %v4135_v53  ;;  %5699 = vmatprep.mubr.msk.bf16.mxu1 %vm512_vm3, %v7281_v38 }
 0x89e   : > { %6059 = vmatprep.subr.msk.bf16.mxu1 %vm3959_vm5, %v5196_v50 }
 0x8a4   : > { %5700 = vmatmul.mubr.msk.bf16.gmra.mrb[12].mxu1 %vm512_vm3, %v7291_v17 }
 0x8a5   : > { %5705 = vmatprep.mubr.msk.bf16.mxu1 %vm512_vm3, %v4116_v22 }
 0x8ac   : > { %5706 = vmatmul.mubr.msk.bf16.vlgmr.msra.gmra.mrb[8].mxu1 %vm512_vm3, %v7296_v34 }
 0x8ad   : > { %5714 = vmatpush3.bf16.msra.mxu1 %v4237_v57  ;;  %5709 = vmatprep.mubr.msk.bf16.mxu1 %vm512_vm3, %v7299_v60 }
 0x8ae   : > { %6060 = vmatprep.subr.msk.bf16.mxu1 %vm3959_vm5, %v5201_v1 }
 0x8b4   : > { %5710 = vmatmul.mubr.msk.bf16.gmra.mrb[12].mxu1 %vm512_vm3, %v4119_v59 }
 0x8b5   : > { %5715 = vmatprep.mubr.msk.bf16.mxu1 %vm512_vm3, %v4218_v63 }
 0x8bc   : > { %5716 = vmatmul.mubr.msk.bf16.vlgmr.msra.gmra.mrb[8].mxu1 %vm512_vm3, %v4219_v3 }
 0x8bd   : > { %5724 = vmatpush3.bf16.msra.mxu1 %v4339_v54  ;;  %5719 = vmatprep.mubr.msk.bf16.mxu1 %vm512_vm3, %v4220_v21 }
 0x8be   : > { %6061 = vmatprep.subr.msk.bf16.mxu1 %vm3959_vm5, %v5206_v30 }
 0x8c4   : > { %5720 = vmatmul.mubr.msk.bf16.gmra.mrb[12].mxu1 %vm512_vm3, %v4221_v35 }
 0x8c5   : > { %5725 = vmatprep.mubr.msk.bf16.mxu1 %vm512_vm3, %v4320_v29 }
 0x8cc   : > { %5726 = vmatmul.mubr.msk.bf16.vlgmr.msra.gmra.mrb[8].mxu1 %vm512_vm3, %v4321_v33 }
 0x8cd   : > { %5734 = vmatpush3.bf16.msra.mxu1 %v4441_v19  ;;  %5729 = vmatprep.mubr.msk.bf16.mxu1 %vm512_vm3, %v4322_v2 }
 0x8ce   : > { %6062 = vmatprep.subr.msk.bf16.mxu1 %vm3959_vm5, %v5211_v41 }
 0x8d4   : > { %5730 = vmatmul.mubr.msk.bf16.gmra.mrb[12].mxu1 %vm512_vm3, %v4323_v5 }
 0x8d5   : > { %5735 = vmatprep.mubr.msk.bf16.mxu1 %vm512_vm3, %v4422_v62 }
 0x8dc   : > { %5736 = vmatmul.mubr.msk.bf16.vlgmr.msra.gmra.mrb[8].mxu1 %vm512_vm3, %v4423_v36 }
 0x8dd   : > { %5744 = vmatpush3.bf16.msra.mxu1 %v4544_v40  ;;  %5739 = vmatprep.mubr.msk.bf16.mxu1 %vm512_vm3, %v4424_v6 }
 0x8de   : > { %6063 = vmatprep.subr.msk.bf16.mxu1 %vm3959_vm5, %v5216_v39 }
 0x8e4   : > { %5740 = vmatmul.mubr.msk.bf16.gmra.mrb[12].mxu1 %vm512_vm3, %v4425_v18 }
 0x8e5   : > { %5745 = vmatprep.mubr.msk.bf16.mxu1 %vm512_vm3, %v7278_v45 }
 0x8ec   : > { %5746 = vmatmul.mubr.msk.bf16.vlgmr.msra.gmra.mrb[8].mxu1 %vm512_vm3, %v7281_v38 }
 0x8ed   : > { %5754 = vmatpush3.bf16.msra.mxu1 %v4646_v26  ;;  %5749 = vmatprep.mubr.msk.bf16.mxu1 %vm512_vm3, %v7291_v17 }
 0x8ee   : > { %6064 = vmatprep.subr.msk.bf16.mxu1 %vm3959_vm5, %v5221_v56 }
 0x8f4   : > { %5750 = vmatmul.mubr.msk.bf16.gmra.mrb[12].mxu1 %vm512_vm3, %v4528_v46 }
 0x8f5   : > { %5755 = vmatprep.mubr.msk.bf16.mxu1 %vm512_vm3, %v7247_v47  ;;  %v4728_v47 = vld [vmem:[#allocation3 + $0xe1] sm:$0xff] }
 0x8f6   : > { %v4732_v48 = vpack.c.bf16 %v4728_v47, %v4421_v37 }
 0x8fc   : > { %5756 = vmatmul.mubr.msk.bf16.vlgmr.msra.gmra.mrb[8].mxu1 %vm512_vm3, %v7262_v9 }
 0x8fd   : > { %5764 = vmatpush3.bf16.msra.mxu1 %v4748_v31  ;;  %5759 = vmatprep.mubr.msk.bf16.mxu1 %vm512_vm3, %v7273_v13 }
 0x904   : > { %5760 = vmatmul.mubr.msk.bf16.gmra.mrb[12].mxu1 %vm512_vm3, %v4630_v49 }
 0x905   : > { %5765 = vmatprep.mubr.msk.bf16.mxu1 %vm512_vm3, %v7296_v34 }
 0x90c   : > { %5766 = vmatmul.mubr.msk.bf16.vlgmr.msra.gmra.mrb[8].mxu1 %vm512_vm3, %v7299_v60 }
 0x90d   : > { %5769 = vmatprep.mubr.msk.bf16.mxu1 %vm512_vm3, %v4119_v59 }
 0x914   : > { %5770 = vmatmul.mubr.msk.bf16.gmra.mrb[12].mxu1 %vm512_vm3, %v4732_v48 }
 0x9df   : > { %v7370_v44 = vpop.f32.mrb[8].mxu1 }
 0x9e0   : > { %v7372_v51 = vpop.f32.mrb[9].mxu1  ;;  %v4852_v10 = vmul.f32 %v7370_v44, %v7370_v44  ;;  %v4826_v0 = vsel %vm512_vm3, %v7370_v44, 0.0 }
 0x9e1   : > { %v4850_v9 = vmul.f32 %v7372_v51, %v7372_v51  ;;  %v7376_v14 = vpop.f32.mrb[10].mxu1  ;;  %v4823_v55 = vsel %vm512_vm3, %v7372_v51, 0.0 }
 0x9e2   : > { %v7378_v52 = vpop.f32.mrb[11].mxu1  ;;  %v4853_v25 = vmul.f32 %v7376_v14, %v7376_v14  ;;  %v4861_v50 = vsel %vm512_vm3, %v4852_v10, 0.0  ;;  %v4828_v23 = vsel %vm512_vm3, %v7376_v14, 0.0 }
 0x9e3   : > { %v4824_v13 = vsel %vm512_vm3, %v7378_v52, 0.0  ;;  %v4851_v11 = vmul.f32 %v7378_v52, %v7378_v52  ;;  %v4858_v24 = vsel %vm512_vm3, %v4850_v9, 0.0 }
 0x9e4   : > { %v4825_v12 = vadd.f32 %v4824_v13, %v4823_v55  ;;  %v4863_v22 = vsel %vm512_vm3, %v4853_v25, 0.0 }
 0x9e5   : > { %v4859_v45 = vsel %vm512_vm3, %v4851_v11, 0.0 }
 0x9e6   : > { %v4827_v53 = vadd.f32 %v4826_v0, %v4825_v12  ;;  %v4860_v38 = vadd.f32 %v4859_v45, %v4858_v24 }
 0x9e7   : > { %v7397_v27 = vpop.f32.mrb[12].mxu1 }
 0x9e8   : > { %v4862_v16 = vadd.f32 %v4861_v50, %v4860_v38  ;;  %v7399_v15 = vpop.f32.mrb[13].mxu1  ;;  %v4829_v17 = vadd.f32 %v4828_v23, %v4827_v53  ;;  %v4856_v60 = vmul.f32 %v7397_v27, %v7397_v27  ;;  %v4834_v3 = vsel %vm512_vm3, %v7397_v27, 0.0  ;;  %v5227_v23 = vld [vmem:[%s7473_s13] ss:$0 sm:$0xff] }
 0x9e9   : > { %v4830_v28 = vsel %vm512_vm3, %v7399_v15, 0.0  ;;  %v4854_v20 = vmul.f32 %v7399_v15, %v7399_v15  ;;  %v7406_v32 = vpop.f32.mrb[14].mxu1 }
 0x9ea   : > { %v4831_v7 = vadd.f32 %v4830_v28, %v4829_v17  ;;  %v4864_v34 = vadd.f32 %v4863_v22, %v4862_v16  ;;  %v7408_v57 = vpop.f32.mrb[15].mxu1  ;;  %v4857_v54 = vmul.f32 %v7406_v32, %v7406_v32  ;;  %v4836_v35 = vsel %vm512_vm3, %v7406_v32, 0.0 }
 0x9eb   : > { %v4865_v1 = vsel %vm512_vm3, %v4854_v20, 0.0  ;;  %v4832_v4 = vsel %vm512_vm3, %v7408_v57, 0.0  ;;  %v4855_v61 = vmul.f32 %v7408_v57, %v7408_v57  ;;  %v4869_v29 = vsel %vm512_vm3, %v4856_v60, 0.0 }
 0x9ec   : > { %v4866_v59 = vadd.f32 %v4865_v1, %v4864_v34  ;;  %v4833_v63 = vadd.f32 %v4832_v4, %v4831_v7  ;;  %v4871_v2 = vsel %vm512_vm3, %v4857_v54, 0.0 }
 0x9ed   : > { %v4867_v21 = vsel %vm512_vm3, %v4855_v61, 0.0 }
 0x9ee   : > { %v4868_v30 = vadd.f32 %v4867_v21, %v4866_v59  ;;  %v4835_v58 = vadd.f32 %v4834_v3, %v4833_v63 }
 0x9f0   : > { %v4837_v33 = vadd.f32 %v4836_v35, %v4835_v58  ;;  %v4870_v19 = vadd.f32 %v4869_v29, %v4868_v30 }
 0x9f2   : > { %4838 = vadd.xlane.f32.xlu1 %v4837_v33  ;;  %v4872_v41 = vadd.f32 %v4871_v2, %v4870_v19 }
 0x9f4   : > { %4873 = vadd.xlane.f32.xlu0 %v4872_v41 }
 0xa7f   : > { %v4839_v43 = vpop.xlane.xlu1 %4838 }
 0xa80   : > { %v4840_v5 = vrot.slane %v4839_v43, 4 }
 0xa81   : > { %v4874_v62 = vpop.xlane.xlu0 %4873 }
 0xa82   : > { %v4841_v36 = vadd.f32 %v4840_v5, %v4839_v43  ;;  %v4875_v40 = vrot.slane %v4874_v62, 4 }
 0xa84   : > { %v4842_v6 = vrot.slane %v4841_v36, 2  ;;  %v4876_v39 = vadd.f32 %v4875_v40, %v4874_v62 }
 0xa86   : > { %v4843_v37 = vadd.f32 %v4842_v6, %v4841_v36  ;;  %v4877_v18 = vrot.slane %v4876_v39, 2 }
 0xa88   : > { %v4878_v26 = vadd.f32 %v4877_v18, %v4876_v39  ;;  %v4844_v56 = vrot.slane %v4843_v37, 1 }
 0xa8a   : > { %v4845_v42 = vadd.f32 %v4844_v56, %v4843_v37  ;;  %v4879_v46 = vrot.slane %v4878_v26, 1 }
 0xa8c   : > { %6083 = vpush %v4845_v42  ;;  %v4880_v31 = vadd.f32 %v4879_v46, %v4878_v26 }
 0xa8e   : > { %6085 = vpush %v4880_v31 }
 0xabd   : > { %s6084_s27 = spop %6083 }
 0xabe   : > { %s4849_s28 = smul.f32 0.001953125, %s6084_s27  ;;  %s476_s27 = scalar_lea.vmem %s7461_s1, %s7477_s30 }
 0xabf   : > { %s6086_s15 = spop %6085  ;;  %v5228_v7 = vld [vmem:[%s476_s27] ss:$0 sm:$0xff] }
 0xac0   : > { %s4885_s16 = smul.f32 %s4849_s28, %s4849_s28  ;;  %v4888_v8 = vstv %s4849_s28 }
 0xac1   : > { %s4884_s17 = smul.f32 0.001953125, %s6086_s15  ;;  %v4889_v49 = vsub.f32 %v7372_v51, %v4888_v8  ;;  %v4890_v47 = vsub.f32 %v7378_v52, %v4888_v8  ;;  %v4891_v48 = vsub.f32 %v7370_v44, %v4888_v8  ;;  %v4892_v9 = vsub.f32 %v7376_v14, %v4888_v8  ;;  %v5226_v14 = vld [vmem:[%s7472_s12] ss:$0 sm:$0xff]  ;;  %s5232_s15 = sshll.u32 %s7477_s30, 6 }
 0xac2   : > { %v4893_v10 = vsub.f32 %v7399_v15, %v4888_v8  ;;  %v4894_v55 = vsub.f32 %v7408_v57, %v4888_v8  ;;  %v4895_v13 = vsub.f32 %v7397_v27, %v4888_v8  ;;  %v4896_v11 = vsub.f32 %v7406_v32, %v4888_v8 }
 0xac3   : > { %s4886_s18 = ssub.f32 %s4884_s17, %s4885_s16 }
 0xac5   : > { %s4887_s19 = smax.f32 %s6166_s21, %s4886_s18  ;;  %s481_s18 = scalar_lea.vmem %s7474_s14, %s5232_s15 }
 0xac6   : > { %s4897_s20 = sadd.f32 1e-05, %s4887_s19 }
 0xac8   : > { %v4898_v51 = vstv %s4897_s20 }
 0xac9   : > { %6154 = vrsqrt.f32 %v4898_v51 }
 0xad3   : > { %v6155_v52 = vpop.eup %6154 }
 0xad4   : > { %6087 = vpush %v6155_v52 }
 0xb05   : > { %s6088_s22 = spop %6087 }
 0xb06   : > { %v4901_v44 = vstv %s6088_s22 }
 0xb07   : > { %v4902_v12 = vmul.f32 %v4901_v44, %v4889_v49  ;;  %v4903_v0 = vmul.f32 %v4901_v44, %v4890_v47  ;;  %v4904_v24 = vmul.f32 %v4901_v44, %v4891_v48  ;;  %v4905_v25 = vmul.f32 %v4901_v44, %v4892_v9 }
 0xb08   : > { %v4906_v45 = vmul.f32 %v4901_v44, %v4893_v10  ;;  %v4907_v53 = vmul.f32 %v4901_v44, %v4894_v55  ;;  %v4908_v38 = vmul.f32 %v4901_v44, %v4895_v13  ;;  %v4909_v50 = vmul.f32 %v4901_v44, %v4896_v11 }
 0xb09   : > { %v4917_v27 = vmul.f32 %v5226_v14, %v4902_v12  ;;  %v4918_v16 = vmul.f32 %v5226_v14, %v4903_v0  ;;  %v4919_v15 = vmul.f32 %v5226_v14, %v4904_v24  ;;  %v4920_v17 = vmul.f32 %v5226_v14, %v4905_v25 }
 0xb0a   : > { %v4921_v22 = vmul.f32 %v5226_v14, %v4906_v45  ;;  %v4922_v28 = vmul.f32 %v5226_v14, %v4907_v53  ;;  %v4923_v20 = vmul.f32 %v5226_v14, %v4908_v38  ;;  %v4924_v32 = vmul.f32 %v5226_v14, %v4909_v50 }
 0xb0b   : > { %v4932_v34 = vadd.f32 %v5227_v23, %v4917_v27  ;;  %v4933_v57 = vadd.f32 %v5227_v23, %v4918_v16  ;;  %v4934_v60 = vadd.f32 %v5227_v23, %v4919_v15  ;;  %v4935_v1 = vadd.f32 %v5227_v23, %v4920_v17 }
 0xb0c   : > { %v4936_v4 = vadd.f32 %v5227_v23, %v4921_v22  ;;  %v4937_v61 = vadd.f32 %v5227_v23, %v4922_v28  ;;  %v4938_v59 = vadd.f32 %v5227_v23, %v4923_v20  ;;  %v4939_v63 = vadd.f32 %v5227_v23, %v4924_v32 }
 0xb0d   : > { %v4947_v3 = vadd.f32 %v5228_v7, %v4932_v34  ;;  %v4948_v54 = vadd.f32 %v5228_v7, %v4933_v57  ;;  %v4949_v21 = vadd.f32 %v5228_v7, %v4934_v60  ;;  %v4950_v30 = vadd.f32 %v5228_v7, %v4935_v1 }
 0xb0e   : > { %v4951_v58 = vadd.f32 %v5228_v7, %v4936_v4  ;;  %v4952_v35 = vadd.f32 %v5228_v7, %v4937_v61  ;;  %v4953_v29 = vadd.f32 %v5228_v7, %v4938_v59  ;;  %v4954_v33 = vadd.f32 %v5228_v7, %v4939_v63 }
 0xb0f   : > { %4955 = vst.msk [vmem:[%s481_s18] sm:$0xff] %vm512_vm3, %v4947_v3  ;;  %4956 = vst.msk [vmem:[%s481_s18 + $0x8] sm:$0xff] %vm512_vm3, %v4948_v54 }
 0xb10   : > { %4957 = vst.msk [vmem:[%s481_s18 + $0x10] sm:$0xff] %vm512_vm3, %v4949_v21  ;;  %4958 = vst.msk [vmem:[%s481_s18 + $0x18] sm:$0xff] %vm512_vm3, %v4950_v30 }
 0xb11   : > { %4959 = vst.msk [vmem:[%s481_s18 + $0x20] sm:$0xff] %vm512_vm3, %v4951_v58  ;;  %4960 = vst.msk [vmem:[%s481_s18 + $0x28] sm:$0xff] %vm512_vm3, %v4952_v35 }
 0xb12   : > { %4961 = vst.msk [vmem:[%s481_s18 + $0x30] sm:$0xff] %vm512_vm3, %v4953_v29  ;;  %4962 = vst.msk [vmem:[%s481_s18 + $0x38] sm:$0xff] %vm512_vm3, %v4954_v33 }
 0xb13 PF: > { %s24_s29 = sadd.s32 1, %s6162_s29  }
 0xb14   : > { %p21_p4 = scmp.ge.s32.totalorder %s24_s29, 4  }
 0xb16   :  { %23 = sbr.rel (!%p21_p4) target bundleno = 1 (0x1), region = 148 }

</bundles_post_ra>
